<compile_context>
chip_gen: v7x
topology: tpu7x:2x2x1
jax: 0.10.0
libtpu: 0.0.40
codegen_flags: <defaults>
</compile_context>

<pallas_src>
import numpy as np
import jax
import jax.numpy as jnp
from jax import lax
from jax.experimental import pallas as pl
from jax.experimental.pallas import tpu as pltpu

KSIZE = 2                      # kernel_size of every Conv1d
DILATIONS = (2, 4, 8, 12)      # conv1..conv4 dilations
CONV_CHANNELS = (32, 16, 8, 16)
HIDDEN = 50                    # LSTM hidden size (real)
HP = 64                        # LSTM hidden size padded to a 64-lane boundary
GATES = 4 * HP                 # 256 gate lanes (i, f, o, g) blocks of HP


def _align(x, m):
    return ((x + m - 1) // m) * m


# ---------------------------------------------------------------------------
# Pallas forward (whole network in one program; everything stays in VMEM)
# ---------------------------------------------------------------------------
def cnn_forward(x_ncl, wslab, bslab, layout):
    """x_ncl: (B, C_in, L) exactly like the PyTorch module; returns (B, 1)."""
    B, C_in, L = x_ncl.shape
    BL = B * L
    T = CONV_CHANNELS[-1]                      # conv4 channels = LSTM seq len
    BT = B * T
    wlay, blay = layout["w"], layout["b"]

    # Layout plumbing in the wrapper (outside the kernel): channels-major,
    # length on lanes -> every conv activation is lane-dense at width B*L.
    x_cl = jnp.transpose(x_ncl, (1, 0, 2)).reshape(C_in, BL).astype(jnp.float32)

    def kernel(x_ref, w_ref, b_ref, out_ref):
        # ---- dilated conv + ReLU at fixed lane width BL:
        #      y = W_tap0 @ x + W_tap1 @ shift_left(x, d) + b
        act = x_ref[...]                                   # (C_in, BL) f32
        c_in = C_in
        for idx, (c_out, d) in enumerate(zip(CONV_CHANNELS, DILATIONS)):
            r = wlay["conv"][idx]
            w0 = w_ref[r:r + c_out, 0:c_in]                # (C_out, C_in) bf16
            w1 = w_ref[r:r + c_out, 128:128 + c_in]
            rb = blay["bconv"][idx]
            bias = b_ref[rb:rb + c_out, 0:BL]              # pre-broadcast bias
            x_b = act.astype(jnp.bfloat16)
            xs_b = jnp.concatenate([act[:, d:], act[:, :d]],
                                   axis=1).astype(jnp.bfloat16)
            y = (jnp.dot(w0, x_b, preferred_element_type=jnp.float32)
                 + jnp.dot(w1, xs_b, preferred_element_type=jnp.float32)
                 + bias)
            act = jnp.maximum(y, 0.0)                      # (C_out, BL) f32
            c_in = c_out
        # act: (T, BL); per batch segment, lanes [0, L4) valid, rest garbage
        # (garbage is annihilated by zero rows of the padded wih0 below).

        # ---- one-time realign to t-major rows (row = t*B + b) via a 0/1
        #      permutation matmul, then ONE hoisted layer-0 input projection.
        act_b = act.astype(jnp.bfloat16)
        segs = [act_b[:, b * L:(b + 1) * L] for b in range(B)]
        a_bmaj = jnp.concatenate(segs, axis=0)             # (B*T, L), rows b*T+t
        rp = wlay["perm"]
        P = w_ref[rp:rp + BT, 0:BT]                        # 0/1 bf16 permutation
        a_tmaj = jnp.dot(P, a_bmaj,
                         preferred_element_type=jnp.float32)   # rows t*B+b

        wih0 = w_ref[wlay["wih0"]:wlay["wih0"] + L, 0:GATES]   # (L, 256) bf16
        whh0 = w_ref[wlay["whh0"]:wlay["whh0"] + HP, 0:GATES]
        wih1 = w_ref[wlay["wih1"]:wlay["wih1"] + HP, 0:GATES]
        whh1 = w_ref[wlay["whh1"]:wlay["whh1"] + HP, 0:GATES]
        bg0 = b_ref[blay["bg0"]:blay["bg0"] + 1, 0:GATES]      # (1, 256) f32
        bg1 = b_ref[blay["bg1"]:blay["bg1"] + 1, 0:GATES]

        g0_all = jnp.dot(a_tmaj.astype(jnp.bfloat16), wih0,
                         preferred_element_type=jnp.float32) + bg0   # (B*T, 256)

        h0 = jnp.zeros((B, HP), jnp.float32)
        c0 = jnp.zeros((B, HP), jnp.float32)
        h1 = jnp.zeros((B, HP), jnp.float32)
        c1 = jnp.zeros((B, HP), jnp.float32)

        # gate blocks of HP lanes each: [i | f | o | g]  (64-lane aligned)
        def cell(gates, c):
            s = jax.nn.sigmoid(gates[:, :3 * HP])          # one sigmoid (B, 192)
            i = s[:, :HP]
            f = s[:, HP:2 * HP]
            o = s[:, 2 * HP:3 * HP]
            g = jnp.tanh(gates[:, 3 * HP:])                # one tanh (B, HP)
            c_new = f * c + i * g
            return o * jnp.tanh(c_new), c_new

        # TODO(synk): replace the per-step jnp.dot's with MXU-resident weights
        # (pltpu.matmul_push_rhs / matmul_acc_lhs / matmul_pop) after per-gen
        # validation of the result-path semantics.
        for t in range(T):                                 # unrolled, 16 steps
            xg = g0_all[t * B:(t + 1) * B, :]              # contiguous (B, 256)
            gates0 = xg + jnp.dot(h0.astype(jnp.bfloat16), whh0,
                                  preferred_element_type=jnp.float32)
            h0, c0 = cell(gates0, c0)

            gates1 = (jnp.dot(h0.astype(jnp.bfloat16), wih1,
                              preferred_element_type=jnp.float32)
                      + jnp.dot(h1.astype(jnp.bfloat16), whh1,
                                preferred_element_type=jnp.float32)
                      + bg1)
            h1, c1 = cell(gates1, c1)

        # ---- final Linear + tanh as a VPU reduce (padded lanes are zero)
        wl = b_ref[blay["wl"]:blay["wl"] + 1, 0:HP]        # (1, HP) f32
        bl = b_ref[blay["bl"]:blay["bl"] + 1, 0:1]         # (1, 1)  f32
        y = jnp.sum(h1 * wl, axis=1, keepdims=True) + bl   # (B, 1)
        out_ref[...] = jnp.tanh(y)

    return pl.pallas_call(
        kernel,
        out_shape=jax.ShapeDtypeStruct((B, 1), jnp.float32),
        in_specs=[pl.BlockSpec(memory_space=pltpu.MemorySpace.VMEM)] * 3,
        out_specs=pl.BlockSpec(memory_space=pltpu.MemorySpace.VMEM),
    )(x_cl, wslab, bslab)


# ---------------------------------------------------------------------------
# Parameter construction (PyTorch-default-like)
# ---------------------------------------------------------------------------
def init_params(key, input_channel, kernel_size, window):
    keys = iter(jax.random.split(key, 32))

    def u(shape, bound):
        return jax.random.uniform(next(keys), shape, jnp.float32, -bound, bound)

    def conv_params(c_in, c_out):
        bound = 1.0 / float(np.sqrt(c_in * kernel_size))
        return u((c_out, c_in, kernel_size), bound), u((c_out,), bound)

    convs = []
    c_in = input_channel
    for c_out in CONV_CHANNELS:
        convs.append(conv_params(c_in, c_out))
        c_in = c_out

    L4 = window - (kernel_size - 1) * sum(DILATIONS)
    bound = 1.0 / float(np.sqrt(HIDDEN))

    def lstm_layer(in_size):                  # torch gate order: i, f, g, o
        return (u((4 * HIDDEN, in_size), bound), u((4 * HIDDEN, HIDDEN), bound),
                u((4 * HIDDEN,), bound), u((4 * HIDDEN,), bound))

    return dict(convs=convs,
                lstm0=lstm_layer(L4),
                lstm1=lstm_layer(HIDDEN),
                wl=u((1, HIDDEN), bound),
                bl=u((1,), bound))


# ---------------------------------------------------------------------------
# Pack everything into two slabs (bf16 weights, f32 biases) + layout table
# ---------------------------------------------------------------------------
def prepare_kernel_params(p, batch, window):
    H = HIDDEN
    T = CONV_CHANNELS[-1]
    BT = batch * T
    BL = batch * window
    L4 = window - (KSIZE - 1) * sum(DILATIONS)
    width = max(GATES, BL, 128 + max(CONV_CHANNELS), BT)

    # ---- row layouts (bf16 rows aligned to 16, f32 rows aligned to 8)
    wlay = {"conv": []}
    r = 0
    for c_out in CONV_CHANNELS:
        wlay["conv"].append(r)
        r = _align(r + c_out, 16)
    wlay["perm"] = r
    r = _align(r + BT, 16)
    wlay["wih0"] = r
    r = _align(r + window, 16)
    for name in ("whh0", "wih1", "whh1"):
        wlay[name] = r
        r = _align(r + HP, 16)
    RW = _align(r, 16)

    blay = {"bconv": []}
    rb = 0
    for c_out in CONV_CHANNELS:
        blay["bconv"].append(rb)
        rb = _align(rb + c_out, 8)
    blay["bg0"] = rb; rb += 8
    blay["bg1"] = rb; rb += 8
    blay["wl"] = rb; rb += 8
    blay["bl"] = rb; rb += 8
    RB = _align(rb, 8)

    wslab = np.zeros((RW, width), np.float32)
    bslab = np.zeros((RB, width), np.float32)

    # ---- conv weights (tap0 at col 0, tap1 at col 128) + lane-broadcast biases
    for idx, (w, b) in enumerate(p["convs"]):
        w = np.asarray(w); b = np.asarray(b)
        c_out, c_in, K = w.shape
        r0 = wlay["conv"][idx]
        for k in range(K):
            wslab[r0:r0 + c_out, k * 128:k * 128 + c_in] = w[:, :, k]
        rb0 = blay["bconv"][idx]
        bslab[rb0:rb0 + c_out, 0:BL] = b[:, None]

    # ---- permutation matrix: b-major rows (b*T+t) -> t-major rows (t*B+b)
    P = np.zeros((BT, BT), np.float32)
    for t in range(T):
        for b in range(batch):
            P[t * batch + b, b * T + t] = 1.0
    wslab[wlay["perm"]:wlay["perm"] + BT, 0:BT] = P

    # ---- LSTM weights: torch gate order (i,f,g,o) -> kernel (i,f,o,g),
    #      transpose to (in, 4H) and zero-pad each gate block 50 -> 64.
    torch_gate_for_kernel = (0, 1, 3, 2)

    def place_lstm(w_t, dst_row, n_in_real):
        w_t = np.asarray(w_t)                              # (4H, in)
        for gk, gt in enumerate(torch_gate_for_kernel):
            blk = w_t[gt * H:(gt + 1) * H, :]              # (H, in)
            wslab[dst_row:dst_row + n_in_real, gk * HP:gk * HP + H] = blk.T

    wih0, whh0, bih0, bhh0 = p["lstm0"]
    wih1, whh1, bih1, bhh1 = p["lstm1"]
    place_lstm(wih0, wlay["wih0"], L4)
    place_lstm(whh0, wlay["whh0"], H)
    place_lstm(wih1, wlay["wih1"], H)
    place_lstm(whh1, wlay["whh1"], H)

    def place_bias(bih, bhh, row):
        bsum = np.asarray(bih) + np.asarray(bhh)
        for gk, gt in enumerate(torch_gate_for_kernel):
            bslab[row, gk * HP:gk * HP + H] = bsum[gt * H:(gt + 1) * H]

    place_bias(bih0, bhh0, blay["bg0"])
    place_bias(bih1, bhh1, blay["bg1"])

    bslab[blay["wl"], 0:H] = np.asarray(p["wl"])[0]
    bslab[blay["bl"], 0] = float(np.asarray(p["bl"])[0])

    layout = {"w": wlay, "b": blay}
    return (jnp.asarray(wslab, jnp.bfloat16),
            jnp.asarray(bslab, jnp.float32),
            layout)


# ---------------------------------------------------------------------------
# Pure-JAX reference (mirrors the PyTorch forward exactly, f32 HIGHEST)
# ---------------------------------------------------------------------------
def reference_forward(x_ncl, p):
    H = HIDDEN

    def conv(x, w, b, d):
        y = lax.conv_general_dilated(
            x, w, window_strides=(1,), padding='VALID', rhs_dilation=(d,),
            dimension_numbers=('NCH', 'OIH', 'NCH'),
            precision=lax.Precision.HIGHEST)
        return y + b.reshape(1, -1, 1)

    a = x_ncl.astype(jnp.float32)
    for (w, b), d in zip(p['convs'], DILATIONS):
        a = jax.nn.relu(conv(a, w, b, d))                  # (B, C, L)

    B, T, _ = a.shape                                      # seq len = conv4 channels
    h0 = jnp.zeros((B, H)); c0 = jnp.zeros((B, H))
    h1 = jnp.zeros((B, H)); c1 = jnp.zeros((B, H))
    wih0, whh0, bih0, bhh0 = p['lstm0']
    wih1, whh1, bih1, bhh1 = p['lstm1']

    def cell(x_t, h, c, wih, whh, bih, bhh):               # torch gate order i,f,g,o
        g = (jnp.dot(x_t, wih.T, precision=lax.Precision.HIGHEST)
             + jnp.dot(h, whh.T, precision=lax.Precision.HIGHEST) + bih + bhh)
        i = jax.nn.sigmoid(g[:, :H])
        f = jax.nn.sigmoid(g[:, H:2 * H])
        gg = jnp.tanh(g[:, 2 * H:3 * H])
        o = jax.nn.sigmoid(g[:, 3 * H:])
        c = f * c + i * gg
        return o * jnp.tanh(c), c

    for t in range(T):
        h0, c0 = cell(a[:, t, :], h0, c0, wih0, whh0, bih0, bhh0)
        h1, c1 = cell(h0, h1, c1, wih1, whh1, bih1, bhh1)

    return jnp.tanh(jnp.dot(h1, p['wl'].T, precision=lax.Precision.HIGHEST) + p['bl'])


if __name__ == "__main__":
    INPUT_CHANNEL = 4
    BATCH = 2
    WINDOW = 64        # window - (kernel_size-1)*(2+4+8+12) = 38 = LSTM input_size

    key = jax.random.PRNGKey(0)
    kx, kp = jax.random.split(key)
    x = jax.random.normal(kx, (BATCH, INPUT_CHANNEL, WINDOW), jnp.float32)

    params = init_params(kp, INPUT_CHANNEL, KSIZE, WINDOW)
    wslab, bslab, layout = prepare_kernel_params(params, BATCH, WINDOW)

    out = jax.block_until_ready(cnn_forward(x, wslab, bslab, layout))
    ref = jax.block_until_ready(reference_forward(x, params))

    assert out.shape == (BATCH, 1)
    # bf16 MXU operands (f32 accumulate) vs. f32-HIGHEST reference -> relaxed tol.
    np.testing.assert_allclose(np.asarray(out), np.asarray(ref),
                               atol=2e-2, rtol=2e-2)
    print("KERNEL_OK")
</pallas_src>

<mosaic_0001>
module attributes {stable_mosaic.version = 11 : i64} {
  func.func @kernel(%arg0: memref<4x128xf32, #tpu.memory_space<vmem>>, %arg1: memref<368x256xbf16, #tpu.memory_space<vmem>>, %arg2: memref<104x256xf32, #tpu.memory_space<vmem>>, %arg3: memref<2x1xf32, #tpu.memory_space<vmem>>) attributes {dimension_semantics = [], scalar_prefetch = 0 : i64, scratch_operands = 0 : i64, tpu.core_type = #tpu.core_type<tc>} {
    %c0 = arith.constant 0 : index
    %c0_0 = arith.constant 0 : index
    %0 = vector.load %arg0[%c0, %c0_0] : memref<4x128xf32, #tpu.memory_space<vmem>>, vector<4x128xf32>
    %c0_1 = arith.constant 0 : index
    %c0_2 = arith.constant 0 : index
    %1 = vector.load %arg1[%c0_1, %c0_2] : memref<368x256xbf16, #tpu.memory_space<vmem>>, vector<32x4xbf16>
    %c0_3 = arith.constant 0 : index
    %c128 = arith.constant 128 : index
    %2 = vector.load %arg1[%c0_3, %c128] : memref<368x256xbf16, #tpu.memory_space<vmem>>, vector<32x4xbf16>
    %c0_4 = arith.constant 0 : index
    %c0_5 = arith.constant 0 : index
    %3 = vector.load %arg2[%c0_4, %c0_5] : memref<104x256xf32, #tpu.memory_space<vmem>>, vector<32x128xf32>
    %4 = arith.truncf %0 : vector<4x128xf32> to vector<4x128xbf16>
    %5 = vector.extract_strided_slice %0 {offsets = [0, 2], sizes = [4, 126], strides = [1, 1]} : vector<4x128xf32> to vector<4x126xf32>
    %6 = vector.extract_strided_slice %0 {offsets = [0, 0], sizes = [4, 2], strides = [1, 1]} : vector<4x128xf32> to vector<4x2xf32>
    %7 = tpu.concatenate %5, %6 in 1 : vector<4x126xf32>, vector<4x2xf32> -> vector<4x128xf32>
    %8 = arith.truncf %7 : vector<4x128xf32> to vector<4x128xbf16>
    %cst = arith.constant dense<0.000000e+00> : vector<32x128xf32>
    %9 = tpu.matmul %1, %4, %cst {dimension_numbers = #tpu.dot_dimension_numbers<[1], [0], [0], [1], [0, 0, 1, 1], [], []>} : vector<32x4xbf16>, vector<4x128xbf16>, vector<32x128xf32> -> vector<32x128xf32>
    %cst_6 = arith.constant dense<0.000000e+00> : vector<32x128xf32>
    %10 = tpu.matmul %2, %8, %cst_6 {dimension_numbers = #tpu.dot_dimension_numbers<[1], [0], [0], [1], [0, 0, 1, 1], [], []>} : vector<32x4xbf16>, vector<4x128xbf16>, vector<32x128xf32> -> vector<32x128xf32>
    %11 = arith.addf %9, %10 : vector<32x128xf32>
    %12 = arith.addf %11, %3 : vector<32x128xf32>
    %cst_7 = arith.constant 0.000000e+00 : f32
    %13 = vector.broadcast %cst_7 : f32 to vector<32x128xf32>
    %14 = arith.maximumf %12, %13 : vector<32x128xf32>
    %c32 = arith.constant 32 : index
    %c0_8 = arith.constant 0 : index
    %15 = vector.load %arg1[%c32, %c0_8] : memref<368x256xbf16, #tpu.memory_space<vmem>>, vector<16x32xbf16>
    %c32_9 = arith.constant 32 : index
    %c128_10 = arith.constant 128 : index
    %16 = vector.load %arg1[%c32_9, %c128_10] : memref<368x256xbf16, #tpu.memory_space<vmem>>, vector<16x32xbf16>
    %c32_11 = arith.constant 32 : index
    %c0_12 = arith.constant 0 : index
    %17 = vector.load %arg2[%c32_11, %c0_12] : memref<104x256xf32, #tpu.memory_space<vmem>>, vector<16x128xf32>
    %18 = arith.truncf %14 : vector<32x128xf32> to vector<32x128xbf16>
    %19 = vector.extract_strided_slice %14 {offsets = [0, 4], sizes = [32, 124], strides = [1, 1]} : vector<32x128xf32> to vector<32x124xf32>
    %20 = vector.extract_strided_slice %14 {offsets = [0, 0], sizes = [32, 4], strides = [1, 1]} : vector<32x128xf32> to vector<32x4xf32>
    %21 = tpu.concatenate %19, %20 in 1 : vector<32x124xf32>, vector<32x4xf32> -> vector<32x128xf32>
    %22 = arith.truncf %21 : vector<32x128xf32> to vector<32x128xbf16>
    %cst_13 = arith.constant dense<0.000000e+00> : vector<16x128xf32>
    %23 = tpu.matmul %15, %18, %cst_13 {dimension_numbers = #tpu.dot_dimension_numbers<[1], [0], [0], [1], [0, 0, 1, 1], [], []>} : vector<16x32xbf16>, vector<32x128xbf16>, vector<16x128xf32> -> vector<16x128xf32>
    %cst_14 = arith.constant dense<0.000000e+00> : vector<16x128xf32>
    %24 = tpu.matmul %16, %22, %cst_14 {dimension_numbers = #tpu.dot_dimension_numbers<[1], [0], [0], [1], [0, 0, 1, 1], [], []>} : vector<16x32xbf16>, vector<32x128xbf16>, vector<16x128xf32> -> vector<16x128xf32>
    %25 = arith.addf %23, %24 : vector<16x128xf32>
    %26 = arith.addf %25, %17 : vector<16x128xf32>
    %cst_15 = arith.constant 0.000000e+00 : f32
    %27 = vector.broadcast %cst_15 : f32 to vector<16x128xf32>
    %28 = arith.maximumf %26, %27 : vector<16x128xf32>
    %c48 = arith.constant 48 : index
    %c0_16 = arith.constant 0 : index
    %29 = vector.load %arg1[%c48, %c0_16] : memref<368x256xbf16, #tpu.memory_space<vmem>>, vector<8x16xbf16>
    %c48_17 = arith.constant 48 : index
    %c128_18 = arith.constant 128 : index
    %30 = vector.load %arg1[%c48_17, %c128_18] : memref<368x256xbf16, #tpu.memory_space<vmem>>, vector<8x16xbf16>
    %c48_19 = arith.constant 48 : index
    %c0_20 = arith.constant 0 : index
    %31 = vector.load %arg2[%c48_19, %c0_20] : memref<104x256xf32, #tpu.memory_space<vmem>>, vector<8x128xf32>
    %32 = arith.truncf %28 : vector<16x128xf32> to vector<16x128xbf16>
    %33 = vector.extract_strided_slice %28 {offsets = [0, 8], sizes = [16, 120], strides = [1, 1]} : vector<16x128xf32> to vector<16x120xf32>
    %34 = vector.extract_strided_slice %28 {offsets = [0, 0], sizes = [16, 8], strides = [1, 1]} : vector<16x128xf32> to vector<16x8xf32>
    %35 = tpu.concatenate %33, %34 in 1 : vector<16x120xf32>, vector<16x8xf32> -> vector<16x128xf32>
    %36 = arith.truncf %35 : vector<16x128xf32> to vector<16x128xbf16>
    %cst_21 = arith.constant dense<0.000000e+00> : vector<8x128xf32>
    %37 = tpu.matmul %29, %32, %cst_21 {dimension_numbers = #tpu.dot_dimension_numbers<[1], [0], [0], [1], [0, 0, 1, 1], [], []>} : vector<8x16xbf16>, vector<16x128xbf16>, vector<8x128xf32> -> vector<8x128xf32>
    %cst_22 = arith.constant dense<0.000000e+00> : vector<8x128xf32>
    %38 = tpu.matmul %30, %36, %cst_22 {dimension_numbers = #tpu.dot_dimension_numbers<[1], [0], [0], [1], [0, 0, 1, 1], [], []>} : vector<8x16xbf16>, vector<16x128xbf16>, vector<8x128xf32> -> vector<8x128xf32>
    %39 = arith.addf %37, %38 : vector<8x128xf32>
    %40 = arith.addf %39, %31 : vector<8x128xf32>
    %cst_23 = arith.constant 0.000000e+00 : f32
    %41 = vector.broadcast %cst_23 : f32 to vector<8x128xf32>
    %42 = arith.maximumf %40, %41 : vector<8x128xf32>
    %c64 = arith.constant 64 : index
    %c0_24 = arith.constant 0 : index
    %43 = vector.load %arg1[%c64, %c0_24] : memref<368x256xbf16, #tpu.memory_space<vmem>>, vector<16x8xbf16>
    %c64_25 = arith.constant 64 : index
    %c128_26 = arith.constant 128 : index
    %44 = vector.load %arg1[%c64_25, %c128_26] : memref<368x256xbf16, #tpu.memory_space<vmem>>, vector<16x8xbf16>
    %c56 = arith.constant 56 : index
    %c0_27 = arith.constant 0 : index
    %45 = vector.load %arg2[%c56, %c0_27] : memref<104x256xf32, #tpu.memory_space<vmem>>, vector<16x128xf32>
    %46 = arith.truncf %42 : vector<8x128xf32> to vector<8x128xbf16>
    %47 = vector.extract_strided_slice %42 {offsets = [0, 12], sizes = [8, 116], strides = [1, 1]} : vector<8x128xf32> to vector<8x116xf32>
    %48 = vector.extract_strided_slice %42 {offsets = [0, 0], sizes = [8, 12], strides = [1, 1]} : vector<8x128xf32> to vector<8x12xf32>
    %49 = tpu.concatenate %47, %48 in 1 : vector<8x116xf32>, vector<8x12xf32> -> vector<8x128xf32>
    %50 = arith.truncf %49 : vector<8x128xf32> to vector<8x128xbf16>
    %cst_28 = arith.constant dense<0.000000e+00> : vector<16x128xf32>
    %51 = tpu.matmul %43, %46, %cst_28 {dimension_numbers = #tpu.dot_dimension_numbers<[1], [0], [0], [1], [0, 0, 1, 1], [], []>} : vector<16x8xbf16>, vector<8x128xbf16>, vector<16x128xf32> -> vector<16x128xf32>
    %cst_29 = arith.constant dense<0.000000e+00> : vector<16x128xf32>
    %52 = tpu.matmul %44, %50, %cst_29 {dimension_numbers = #tpu.dot_dimension_numbers<[1], [0], [0], [1], [0, 0, 1, 1], [], []>} : vector<16x8xbf16>, vector<8x128xbf16>, vector<16x128xf32> -> vector<16x128xf32>
    %53 = arith.addf %51, %52 : vector<16x128xf32>
    %54 = arith.addf %53, %45 : vector<16x128xf32>
    %cst_30 = arith.constant 0.000000e+00 : f32
    %55 = vector.broadcast %cst_30 : f32 to vector<16x128xf32>
    %56 = arith.maximumf %54, %55 : vector<16x128xf32>
    %57 = arith.truncf %56 : vector<16x128xf32> to vector<16x128xbf16>
    %58 = vector.extract_strided_slice %57 {offsets = [0, 0], sizes = [16, 64], strides = [1, 1]} : vector<16x128xbf16> to vector<16x64xbf16>
    %59 = vector.extract_strided_slice %57 {offsets = [0, 64], sizes = [16, 64], strides = [1, 1]} : vector<16x128xbf16> to vector<16x64xbf16>
    %60 = tpu.concatenate %58, %59 in 0 : vector<16x64xbf16>, vector<16x64xbf16> -> vector<32x64xbf16>
    %c80 = arith.constant 80 : index
    %c0_31 = arith.constant 0 : index
    %61 = vector.load %arg1[%c80, %c0_31] : memref<368x256xbf16, #tpu.memory_space<vmem>>, vector<32x32xbf16>
    %cst_32 = arith.constant dense<0.000000e+00> : vector<32x64xf32>
    %62 = tpu.matmul %61, %60, %cst_32 {dimension_numbers = #tpu.dot_dimension_numbers<[1], [0], [0], [1], [0, 0, 1, 1], [], []>} : vector<32x32xbf16>, vector<32x64xbf16>, vector<32x64xf32> -> vector<32x64xf32>
    %c112 = arith.constant 112 : index
    %c0_33 = arith.constant 0 : index
    %63 = vector.load %arg1[%c112, %c0_33] : memref<368x256xbf16, #tpu.memory_space<vmem>>, vector<64x256xbf16>
    %c176 = arith.constant 176 : index
    %c0_34 = arith.constant 0 : index
    %64 = vector.load %arg1[%c176, %c0_34] : memref<368x256xbf16, #tpu.memory_space<vmem>>, vector<64x256xbf16>
    %c240 = arith.constant 240 : index
    %c0_35 = arith.constant 0 : index
    %65 = vector.load %arg1[%c240, %c0_35] : memref<368x256xbf16, #tpu.memory_space<vmem>>, vector<64x256xbf16>
    %c304 = arith.constant 304 : index
    %c0_36 = arith.constant 0 : index
    %66 = vector.load %arg1[%c304, %c0_36] : memref<368x256xbf16, #tpu.memory_space<vmem>>, vector<64x256xbf16>
    %c72 = arith.constant 72 : index
    %c0_37 = arith.constant 0 : index
    %67 = vector.load %arg2[%c72, %c0_37] : memref<104x256xf32, #tpu.memory_space<vmem>>, vector<1x256xf32>
    %c80_38 = arith.constant 80 : index
    %c0_39 = arith.constant 0 : index
    %68 = vector.load %arg2[%c80_38, %c0_39] : memref<104x256xf32, #tpu.memory_space<vmem>>, vector<1x256xf32>
    %69 = arith.truncf %62 : vector<32x64xf32> to vector<32x64xbf16>
    %cst_40 = arith.constant dense<0.000000e+00> : vector<32x256xf32>
    %70 = tpu.matmul %69, %63, %cst_40 {dimension_numbers = #tpu.dot_dimension_numbers<[1], [0], [0], [1], [0, 0, 1, 1], [], []>} : vector<32x64xbf16>, vector<64x256xbf16>, vector<32x256xf32> -> vector<32x256xf32>
    %71 = vector.broadcast %67 : vector<1x256xf32> to vector<32x256xf32>
    %72 = arith.addf %70, %71 : vector<32x256xf32>
    %cst_41 = arith.constant 0.000000e+00 : f32
    %73 = vector.broadcast %cst_41 : f32 to vector<2x64xf32>
    %cst_42 = arith.constant 0.000000e+00 : f32
    %74 = vector.broadcast %cst_42 : f32 to vector<2x64xf32>
    %cst_43 = arith.constant 0.000000e+00 : f32
    %75 = vector.broadcast %cst_43 : f32 to vector<2x64xf32>
    %cst_44 = arith.constant 0.000000e+00 : f32
    %76 = vector.broadcast %cst_44 : f32 to vector<2x64xf32>
    %77 = vector.extract_strided_slice %72 {offsets = [0, 0], sizes = [2, 256], strides = [1, 1]} : vector<32x256xf32> to vector<2x256xf32>
    %78 = arith.truncf %73 : vector<2x64xf32> to vector<2x64xbf16>
    %cst_45 = arith.constant dense<0.000000e+00> : vector<2x256xf32>
    %79 = tpu.matmul %78, %64, %cst_45 {dimension_numbers = #tpu.dot_dimension_numbers<[1], [0], [0], [1], [0, 0, 1, 1], [], []>} : vector<2x64xbf16>, vector<64x256xbf16>, vector<2x256xf32> -> vector<2x256xf32>
    %80 = arith.addf %77, %79 : vector<2x256xf32>
    %81 = vector.extract_strided_slice %80 {offsets = [0, 0], sizes = [2, 192], strides = [1, 1]} : vector<2x256xf32> to vector<2x192xf32>
    %82 = arith.negf %81 : vector<2x192xf32>
    %83 = math.exp %82 : vector<2x192xf32>
    %cst_46 = arith.constant 1.000000e+00 : f32
    %84 = vector.broadcast %cst_46 : f32 to vector<2x192xf32>
    %85 = arith.addf %84, %83 : vector<2x192xf32>
    %86 = arith.divf %84, %85 : vector<2x192xf32>
    %87 = vector.extract_strided_slice %86 {offsets = [0, 0], sizes = [2, 64], strides = [1, 1]} : vector<2x192xf32> to vector<2x64xf32>
    %88 = vector.extract_strided_slice %86 {offsets = [0, 64], sizes = [2, 64], strides = [1, 1]} : vector<2x192xf32> to vector<2x64xf32>
    %89 = vector.extract_strided_slice %86 {offsets = [0, 128], sizes = [2, 64], strides = [1, 1]} : vector<2x192xf32> to vector<2x64xf32>
    %90 = vector.extract_strided_slice %80 {offsets = [0, 192], sizes = [2, 64], strides = [1, 1]} : vector<2x256xf32> to vector<2x64xf32>
    %91 = math.tanh %90 : vector<2x64xf32>
    %92 = arith.mulf %88, %74 : vector<2x64xf32>
    %93 = arith.mulf %87, %91 : vector<2x64xf32>
    %94 = arith.addf %92, %93 : vector<2x64xf32>
    %95 = math.tanh %94 : vector<2x64xf32>
    %96 = arith.mulf %89, %95 : vector<2x64xf32>
    %97 = arith.truncf %96 : vector<2x64xf32> to vector<2x64xbf16>
    %cst_47 = arith.constant dense<0.000000e+00> : vector<2x256xf32>
    %98 = tpu.matmul %97, %65, %cst_47 {dimension_numbers = #tpu.dot_dimension_numbers<[1], [0], [0], [1], [0, 0, 1, 1], [], []>} : vector<2x64xbf16>, vector<64x256xbf16>, vector<2x256xf32> -> vector<2x256xf32>
    %99 = arith.truncf %75 : vector<2x64xf32> to vector<2x64xbf16>
    %cst_48 = arith.constant dense<0.000000e+00> : vector<2x256xf32>
    %100 = tpu.matmul %99, %66, %cst_48 {dimension_numbers = #tpu.dot_dimension_numbers<[1], [0], [0], [1], [0, 0, 1, 1], [], []>} : vector<2x64xbf16>, vector<64x256xbf16>, vector<2x256xf32> -> vector<2x256xf32>
    %101 = arith.addf %98, %100 : vector<2x256xf32>
    %102 = vector.broadcast %68 : vector<1x256xf32> to vector<2x256xf32>
    %103 = arith.addf %101, %102 : vector<2x256xf32>
    %104 = vector.extract_strided_slice %103 {offsets = [0, 0], sizes = [2, 192], strides = [1, 1]} : vector<2x256xf32> to vector<2x192xf32>
    %105 = arith.negf %104 : vector<2x192xf32>
    %106 = math.exp %105 : vector<2x192xf32>
    %cst_49 = arith.constant 1.000000e+00 : f32
    %107 = vector.broadcast %cst_49 : f32 to vector<2x192xf32>
    %108 = arith.addf %107, %106 : vector<2x192xf32>
    %109 = arith.divf %107, %108 : vector<2x192xf32>
    %110 = vector.extract_strided_slice %109 {offsets = [0, 0], sizes = [2, 64], strides = [1, 1]} : vector<2x192xf32> to vector<2x64xf32>
    %111 = vector.extract_strided_slice %109 {offsets = [0, 64], sizes = [2, 64], strides = [1, 1]} : vector<2x192xf32> to vector<2x64xf32>
    %112 = vector.extract_strided_slice %109 {offsets = [0, 128], sizes = [2, 64], strides = [1, 1]} : vector<2x192xf32> to vector<2x64xf32>
    %113 = vector.extract_strided_slice %103 {offsets = [0, 192], sizes = [2, 64], strides = [1, 1]} : vector<2x256xf32> to vector<2x64xf32>
    %114 = math.tanh %113 : vector<2x64xf32>
    %115 = arith.mulf %111, %76 : vector<2x64xf32>
    %116 = arith.mulf %110, %114 : vector<2x64xf32>
    %117 = arith.addf %115, %116 : vector<2x64xf32>
    %118 = math.tanh %117 : vector<2x64xf32>
    %119 = arith.mulf %112, %118 : vector<2x64xf32>
    %120 = vector.extract_strided_slice %72 {offsets = [2, 0], sizes = [2, 256], strides = [1, 1]} : vector<32x256xf32> to vector<2x256xf32>
    %121 = arith.truncf %96 : vector<2x64xf32> to vector<2x64xbf16>
    %cst_50 = arith.constant dense<0.000000e+00> : vector<2x256xf32>
    %122 = tpu.matmul %121, %64, %cst_50 {dimension_numbers = #tpu.dot_dimension_numbers<[1], [0], [0], [1], [0, 0, 1, 1], [], []>} : vector<2x64xbf16>, vector<64x256xbf16>, vector<2x256xf32> -> vector<2x256xf32>
    %123 = arith.addf %120, %122 : vector<2x256xf32>
    %124 = vector.extract_strided_slice %123 {offsets = [0, 0], sizes = [2, 192], strides = [1, 1]} : vector<2x256xf32> to vector<2x192xf32>
    %125 = arith.negf %124 : vector<2x192xf32>
    %126 = math.exp %125 : vector<2x192xf32>
    %cst_51 = arith.constant 1.000000e+00 : f32
    %127 = vector.broadcast %cst_51 : f32 to vector<2x192xf32>
    %128 = arith.addf %127, %126 : vector<2x192xf32>
    %129 = arith.divf %127, %128 : vector<2x192xf32>
    %130 = vector.extract_strided_slice %129 {offsets = [0, 0], sizes = [2, 64], strides = [1, 1]} : vector<2x192xf32> to vector<2x64xf32>
    %131 = vector.extract_strided_slice %129 {offsets = [0, 64], sizes = [2, 64], strides = [1, 1]} : vector<2x192xf32> to vector<2x64xf32>
    %132 = vector.extract_strided_slice %129 {offsets = [0, 128], sizes = [2, 64], strides = [1, 1]} : vector<2x192xf32> to vector<2x64xf32>
    %133 = vector.extract_strided_slice %123 {offsets = [0, 192], sizes = [2, 64], strides = [1, 1]} : vector<2x256xf32> to vector<2x64xf32>
    %134 = math.tanh %133 : vector<2x64xf32>
    %135 = arith.mulf %131, %94 : vector<2x64xf32>
    %136 = arith.mulf %130, %134 : vector<2x64xf32>
    %137 = arith.addf %135, %136 : vector<2x64xf32>
    %138 = math.tanh %137 : vector<2x64xf32>
    %139 = arith.mulf %132, %138 : vector<2x64xf32>
    %140 = arith.truncf %139 : vector<2x64xf32> to vector<2x64xbf16>
    %cst_52 = arith.constant dense<0.000000e+00> : vector<2x256xf32>
    %141 = tpu.matmul %140, %65, %cst_52 {dimension_numbers = #tpu.dot_dimension_numbers<[1], [0], [0], [1], [0, 0, 1, 1], [], []>} : vector<2x64xbf16>, vector<64x256xbf16>, vector<2x256xf32> -> vector<2x256xf32>
    %142 = arith.truncf %119 : vector<2x64xf32> to vector<2x64xbf16>
    %cst_53 = arith.constant dense<0.000000e+00> : vector<2x256xf32>
    %143 = tpu.matmul %142, %66, %cst_53 {dimension_numbers = #tpu.dot_dimension_numbers<[1], [0], [0], [1], [0, 0, 1, 1], [], []>} : vector<2x64xbf16>, vector<64x256xbf16>, vector<2x256xf32> -> vector<2x256xf32>
    %144 = arith.addf %141, %143 : vector<2x256xf32>
    %145 = vector.broadcast %68 : vector<1x256xf32> to vector<2x256xf32>
    %146 = arith.addf %144, %145 : vector<2x256xf32>
    %147 = vector.extract_strided_slice %146 {offsets = [0, 0], sizes = [2, 192], strides = [1, 1]} : vector<2x256xf32> to vector<2x192xf32>
    %148 = arith.negf %147 : vector<2x192xf32>
    %149 = math.exp %148 : vector<2x192xf32>
    %cst_54 = arith.constant 1.000000e+00 : f32
    %150 = vector.broadcast %cst_54 : f32 to vector<2x192xf32>
    %151 = arith.addf %150, %149 : vector<2x192xf32>
    %152 = arith.divf %150, %151 : vector<2x192xf32>
    %153 = vector.extract_strided_slice %152 {offsets = [0, 0], sizes = [2, 64], strides = [1, 1]} : vector<2x192xf32> to vector<2x64xf32>
    %154 = vector.extract_strided_slice %152 {offsets = [0, 64], sizes = [2, 64], strides = [1, 1]} : vector<2x192xf32> to vector<2x64xf32>
    %155 = vector.extract_strided_slice %152 {offsets = [0, 128], sizes = [2, 64], strides = [1, 1]} : vector<2x192xf32> to vector<2x64xf32>
    %156 = vector.extract_strided_slice %146 {offsets = [0, 192], sizes = [2, 64], strides = [1, 1]} : vector<2x256xf32> to vector<2x64xf32>
    %157 = math.tanh %156 : vector<2x64xf32>
    %158 = arith.mulf %154, %117 : vector<2x64xf32>
    %159 = arith.mulf %153, %157 : vector<2x64xf32>
    %160 = arith.addf %158, %159 : vector<2x64xf32>
    %161 = math.tanh %160 : vector<2x64xf32>
    %162 = arith.mulf %155, %161 : vector<2x64xf32>
    %163 = vector.extract_strided_slice %72 {offsets = [4, 0], sizes = [2, 256], strides = [1, 1]} : vector<32x256xf32> to vector<2x256xf32>
    %164 = arith.truncf %139 : vector<2x64xf32> to vector<2x64xbf16>
    %cst_55 = arith.constant dense<0.000000e+00> : vector<2x256xf32>
    %165 = tpu.matmul %164, %64, %cst_55 {dimension_numbers = #tpu.dot_dimension_numbers<[1], [0], [0], [1], [0, 0, 1, 1], [], []>} : vector<2x64xbf16>, vector<64x256xbf16>, vector<2x256xf32> -> vector<2x256xf32>
    %166 = arith.addf %163, %165 : vector<2x256xf32>
    %167 = vector.extract_strided_slice %166 {offsets = [0, 0], sizes = [2, 192], strides = [1, 1]} : vector<2x256xf32> to vector<2x192xf32>
    %168 = arith.negf %167 : vector<2x192xf32>
    %169 = math.exp %168 : vector<2x192xf32>
    %cst_56 = arith.constant 1.000000e+00 : f32
    %170 = vector.broadcast %cst_56 : f32 to vector<2x192xf32>
    %171 = arith.addf %170, %169 : vector<2x192xf32>
    %172 = arith.divf %170, %171 : vector<2x192xf32>
    %173 = vector.extract_strided_slice %172 {offsets = [0, 0], sizes = [2, 64], strides = [1, 1]} : vector<2x192xf32> to vector<2x64xf32>
    %174 = vector.extract_strided_slice %172 {offsets = [0, 64], sizes = [2, 64], strides = [1, 1]} : vector<2x192xf32> to vector<2x64xf32>
    %175 = vector.extract_strided_slice %172 {offsets = [0, 128], sizes = [2, 64], strides = [1, 1]} : vector<2x192xf32> to vector<2x64xf32>
    %176 = vector.extract_strided_slice %166 {offsets = [0, 192], sizes = [2, 64], strides = [1, 1]} : vector<2x256xf32> to vector<2x64xf32>
    %177 = math.tanh %176 : vector<2x64xf32>
    %178 = arith.mulf %174, %137 : vector<2x64xf32>
    %179 = arith.mulf %173, %177 : vector<2x64xf32>
    %180 = arith.addf %178, %179 : vector<2x64xf32>
    %181 = math.tanh %180 : vector<2x64xf32>
    %182 = arith.mulf %175, %181 : vector<2x64xf32>
    %183 = arith.truncf %182 : vector<2x64xf32> to vector<2x64xbf16>
    %cst_57 = arith.constant dense<0.000000e+00> : vector<2x256xf32>
    %184 = tpu.matmul %183, %65, %cst_57 {dimension_numbers = #tpu.dot_dimension_numbers<[1], [0], [0], [1], [0, 0, 1, 1], [], []>} : vector<2x64xbf16>, vector<64x256xbf16>, vector<2x256xf32> -> vector<2x256xf32>
    %185 = arith.truncf %162 : vector<2x64xf32> to vector<2x64xbf16>
    %cst_58 = arith.constant dense<0.000000e+00> : vector<2x256xf32>
    %186 = tpu.matmul %185, %66, %cst_58 {dimension_numbers = #tpu.dot_dimension_numbers<[1], [0], [0], [1], [0, 0, 1, 1], [], []>} : vector<2x64xbf16>, vector<64x256xbf16>, vector<2x256xf32> -> vector<2x256xf32>
    %187 = arith.addf %184, %186 : vector<2x256xf32>
    %188 = vector.broadcast %68 : vector<1x256xf32> to vector<2x256xf32>
    %189 = arith.addf %187, %188 : vector<2x256xf32>
    %190 = vector.extract_strided_slice %189 {offsets = [0, 0], sizes = [2, 192], strides = [1, 1]} : vector<2x256xf32> to vector<2x192xf32>
    %191 = arith.negf %190 : vector<2x192xf32>
    %192 = math.exp %191 : vector<2x192xf32>
    %cst_59 = arith.constant 1.000000e+00 : f32
    %193 = vector.broadcast %cst_59 : f32 to vector<2x192xf32>
    %194 = arith.addf %193, %192 : vector<2x192xf32>
    %195 = arith.divf %193, %194 : vector<2x192xf32>
    %196 = vector.extract_strided_slice %195 {offsets = [0, 0], sizes = [2, 64], strides = [1, 1]} : vector<2x192xf32> to vector<2x64xf32>
    %197 = vector.extract_strided_slice %195 {offsets = [0, 64], sizes = [2, 64], strides = [1, 1]} : vector<2x192xf32> to vector<2x64xf32>
    %198 = vector.extract_strided_slice %195 {offsets = [0, 128], sizes = [2, 64], strides = [1, 1]} : vector<2x192xf32> to vector<2x64xf32>
    %199 = vector.extract_strided_slice %189 {offsets = [0, 192], sizes = [2, 64], strides = [1, 1]} : vector<2x256xf32> to vector<2x64xf32>
    %200 = math.tanh %199 : vector<2x64xf32>
    %201 = arith.mulf %197, %160 : vector<2x64xf32>
    %202 = arith.mulf %196, %200 : vector<2x64xf32>
    %203 = arith.addf %201, %202 : vector<2x64xf32>
    %204 = math.tanh %203 : vector<2x64xf32>
    %205 = arith.mulf %198, %204 : vector<2x64xf32>
    %206 = vector.extract_strided_slice %72 {offsets = [6, 0], sizes = [2, 256], strides = [1, 1]} : vector<32x256xf32> to vector<2x256xf32>
    %207 = arith.truncf %182 : vector<2x64xf32> to vector<2x64xbf16>
    %cst_60 = arith.constant dense<0.000000e+00> : vector<2x256xf32>
    %208 = tpu.matmul %207, %64, %cst_60 {dimension_numbers = #tpu.dot_dimension_numbers<[1], [0], [0], [1], [0, 0, 1, 1], [], []>} : vector<2x64xbf16>, vector<64x256xbf16>, vector<2x256xf32> -> vector<2x256xf32>
    %209 = arith.addf %206, %208 : vector<2x256xf32>
    %210 = vector.extract_strided_slice %209 {offsets = [0, 0], sizes = [2, 192], strides = [1, 1]} : vector<2x256xf32> to vector<2x192xf32>
    %211 = arith.negf %210 : vector<2x192xf32>
    %212 = math.exp %211 : vector<2x192xf32>
    %cst_61 = arith.constant 1.000000e+00 : f32
    %213 = vector.broadcast %cst_61 : f32 to vector<2x192xf32>
    %214 = arith.addf %213, %212 : vector<2x192xf32>
    %215 = arith.divf %213, %214 : vector<2x192xf32>
    %216 = vector.extract_strided_slice %215 {offsets = [0, 0], sizes = [2, 64], strides = [1, 1]} : vector<2x192xf32> to vector<2x64xf32>
    %217 = vector.extract_strided_slice %215 {offsets = [0, 64], sizes = [2, 64], strides = [1, 1]} : vector<2x192xf32> to vector<2x64xf32>
    %218 = vector.extract_strided_slice %215 {offsets = [0, 128], sizes = [2, 64], strides = [1, 1]} : vector<2x192xf32> to vector<2x64xf32>
    %219 = vector.extract_strided_slice %209 {offsets = [0, 192], sizes = [2, 64], strides = [1, 1]} : vector<2x256xf32> to vector<2x64xf32>
    %220 = math.tanh %219 : vector<2x64xf32>
    %221 = arith.mulf %217, %180 : vector<2x64xf32>
    %222 = arith.mulf %216, %220 : vector<2x64xf32>
    %223 = arith.addf %221, %222 : vector<2x64xf32>
    %224 = math.tanh %223 : vector<2x64xf32>
    %225 = arith.mulf %218, %224 : vector<2x64xf32>
    %226 = arith.truncf %225 : vector<2x64xf32> to vector<2x64xbf16>
    %cst_62 = arith.constant dense<0.000000e+00> : vector<2x256xf32>
    %227 = tpu.matmul %226, %65, %cst_62 {dimension_numbers = #tpu.dot_dimension_numbers<[1], [0], [0], [1], [0, 0, 1, 1], [], []>} : vector<2x64xbf16>, vector<64x256xbf16>, vector<2x256xf32> -> vector<2x256xf32>
    %228 = arith.truncf %205 : vector<2x64xf32> to vector<2x64xbf16>
    %cst_63 = arith.constant dense<0.000000e+00> : vector<2x256xf32>
    %229 = tpu.matmul %228, %66, %cst_63 {dimension_numbers = #tpu.dot_dimension_numbers<[1], [0], [0], [1], [0, 0, 1, 1], [], []>} : vector<2x64xbf16>, vector<64x256xbf16>, vector<2x256xf32> -> vector<2x256xf32>
    %230 = arith.addf %227, %229 : vector<2x256xf32>
    %231 = vector.broadcast %68 : vector<1x256xf32> to vector<2x256xf32>
    %232 = arith.addf %230, %231 : vector<2x256xf32>
    %233 = vector.extract_strided_slice %232 {offsets = [0, 0], sizes = [2, 192], strides = [1, 1]} : vector<2x256xf32> to vector<2x192xf32>
    %234 = arith.negf %233 : vector<2x192xf32>
    %235 = math.exp %234 : vector<2x192xf32>
    %cst_64 = arith.constant 1.000000e+00 : f32
    %236 = vector.broadcast %cst_64 : f32 to vector<2x192xf32>
    %237 = arith.addf %236, %235 : vector<2x192xf32>
    %238 = arith.divf %236, %237 : vector<2x192xf32>
    %239 = vector.extract_strided_slice %238 {offsets = [0, 0], sizes = [2, 64], strides = [1, 1]} : vector<2x192xf32> to vector<2x64xf32>
    %240 = vector.extract_strided_slice %238 {offsets = [0, 64], sizes = [2, 64], strides = [1, 1]} : vector<2x192xf32> to vector<2x64xf32>
    %241 = vector.extract_strided_slice %238 {offsets = [0, 128], sizes = [2, 64], strides = [1, 1]} : vector<2x192xf32> to vector<2x64xf32>
    %242 = vector.extract_strided_slice %232 {offsets = [0, 192], sizes = [2, 64], strides = [1, 1]} : vector<2x256xf32> to vector<2x64xf32>
    %243 = math.tanh %242 : vector<2x64xf32>
    %244 = arith.mulf %240, %203 : vector<2x64xf32>
    %245 = arith.mulf %239, %243 : vector<2x64xf32>
    %246 = arith.addf %244, %245 : vector<2x64xf32>
    %247 = math.tanh %246 : vector<2x64xf32>
    %248 = arith.mulf %241, %247 : vector<2x64xf32>
    %249 = vector.extract_strided_slice %72 {offsets = [8, 0], sizes = [2, 256], strides = [1, 1]} : vector<32x256xf32> to vector<2x256xf32>
    %250 = arith.truncf %225 : vector<2x64xf32> to vector<2x64xbf16>
    %cst_65 = arith.constant dense<0.000000e+00> : vector<2x256xf32>
    %251 = tpu.matmul %250, %64, %cst_65 {dimension_numbers = #tpu.dot_dimension_numbers<[1], [0], [0], [1], [0, 0, 1, 1], [], []>} : vector<2x64xbf16>, vector<64x256xbf16>, vector<2x256xf32> -> vector<2x256xf32>
    %252 = arith.addf %249, %251 : vector<2x256xf32>
    %253 = vector.extract_strided_slice %252 {offsets = [0, 0], sizes = [2, 192], strides = [1, 1]} : vector<2x256xf32> to vector<2x192xf32>
    %254 = arith.negf %253 : vector<2x192xf32>
    %255 = math.exp %254 : vector<2x192xf32>
    %cst_66 = arith.constant 1.000000e+00 : f32
    %256 = vector.broadcast %cst_66 : f32 to vector<2x192xf32>
    %257 = arith.addf %256, %255 : vector<2x192xf32>
    %258 = arith.divf %256, %257 : vector<2x192xf32>
    %259 = vector.extract_strided_slice %258 {offsets = [0, 0], sizes = [2, 64], strides = [1, 1]} : vector<2x192xf32> to vector<2x64xf32>
    %260 = vector.extract_strided_slice %258 {offsets = [0, 64], sizes = [2, 64], strides = [1, 1]} : vector<2x192xf32> to vector<2x64xf32>
    %261 = vector.extract_strided_slice %258 {offsets = [0, 128], sizes = [2, 64], strides = [1, 1]} : vector<2x192xf32> to vector<2x64xf32>
    %262 = vector.extract_strided_slice %252 {offsets = [0, 192], sizes = [2, 64], strides = [1, 1]} : vector<2x256xf32> to vector<2x64xf32>
    %263 = math.tanh %262 : vector<2x64xf32>
    %264 = arith.mulf %260, %223 : vector<2x64xf32>
    %265 = arith.mulf %259, %263 : vector<2x64xf32>
    %266 = arith.addf %264, %265 : vector<2x64xf32>
    %267 = math.tanh %266 : vector<2x64xf32>
    %268 = arith.mulf %261, %267 : vector<2x64xf32>
    %269 = arith.truncf %268 : vector<2x64xf32> to vector<2x64xbf16>
    %cst_67 = arith.constant dense<0.000000e+00> : vector<2x256xf32>
    %270 = tpu.matmul %269, %65, %cst_67 {dimension_numbers = #tpu.dot_dimension_numbers<[1], [0], [0], [1], [0, 0, 1, 1], [], []>} : vector<2x64xbf16>, vector<64x256xbf16>, vector<2x256xf32> -> vector<2x256xf32>
    %271 = arith.truncf %248 : vector<2x64xf32> to vector<2x64xbf16>
    %cst_68 = arith.constant dense<0.000000e+00> : vector<2x256xf32>
    %272 = tpu.matmul %271, %66, %cst_68 {dimension_numbers = #tpu.dot_dimension_numbers<[1], [0], [0], [1], [0, 0, 1, 1], [], []>} : vector<2x64xbf16>, vector<64x256xbf16>, vector<2x256xf32> -> vector<2x256xf32>
    %273 = arith.addf %270, %272 : vector<2x256xf32>
    %274 = vector.broadcast %68 : vector<1x256xf32> to vector<2x256xf32>
    %275 = arith.addf %273, %274 : vector<2x256xf32>
    %276 = vector.extract_strided_slice %275 {offsets = [0, 0], sizes = [2, 192], strides = [1, 1]} : vector<2x256xf32> to vector<2x192xf32>
    %277 = arith.negf %276 : vector<2x192xf32>
    %278 = math.exp %277 : vector<2x192xf32>
    %cst_69 = arith.constant 1.000000e+00 : f32
    %279 = vector.broadcast %cst_69 : f32 to vector<2x192xf32>
    %280 = arith.addf %279, %278 : vector<2x192xf32>
    %281 = arith.divf %279, %280 : vector<2x192xf32>
    %282 = vector.extract_strided_slice %281 {offsets = [0, 0], sizes = [2, 64], strides = [1, 1]} : vector<2x192xf32> to vector<2x64xf32>
    %283 = vector.extract_strided_slice %281 {offsets = [0, 64], sizes = [2, 64], strides = [1, 1]} : vector<2x192xf32> to vector<2x64xf32>
    %284 = vector.extract_strided_slice %281 {offsets = [0, 128], sizes = [2, 64], strides = [1, 1]} : vector<2x192xf32> to vector<2x64xf32>
    %285 = vector.extract_strided_slice %275 {offsets = [0, 192], sizes = [2, 64], strides = [1, 1]} : vector<2x256xf32> to vector<2x64xf32>
    %286 = math.tanh %285 : vector<2x64xf32>
    %287 = arith.mulf %283, %246 : vector<2x64xf32>
    %288 = arith.mulf %282, %286 : vector<2x64xf32>
    %289 = arith.addf %287, %288 : vector<2x64xf32>
    %290 = math.tanh %289 : vector<2x64xf32>
    %291 = arith.mulf %284, %290 : vector<2x64xf32>
    %292 = vector.extract_strided_slice %72 {offsets = [10, 0], sizes = [2, 256], strides = [1, 1]} : vector<32x256xf32> to vector<2x256xf32>
    %293 = arith.truncf %268 : vector<2x64xf32> to vector<2x64xbf16>
    %cst_70 = arith.constant dense<0.000000e+00> : vector<2x256xf32>
    %294 = tpu.matmul %293, %64, %cst_70 {dimension_numbers = #tpu.dot_dimension_numbers<[1], [0], [0], [1], [0, 0, 1, 1], [], []>} : vector<2x64xbf16>, vector<64x256xbf16>, vector<2x256xf32> -> vector<2x256xf32>
    %295 = arith.addf %292, %294 : vector<2x256xf32>
    %296 = vector.extract_strided_slice %295 {offsets = [0, 0], sizes = [2, 192], strides = [1, 1]} : vector<2x256xf32> to vector<2x192xf32>
    %297 = arith.negf %296 : vector<2x192xf32>
    %298 = math.exp %297 : vector<2x192xf32>
    %cst_71 = arith.constant 1.000000e+00 : f32
    %299 = vector.broadcast %cst_71 : f32 to vector<2x192xf32>
    %300 = arith.addf %299, %298 : vector<2x192xf32>
    %301 = arith.divf %299, %300 : vector<2x192xf32>
    %302 = vector.extract_strided_slice %301 {offsets = [0, 0], sizes = [2, 64], strides = [1, 1]} : vector<2x192xf32> to vector<2x64xf32>
    %303 = vector.extract_strided_slice %301 {offsets = [0, 64], sizes = [2, 64], strides = [1, 1]} : vector<2x192xf32> to vector<2x64xf32>
    %304 = vector.extract_strided_slice %301 {offsets = [0, 128], sizes = [2, 64], strides = [1, 1]} : vector<2x192xf32> to vector<2x64xf32>
    %305 = vector.extract_strided_slice %295 {offsets = [0, 192], sizes = [2, 64], strides = [1, 1]} : vector<2x256xf32> to vector<2x64xf32>
    %306 = math.tanh %305 : vector<2x64xf32>
    %307 = arith.mulf %303, %266 : vector<2x64xf32>
    %308 = arith.mulf %302, %306 : vector<2x64xf32>
    %309 = arith.addf %307, %308 : vector<2x64xf32>
    %310 = math.tanh %309 : vector<2x64xf32>
    %311 = arith.mulf %304, %310 : vector<2x64xf32>
    %312 = arith.truncf %311 : vector<2x64xf32> to vector<2x64xbf16>
    %cst_72 = arith.constant dense<0.000000e+00> : vector<2x256xf32>
    %313 = tpu.matmul %312, %65, %cst_72 {dimension_numbers = #tpu.dot_dimension_numbers<[1], [0], [0], [1], [0, 0, 1, 1], [], []>} : vector<2x64xbf16>, vector<64x256xbf16>, vector<2x256xf32> -> vector<2x256xf32>
    %314 = arith.truncf %291 : vector<2x64xf32> to vector<2x64xbf16>
    %cst_73 = arith.constant dense<0.000000e+00> : vector<2x256xf32>
    %315 = tpu.matmul %314, %66, %cst_73 {dimension_numbers = #tpu.dot_dimension_numbers<[1], [0], [0], [1], [0, 0, 1, 1], [], []>} : vector<2x64xbf16>, vector<64x256xbf16>, vector<2x256xf32> -> vector<2x256xf32>
    %316 = arith.addf %313, %315 : vector<2x256xf32>
    %317 = vector.broadcast %68 : vector<1x256xf32> to vector<2x256xf32>
    %318 = arith.addf %316, %317 : vector<2x256xf32>
    %319 = vector.extract_strided_slice %318 {offsets = [0, 0], sizes = [2, 192], strides = [1, 1]} : vector<2x256xf32> to vector<2x192xf32>
    %320 = arith.negf %319 : vector<2x192xf32>
    %321 = math.exp %320 : vector<2x192xf32>
    %cst_74 = arith.constant 1.000000e+00 : f32
    %322 = vector.broadcast %cst_74 : f32 to vector<2x192xf32>
    %323 = arith.addf %322, %321 : vector<2x192xf32>
    %324 = arith.divf %322, %323 : vector<2x192xf32>
    %325 = vector.extract_strided_slice %324 {offsets = [0, 0], sizes = [2, 64], strides = [1, 1]} : vector<2x192xf32> to vector<2x64xf32>
    %326 = vector.extract_strided_slice %324 {offsets = [0, 64], sizes = [2, 64], strides = [1, 1]} : vector<2x192xf32> to vector<2x64xf32>
    %327 = vector.extract_strided_slice %324 {offsets = [0, 128], sizes = [2, 64], strides = [1, 1]} : vector<2x192xf32> to vector<2x64xf32>
    %328 = vector.extract_strided_slice %318 {offsets = [0, 192], sizes = [2, 64], strides = [1, 1]} : vector<2x256xf32> to vector<2x64xf32>
    %329 = math.tanh %328 : vector<2x64xf32>
    %330 = arith.mulf %326, %289 : vector<2x64xf32>
    %331 = arith.mulf %325, %329 : vector<2x64xf32>
    %332 = arith.addf %330, %331 : vector<2x64xf32>
    %333 = math.tanh %332 : vector<2x64xf32>
    %334 = arith.mulf %327, %333 : vector<2x64xf32>
    %335 = vector.extract_strided_slice %72 {offsets = [12, 0], sizes = [2, 256], strides = [1, 1]} : vector<32x256xf32> to vector<2x256xf32>
    %336 = arith.truncf %311 : vector<2x64xf32> to vector<2x64xbf16>
    %cst_75 = arith.constant dense<0.000000e+00> : vector<2x256xf32>
    %337 = tpu.matmul %336, %64, %cst_75 {dimension_numbers = #tpu.dot_dimension_numbers<[1], [0], [0], [1], [0, 0, 1, 1], [], []>} : vector<2x64xbf16>, vector<64x256xbf16>, vector<2x256xf32> -> vector<2x256xf32>
    %338 = arith.addf %335, %337 : vector<2x256xf32>
    %339 = vector.extract_strided_slice %338 {offsets = [0, 0], sizes = [2, 192], strides = [1, 1]} : vector<2x256xf32> to vector<2x192xf32>
    %340 = arith.negf %339 : vector<2x192xf32>
    %341 = math.exp %340 : vector<2x192xf32>
    %cst_76 = arith.constant 1.000000e+00 : f32
    %342 = vector.broadcast %cst_76 : f32 to vector<2x192xf32>
    %343 = arith.addf %342, %341 : vector<2x192xf32>
    %344 = arith.divf %342, %343 : vector<2x192xf32>
    %345 = vector.extract_strided_slice %344 {offsets = [0, 0], sizes = [2, 64], strides = [1, 1]} : vector<2x192xf32> to vector<2x64xf32>
    %346 = vector.extract_strided_slice %344 {offsets = [0, 64], sizes = [2, 64], strides = [1, 1]} : vector<2x192xf32> to vector<2x64xf32>
    %347 = vector.extract_strided_slice %344 {offsets = [0, 128], sizes = [2, 64], strides = [1, 1]} : vector<2x192xf32> to vector<2x64xf32>
    %348 = vector.extract_strided_slice %338 {offsets = [0, 192], sizes = [2, 64], strides = [1, 1]} : vector<2x256xf32> to vector<2x64xf32>
    %349 = math.tanh %348 : vector<2x64xf32>
    %350 = arith.mulf %346, %309 : vector<2x64xf32>
    %351 = arith.mulf %345, %349 : vector<2x64xf32>
    %352 = arith.addf %350, %351 : vector<2x64xf32>
    %353 = math.tanh %352 : vector<2x64xf32>
    %354 = arith.mulf %347, %353 : vector<2x64xf32>
    %355 = arith.truncf %354 : vector<2x64xf32> to vector<2x64xbf16>
    %cst_77 = arith.constant dense<0.000000e+00> : vector<2x256xf32>
    %356 = tpu.matmul %355, %65, %cst_77 {dimension_numbers = #tpu.dot_dimension_numbers<[1], [0], [0], [1], [0, 0, 1, 1], [], []>} : vector<2x64xbf16>, vector<64x256xbf16>, vector<2x256xf32> -> vector<2x256xf32>
    %357 = arith.truncf %334 : vector<2x64xf32> to vector<2x64xbf16>
    %cst_78 = arith.constant dense<0.000000e+00> : vector<2x256xf32>
    %358 = tpu.matmul %357, %66, %cst_78 {dimension_numbers = #tpu.dot_dimension_numbers<[1], [0], [0], [1], [0, 0, 1, 1], [], []>} : vector<2x64xbf16>, vector<64x256xbf16>, vector<2x256xf32> -> vector<2x256xf32>
    %359 = arith.addf %356, %358 : vector<2x256xf32>
    %360 = vector.broadcast %68 : vector<1x256xf32> to vector<2x256xf32>
    %361 = arith.addf %359, %360 : vector<2x256xf32>
    %362 = vector.extract_strided_slice %361 {offsets = [0, 0], sizes = [2, 192], strides = [1, 1]} : vector<2x256xf32> to vector<2x192xf32>
    %363 = arith.negf %362 : vector<2x192xf32>
    %364 = math.exp %363 : vector<2x192xf32>
    %cst_79 = arith.constant 1.000000e+00 : f32
    %365 = vector.broadcast %cst_79 : f32 to vector<2x192xf32>
    %366 = arith.addf %365, %364 : vector<2x192xf32>
    %367 = arith.divf %365, %366 : vector<2x192xf32>
    %368 = vector.extract_strided_slice %367 {offsets = [0, 0], sizes = [2, 64], strides = [1, 1]} : vector<2x192xf32> to vector<2x64xf32>
    %369 = vector.extract_strided_slice %367 {offsets = [0, 64], sizes = [2, 64], strides = [1, 1]} : vector<2x192xf32> to vector<2x64xf32>
    %370 = vector.extract_strided_slice %367 {offsets = [0, 128], sizes = [2, 64], strides = [1, 1]} : vector<2x192xf32> to vector<2x64xf32>
    %371 = vector.extract_strided_slice %361 {offsets = [0, 192], sizes = [2, 64], strides = [1, 1]} : vector<2x256xf32> to vector<2x64xf32>
    %372 = math.tanh %371 : vector<2x64xf32>
    %373 = arith.mulf %369, %332 : vector<2x64xf32>
    %374 = arith.mulf %368, %372 : vector<2x64xf32>
    %375 = arith.addf %373, %374 : vector<2x64xf32>
    %376 = math.tanh %375 : vector<2x64xf32>
    %377 = arith.mulf %370, %376 : vector<2x64xf32>
    %378 = vector.extract_strided_slice %72 {offsets = [14, 0], sizes = [2, 256], strides = [1, 1]} : vector<32x256xf32> to vector<2x256xf32>
    %379 = arith.truncf %354 : vector<2x64xf32> to vector<2x64xbf16>
    %cst_80 = arith.constant dense<0.000000e+00> : vector<2x256xf32>
    %380 = tpu.matmul %379, %64, %cst_80 {dimension_numbers = #tpu.dot_dimension_numbers<[1], [0], [0], [1], [0, 0, 1, 1], [], []>} : vector<2x64xbf16>, vector<64x256xbf16>, vector<2x256xf32> -> vector<2x256xf32>
    %381 = arith.addf %378, %380 : vector<2x256xf32>
    %382 = vector.extract_strided_slice %381 {offsets = [0, 0], sizes = [2, 192], strides = [1, 1]} : vector<2x256xf32> to vector<2x192xf32>
    %383 = arith.negf %382 : vector<2x192xf32>
    %384 = math.exp %383 : vector<2x192xf32>
    %cst_81 = arith.constant 1.000000e+00 : f32
    %385 = vector.broadcast %cst_81 : f32 to vector<2x192xf32>
    %386 = arith.addf %385, %384 : vector<2x192xf32>
    %387 = arith.divf %385, %386 : vector<2x192xf32>
    %388 = vector.extract_strided_slice %387 {offsets = [0, 0], sizes = [2, 64], strides = [1, 1]} : vector<2x192xf32> to vector<2x64xf32>
    %389 = vector.extract_strided_slice %387 {offsets = [0, 64], sizes = [2, 64], strides = [1, 1]} : vector<2x192xf32> to vector<2x64xf32>
    %390 = vector.extract_strided_slice %387 {offsets = [0, 128], sizes = [2, 64], strides = [1, 1]} : vector<2x192xf32> to vector<2x64xf32>
    %391 = vector.extract_strided_slice %381 {offsets = [0, 192], sizes = [2, 64], strides = [1, 1]} : vector<2x256xf32> to vector<2x64xf32>
    %392 = math.tanh %391 : vector<2x64xf32>
    %393 = arith.mulf %389, %352 : vector<2x64xf32>
    %394 = arith.mulf %388, %392 : vector<2x64xf32>
    %395 = arith.addf %393, %394 : vector<2x64xf32>
    %396 = math.tanh %395 : vector<2x64xf32>
    %397 = arith.mulf %390, %396 : vector<2x64xf32>
    %398 = arith.truncf %397 : vector<2x64xf32> to vector<2x64xbf16>
    %cst_82 = arith.constant dense<0.000000e+00> : vector<2x256xf32>
    %399 = tpu.matmul %398, %65, %cst_82 {dimension_numbers = #tpu.dot_dimension_numbers<[1], [0], [0], [1], [0, 0, 1, 1], [], []>} : vector<2x64xbf16>, vector<64x256xbf16>, vector<2x256xf32> -> vector<2x256xf32>
    %400 = arith.truncf %377 : vector<2x64xf32> to vector<2x64xbf16>
    %cst_83 = arith.constant dense<0.000000e+00> : vector<2x256xf32>
    %401 = tpu.matmul %400, %66, %cst_83 {dimension_numbers = #tpu.dot_dimension_numbers<[1], [0], [0], [1], [0, 0, 1, 1], [], []>} : vector<2x64xbf16>, vector<64x256xbf16>, vector<2x256xf32> -> vector<2x256xf32>
    %402 = arith.addf %399, %401 : vector<2x256xf32>
    %403 = vector.broadcast %68 : vector<1x256xf32> to vector<2x256xf32>
    %404 = arith.addf %402, %403 : vector<2x256xf32>
    %405 = vector.extract_strided_slice %404 {offsets = [0, 0], sizes = [2, 192], strides = [1, 1]} : vector<2x256xf32> to vector<2x192xf32>
    %406 = arith.negf %405 : vector<2x192xf32>
    %407 = math.exp %406 : vector<2x192xf32>
    %cst_84 = arith.constant 1.000000e+00 : f32
    %408 = vector.broadcast %cst_84 : f32 to vector<2x192xf32>
    %409 = arith.addf %408, %407 : vector<2x192xf32>
    %410 = arith.divf %408, %409 : vector<2x192xf32>
    %411 = vector.extract_strided_slice %410 {offsets = [0, 0], sizes = [2, 64], strides = [1, 1]} : vector<2x192xf32> to vector<2x64xf32>
    %412 = vector.extract_strided_slice %410 {offsets = [0, 64], sizes = [2, 64], strides = [1, 1]} : vector<2x192xf32> to vector<2x64xf32>
    %413 = vector.extract_strided_slice %410 {offsets = [0, 128], sizes = [2, 64], strides = [1, 1]} : vector<2x192xf32> to vector<2x64xf32>
    %414 = vector.extract_strided_slice %404 {offsets = [0, 192], sizes = [2, 64], strides = [1, 1]} : vector<2x256xf32> to vector<2x64xf32>
    %415 = math.tanh %414 : vector<2x64xf32>
    %416 = arith.mulf %412, %375 : vector<2x64xf32>
    %417 = arith.mulf %411, %415 : vector<2x64xf32>
    %418 = arith.addf %416, %417 : vector<2x64xf32>
    %419 = math.tanh %418 : vector<2x64xf32>
    %420 = arith.mulf %413, %419 : vector<2x64xf32>
    %421 = vector.extract_strided_slice %72 {offsets = [16, 0], sizes = [2, 256], strides = [1, 1]} : vector<32x256xf32> to vector<2x256xf32>
    %422 = arith.truncf %397 : vector<2x64xf32> to vector<2x64xbf16>
    %cst_85 = arith.constant dense<0.000000e+00> : vector<2x256xf32>
    %423 = tpu.matmul %422, %64, %cst_85 {dimension_numbers = #tpu.dot_dimension_numbers<[1], [0], [0], [1], [0, 0, 1, 1], [], []>} : vector<2x64xbf16>, vector<64x256xbf16>, vector<2x256xf32> -> vector<2x256xf32>
    %424 = arith.addf %421, %423 : vector<2x256xf32>
    %425 = vector.extract_strided_slice %424 {offsets = [0, 0], sizes = [2, 192], strides = [1, 1]} : vector<2x256xf32> to vector<2x192xf32>
    %426 = arith.negf %425 : vector<2x192xf32>
    %427 = math.exp %426 : vector<2x192xf32>
    %cst_86 = arith.constant 1.000000e+00 : f32
    %428 = vector.broadcast %cst_86 : f32 to vector<2x192xf32>
    %429 = arith.addf %428, %427 : vector<2x192xf32>
    %430 = arith.divf %428, %429 : vector<2x192xf32>
    %431 = vector.extract_strided_slice %430 {offsets = [0, 0], sizes = [2, 64], strides = [1, 1]} : vector<2x192xf32> to vector<2x64xf32>
    %432 = vector.extract_strided_slice %430 {offsets = [0, 64], sizes = [2, 64], strides = [1, 1]} : vector<2x192xf32> to vector<2x64xf32>
    %433 = vector.extract_strided_slice %430 {offsets = [0, 128], sizes = [2, 64], strides = [1, 1]} : vector<2x192xf32> to vector<2x64xf32>
    %434 = vector.extract_strided_slice %424 {offsets = [0, 192], sizes = [2, 64], strides = [1, 1]} : vector<2x256xf32> to vector<2x64xf32>
    %435 = math.tanh %434 : vector<2x64xf32>
    %436 = arith.mulf %432, %395 : vector<2x64xf32>
    %437 = arith.mulf %431, %435 : vector<2x64xf32>
    %438 = arith.addf %436, %437 : vector<2x64xf32>
    %439 = math.tanh %438 : vector<2x64xf32>
    %440 = arith.mulf %433, %439 : vector<2x64xf32>
    %441 = arith.truncf %440 : vector<2x64xf32> to vector<2x64xbf16>
    %cst_87 = arith.constant dense<0.000000e+00> : vector<2x256xf32>
    %442 = tpu.matmul %441, %65, %cst_87 {dimension_numbers = #tpu.dot_dimension_numbers<[1], [0], [0], [1], [0, 0, 1, 1], [], []>} : vector<2x64xbf16>, vector<64x256xbf16>, vector<2x256xf32> -> vector<2x256xf32>
    %443 = arith.truncf %420 : vector<2x64xf32> to vector<2x64xbf16>
    %cst_88 = arith.constant dense<0.000000e+00> : vector<2x256xf32>
    %444 = tpu.matmul %443, %66, %cst_88 {dimension_numbers = #tpu.dot_dimension_numbers<[1], [0], [0], [1], [0, 0, 1, 1], [], []>} : vector<2x64xbf16>, vector<64x256xbf16>, vector<2x256xf32> -> vector<2x256xf32>
    %445 = arith.addf %442, %444 : vector<2x256xf32>
    %446 = vector.broadcast %68 : vector<1x256xf32> to vector<2x256xf32>
    %447 = arith.addf %445, %446 : vector<2x256xf32>
    %448 = vector.extract_strided_slice %447 {offsets = [0, 0], sizes = [2, 192], strides = [1, 1]} : vector<2x256xf32> to vector<2x192xf32>
    %449 = arith.negf %448 : vector<2x192xf32>
    %450 = math.exp %449 : vector<2x192xf32>
    %cst_89 = arith.constant 1.000000e+00 : f32
    %451 = vector.broadcast %cst_89 : f32 to vector<2x192xf32>
    %452 = arith.addf %451, %450 : vector<2x192xf32>
    %453 = arith.divf %451, %452 : vector<2x192xf32>
    %454 = vector.extract_strided_slice %453 {offsets = [0, 0], sizes = [2, 64], strides = [1, 1]} : vector<2x192xf32> to vector<2x64xf32>
    %455 = vector.extract_strided_slice %453 {offsets = [0, 64], sizes = [2, 64], strides = [1, 1]} : vector<2x192xf32> to vector<2x64xf32>
    %456 = vector.extract_strided_slice %453 {offsets = [0, 128], sizes = [2, 64], strides = [1, 1]} : vector<2x192xf32> to vector<2x64xf32>
    %457 = vector.extract_strided_slice %447 {offsets = [0, 192], sizes = [2, 64], strides = [1, 1]} : vector<2x256xf32> to vector<2x64xf32>
    %458 = math.tanh %457 : vector<2x64xf32>
    %459 = arith.mulf %455, %418 : vector<2x64xf32>
    %460 = arith.mulf %454, %458 : vector<2x64xf32>
    %461 = arith.addf %459, %460 : vector<2x64xf32>
    %462 = math.tanh %461 : vector<2x64xf32>
    %463 = arith.mulf %456, %462 : vector<2x64xf32>
    %464 = vector.extract_strided_slice %72 {offsets = [18, 0], sizes = [2, 256], strides = [1, 1]} : vector<32x256xf32> to vector<2x256xf32>
    %465 = arith.truncf %440 : vector<2x64xf32> to vector<2x64xbf16>
    %cst_90 = arith.constant dense<0.000000e+00> : vector<2x256xf32>
    %466 = tpu.matmul %465, %64, %cst_90 {dimension_numbers = #tpu.dot_dimension_numbers<[1], [0], [0], [1], [0, 0, 1, 1], [], []>} : vector<2x64xbf16>, vector<64x256xbf16>, vector<2x256xf32> -> vector<2x256xf32>
    %467 = arith.addf %464, %466 : vector<2x256xf32>
    %468 = vector.extract_strided_slice %467 {offsets = [0, 0], sizes = [2, 192], strides = [1, 1]} : vector<2x256xf32> to vector<2x192xf32>
    %469 = arith.negf %468 : vector<2x192xf32>
    %470 = math.exp %469 : vector<2x192xf32>
    %cst_91 = arith.constant 1.000000e+00 : f32
    %471 = vector.broadcast %cst_91 : f32 to vector<2x192xf32>
    %472 = arith.addf %471, %470 : vector<2x192xf32>
    %473 = arith.divf %471, %472 : vector<2x192xf32>
    %474 = vector.extract_strided_slice %473 {offsets = [0, 0], sizes = [2, 64], strides = [1, 1]} : vector<2x192xf32> to vector<2x64xf32>
    %475 = vector.extract_strided_slice %473 {offsets = [0, 64], sizes = [2, 64], strides = [1, 1]} : vector<2x192xf32> to vector<2x64xf32>
    %476 = vector.extract_strided_slice %473 {offsets = [0, 128], sizes = [2, 64], strides = [1, 1]} : vector<2x192xf32> to vector<2x64xf32>
    %477 = vector.extract_strided_slice %467 {offsets = [0, 192], sizes = [2, 64], strides = [1, 1]} : vector<2x256xf32> to vector<2x64xf32>
    %478 = math.tanh %477 : vector<2x64xf32>
    %479 = arith.mulf %475, %438 : vector<2x64xf32>
    %480 = arith.mulf %474, %478 : vector<2x64xf32>
    %481 = arith.addf %479, %480 : vector<2x64xf32>
    %482 = math.tanh %481 : vector<2x64xf32>
    %483 = arith.mulf %476, %482 : vector<2x64xf32>
    %484 = arith.truncf %483 : vector<2x64xf32> to vector<2x64xbf16>
    %cst_92 = arith.constant dense<0.000000e+00> : vector<2x256xf32>
    %485 = tpu.matmul %484, %65, %cst_92 {dimension_numbers = #tpu.dot_dimension_numbers<[1], [0], [0], [1], [0, 0, 1, 1], [], []>} : vector<2x64xbf16>, vector<64x256xbf16>, vector<2x256xf32> -> vector<2x256xf32>
    %486 = arith.truncf %463 : vector<2x64xf32> to vector<2x64xbf16>
    %cst_93 = arith.constant dense<0.000000e+00> : vector<2x256xf32>
    %487 = tpu.matmul %486, %66, %cst_93 {dimension_numbers = #tpu.dot_dimension_numbers<[1], [0], [0], [1], [0, 0, 1, 1], [], []>} : vector<2x64xbf16>, vector<64x256xbf16>, vector<2x256xf32> -> vector<2x256xf32>
    %488 = arith.addf %485, %487 : vector<2x256xf32>
    %489 = vector.broadcast %68 : vector<1x256xf32> to vector<2x256xf32>
    %490 = arith.addf %488, %489 : vector<2x256xf32>
    %491 = vector.extract_strided_slice %490 {offsets = [0, 0], sizes = [2, 192], strides = [1, 1]} : vector<2x256xf32> to vector<2x192xf32>
    %492 = arith.negf %491 : vector<2x192xf32>
    %493 = math.exp %492 : vector<2x192xf32>
    %cst_94 = arith.constant 1.000000e+00 : f32
    %494 = vector.broadcast %cst_94 : f32 to vector<2x192xf32>
    %495 = arith.addf %494, %493 : vector<2x192xf32>
    %496 = arith.divf %494, %495 : vector<2x192xf32>
    %497 = vector.extract_strided_slice %496 {offsets = [0, 0], sizes = [2, 64], strides = [1, 1]} : vector<2x192xf32> to vector<2x64xf32>
    %498 = vector.extract_strided_slice %496 {offsets = [0, 64], sizes = [2, 64], strides = [1, 1]} : vector<2x192xf32> to vector<2x64xf32>
    %499 = vector.extract_strided_slice %496 {offsets = [0, 128], sizes = [2, 64], strides = [1, 1]} : vector<2x192xf32> to vector<2x64xf32>
    %500 = vector.extract_strided_slice %490 {offsets = [0, 192], sizes = [2, 64], strides = [1, 1]} : vector<2x256xf32> to vector<2x64xf32>
    %501 = math.tanh %500 : vector<2x64xf32>
    %502 = arith.mulf %498, %461 : vector<2x64xf32>
    %503 = arith.mulf %497, %501 : vector<2x64xf32>
    %504 = arith.addf %502, %503 : vector<2x64xf32>
    %505 = math.tanh %504 : vector<2x64xf32>
    %506 = arith.mulf %499, %505 : vector<2x64xf32>
    %507 = vector.extract_strided_slice %72 {offsets = [20, 0], sizes = [2, 256], strides = [1, 1]} : vector<32x256xf32> to vector<2x256xf32>
    %508 = arith.truncf %483 : vector<2x64xf32> to vector<2x64xbf16>
    %cst_95 = arith.constant dense<0.000000e+00> : vector<2x256xf32>
    %509 = tpu.matmul %508, %64, %cst_95 {dimension_numbers = #tpu.dot_dimension_numbers<[1], [0], [0], [1], [0, 0, 1, 1], [], []>} : vector<2x64xbf16>, vector<64x256xbf16>, vector<2x256xf32> -> vector<2x256xf32>
    %510 = arith.addf %507, %509 : vector<2x256xf32>
    %511 = vector.extract_strided_slice %510 {offsets = [0, 0], sizes = [2, 192], strides = [1, 1]} : vector<2x256xf32> to vector<2x192xf32>
    %512 = arith.negf %511 : vector<2x192xf32>
    %513 = math.exp %512 : vector<2x192xf32>
    %cst_96 = arith.constant 1.000000e+00 : f32
    %514 = vector.broadcast %cst_96 : f32 to vector<2x192xf32>
    %515 = arith.addf %514, %513 : vector<2x192xf32>
    %516 = arith.divf %514, %515 : vector<2x192xf32>
    %517 = vector.extract_strided_slice %516 {offsets = [0, 0], sizes = [2, 64], strides = [1, 1]} : vector<2x192xf32> to vector<2x64xf32>
    %518 = vector.extract_strided_slice %516 {offsets = [0, 64], sizes = [2, 64], strides = [1, 1]} : vector<2x192xf32> to vector<2x64xf32>
    %519 = vector.extract_strided_slice %516 {offsets = [0, 128], sizes = [2, 64], strides = [1, 1]} : vector<2x192xf32> to vector<2x64xf32>
    %520 = vector.extract_strided_slice %510 {offsets = [0, 192], sizes = [2, 64], strides = [1, 1]} : vector<2x256xf32> to vector<2x64xf32>
    %521 = math.tanh %520 : vector<2x64xf32>
    %522 = arith.mulf %518, %481 : vector<2x64xf32>
    %523 = arith.mulf %517, %521 : vector<2x64xf32>
    %524 = arith.addf %522, %523 : vector<2x64xf32>
    %525 = math.tanh %524 : vector<2x64xf32>
    %526 = arith.mulf %519, %525 : vector<2x64xf32>
    %527 = arith.truncf %526 : vector<2x64xf32> to vector<2x64xbf16>
    %cst_97 = arith.constant dense<0.000000e+00> : vector<2x256xf32>
    %528 = tpu.matmul %527, %65, %cst_97 {dimension_numbers = #tpu.dot_dimension_numbers<[1], [0], [0], [1], [0, 0, 1, 1], [], []>} : vector<2x64xbf16>, vector<64x256xbf16>, vector<2x256xf32> -> vector<2x256xf32>
    %529 = arith.truncf %506 : vector<2x64xf32> to vector<2x64xbf16>
    %cst_98 = arith.constant dense<0.000000e+00> : vector<2x256xf32>
    %530 = tpu.matmul %529, %66, %cst_98 {dimension_numbers = #tpu.dot_dimension_numbers<[1], [0], [0], [1], [0, 0, 1, 1], [], []>} : vector<2x64xbf16>, vector<64x256xbf16>, vector<2x256xf32> -> vector<2x256xf32>
    %531 = arith.addf %528, %530 : vector<2x256xf32>
    %532 = vector.broadcast %68 : vector<1x256xf32> to vector<2x256xf32>
    %533 = arith.addf %531, %532 : vector<2x256xf32>
    %534 = vector.extract_strided_slice %533 {offsets = [0, 0], sizes = [2, 192], strides = [1, 1]} : vector<2x256xf32> to vector<2x192xf32>
    %535 = arith.negf %534 : vector<2x192xf32>
    %536 = math.exp %535 : vector<2x192xf32>
    %cst_99 = arith.constant 1.000000e+00 : f32
    %537 = vector.broadcast %cst_99 : f32 to vector<2x192xf32>
    %538 = arith.addf %537, %536 : vector<2x192xf32>
    %539 = arith.divf %537, %538 : vector<2x192xf32>
    %540 = vector.extract_strided_slice %539 {offsets = [0, 0], sizes = [2, 64], strides = [1, 1]} : vector<2x192xf32> to vector<2x64xf32>
    %541 = vector.extract_strided_slice %539 {offsets = [0, 64], sizes = [2, 64], strides = [1, 1]} : vector<2x192xf32> to vector<2x64xf32>
    %542 = vector.extract_strided_slice %539 {offsets = [0, 128], sizes = [2, 64], strides = [1, 1]} : vector<2x192xf32> to vector<2x64xf32>
    %543 = vector.extract_strided_slice %533 {offsets = [0, 192], sizes = [2, 64], strides = [1, 1]} : vector<2x256xf32> to vector<2x64xf32>
    %544 = math.tanh %543 : vector<2x64xf32>
    %545 = arith.mulf %541, %504 : vector<2x64xf32>
    %546 = arith.mulf %540, %544 : vector<2x64xf32>
    %547 = arith.addf %545, %546 : vector<2x64xf32>
    %548 = math.tanh %547 : vector<2x64xf32>
    %549 = arith.mulf %542, %548 : vector<2x64xf32>
    %550 = vector.extract_strided_slice %72 {offsets = [22, 0], sizes = [2, 256], strides = [1, 1]} : vector<32x256xf32> to vector<2x256xf32>
    %551 = arith.truncf %526 : vector<2x64xf32> to vector<2x64xbf16>
    %cst_100 = arith.constant dense<0.000000e+00> : vector<2x256xf32>
    %552 = tpu.matmul %551, %64, %cst_100 {dimension_numbers = #tpu.dot_dimension_numbers<[1], [0], [0], [1], [0, 0, 1, 1], [], []>} : vector<2x64xbf16>, vector<64x256xbf16>, vector<2x256xf32> -> vector<2x256xf32>
    %553 = arith.addf %550, %552 : vector<2x256xf32>
    %554 = vector.extract_strided_slice %553 {offsets = [0, 0], sizes = [2, 192], strides = [1, 1]} : vector<2x256xf32> to vector<2x192xf32>
    %555 = arith.negf %554 : vector<2x192xf32>
    %556 = math.exp %555 : vector<2x192xf32>
    %cst_101 = arith.constant 1.000000e+00 : f32
    %557 = vector.broadcast %cst_101 : f32 to vector<2x192xf32>
    %558 = arith.addf %557, %556 : vector<2x192xf32>
    %559 = arith.divf %557, %558 : vector<2x192xf32>
    %560 = vector.extract_strided_slice %559 {offsets = [0, 0], sizes = [2, 64], strides = [1, 1]} : vector<2x192xf32> to vector<2x64xf32>
    %561 = vector.extract_strided_slice %559 {offsets = [0, 64], sizes = [2, 64], strides = [1, 1]} : vector<2x192xf32> to vector<2x64xf32>
    %562 = vector.extract_strided_slice %559 {offsets = [0, 128], sizes = [2, 64], strides = [1, 1]} : vector<2x192xf32> to vector<2x64xf32>
    %563 = vector.extract_strided_slice %553 {offsets = [0, 192], sizes = [2, 64], strides = [1, 1]} : vector<2x256xf32> to vector<2x64xf32>
    %564 = math.tanh %563 : vector<2x64xf32>
    %565 = arith.mulf %561, %524 : vector<2x64xf32>
    %566 = arith.mulf %560, %564 : vector<2x64xf32>
    %567 = arith.addf %565, %566 : vector<2x64xf32>
    %568 = math.tanh %567 : vector<2x64xf32>
    %569 = arith.mulf %562, %568 : vector<2x64xf32>
    %570 = arith.truncf %569 : vector<2x64xf32> to vector<2x64xbf16>
    %cst_102 = arith.constant dense<0.000000e+00> : vector<2x256xf32>
    %571 = tpu.matmul %570, %65, %cst_102 {dimension_numbers = #tpu.dot_dimension_numbers<[1], [0], [0], [1], [0, 0, 1, 1], [], []>} : vector<2x64xbf16>, vector<64x256xbf16>, vector<2x256xf32> -> vector<2x256xf32>
    %572 = arith.truncf %549 : vector<2x64xf32> to vector<2x64xbf16>
    %cst_103 = arith.constant dense<0.000000e+00> : vector<2x256xf32>
    %573 = tpu.matmul %572, %66, %cst_103 {dimension_numbers = #tpu.dot_dimension_numbers<[1], [0], [0], [1], [0, 0, 1, 1], [], []>} : vector<2x64xbf16>, vector<64x256xbf16>, vector<2x256xf32> -> vector<2x256xf32>
    %574 = arith.addf %571, %573 : vector<2x256xf32>
    %575 = vector.broadcast %68 : vector<1x256xf32> to vector<2x256xf32>
    %576 = arith.addf %574, %575 : vector<2x256xf32>
    %577 = vector.extract_strided_slice %576 {offsets = [0, 0], sizes = [2, 192], strides = [1, 1]} : vector<2x256xf32> to vector<2x192xf32>
    %578 = arith.negf %577 : vector<2x192xf32>
    %579 = math.exp %578 : vector<2x192xf32>
    %cst_104 = arith.constant 1.000000e+00 : f32
    %580 = vector.broadcast %cst_104 : f32 to vector<2x192xf32>
    %581 = arith.addf %580, %579 : vector<2x192xf32>
    %582 = arith.divf %580, %581 : vector<2x192xf32>
    %583 = vector.extract_strided_slice %582 {offsets = [0, 0], sizes = [2, 64], strides = [1, 1]} : vector<2x192xf32> to vector<2x64xf32>
    %584 = vector.extract_strided_slice %582 {offsets = [0, 64], sizes = [2, 64], strides = [1, 1]} : vector<2x192xf32> to vector<2x64xf32>
    %585 = vector.extract_strided_slice %582 {offsets = [0, 128], sizes = [2, 64], strides = [1, 1]} : vector<2x192xf32> to vector<2x64xf32>
    %586 = vector.extract_strided_slice %576 {offsets = [0, 192], sizes = [2, 64], strides = [1, 1]} : vector<2x256xf32> to vector<2x64xf32>
    %587 = math.tanh %586 : vector<2x64xf32>
    %588 = arith.mulf %584, %547 : vector<2x64xf32>
    %589 = arith.mulf %583, %587 : vector<2x64xf32>
    %590 = arith.addf %588, %589 : vector<2x64xf32>
    %591 = math.tanh %590 : vector<2x64xf32>
    %592 = arith.mulf %585, %591 : vector<2x64xf32>
    %593 = vector.extract_strided_slice %72 {offsets = [24, 0], sizes = [2, 256], strides = [1, 1]} : vector<32x256xf32> to vector<2x256xf32>
    %594 = arith.truncf %569 : vector<2x64xf32> to vector<2x64xbf16>
    %cst_105 = arith.constant dense<0.000000e+00> : vector<2x256xf32>
    %595 = tpu.matmul %594, %64, %cst_105 {dimension_numbers = #tpu.dot_dimension_numbers<[1], [0], [0], [1], [0, 0, 1, 1], [], []>} : vector<2x64xbf16>, vector<64x256xbf16>, vector<2x256xf32> -> vector<2x256xf32>
    %596 = arith.addf %593, %595 : vector<2x256xf32>
    %597 = vector.extract_strided_slice %596 {offsets = [0, 0], sizes = [2, 192], strides = [1, 1]} : vector<2x256xf32> to vector<2x192xf32>
    %598 = arith.negf %597 : vector<2x192xf32>
    %599 = math.exp %598 : vector<2x192xf32>
    %cst_106 = arith.constant 1.000000e+00 : f32
    %600 = vector.broadcast %cst_106 : f32 to vector<2x192xf32>
    %601 = arith.addf %600, %599 : vector<2x192xf32>
    %602 = arith.divf %600, %601 : vector<2x192xf32>
    %603 = vector.extract_strided_slice %602 {offsets = [0, 0], sizes = [2, 64], strides = [1, 1]} : vector<2x192xf32> to vector<2x64xf32>
    %604 = vector.extract_strided_slice %602 {offsets = [0, 64], sizes = [2, 64], strides = [1, 1]} : vector<2x192xf32> to vector<2x64xf32>
    %605 = vector.extract_strided_slice %602 {offsets = [0, 128], sizes = [2, 64], strides = [1, 1]} : vector<2x192xf32> to vector<2x64xf32>
    %606 = vector.extract_strided_slice %596 {offsets = [0, 192], sizes = [2, 64], strides = [1, 1]} : vector<2x256xf32> to vector<2x64xf32>
    %607 = math.tanh %606 : vector<2x64xf32>
    %608 = arith.mulf %604, %567 : vector<2x64xf32>
    %609 = arith.mulf %603, %607 : vector<2x64xf32>
    %610 = arith.addf %608, %609 : vector<2x64xf32>
    %611 = math.tanh %610 : vector<2x64xf32>
    %612 = arith.mulf %605, %611 : vector<2x64xf32>
    %613 = arith.truncf %612 : vector<2x64xf32> to vector<2x64xbf16>
    %cst_107 = arith.constant dense<0.000000e+00> : vector<2x256xf32>
    %614 = tpu.matmul %613, %65, %cst_107 {dimension_numbers = #tpu.dot_dimension_numbers<[1], [0], [0], [1], [0, 0, 1, 1], [], []>} : vector<2x64xbf16>, vector<64x256xbf16>, vector<2x256xf32> -> vector<2x256xf32>
    %615 = arith.truncf %592 : vector<2x64xf32> to vector<2x64xbf16>
    %cst_108 = arith.constant dense<0.000000e+00> : vector<2x256xf32>
    %616 = tpu.matmul %615, %66, %cst_108 {dimension_numbers = #tpu.dot_dimension_numbers<[1], [0], [0], [1], [0, 0, 1, 1], [], []>} : vector<2x64xbf16>, vector<64x256xbf16>, vector<2x256xf32> -> vector<2x256xf32>
    %617 = arith.addf %614, %616 : vector<2x256xf32>
    %618 = vector.broadcast %68 : vector<1x256xf32> to vector<2x256xf32>
    %619 = arith.addf %617, %618 : vector<2x256xf32>
    %620 = vector.extract_strided_slice %619 {offsets = [0, 0], sizes = [2, 192], strides = [1, 1]} : vector<2x256xf32> to vector<2x192xf32>
    %621 = arith.negf %620 : vector<2x192xf32>
    %622 = math.exp %621 : vector<2x192xf32>
    %cst_109 = arith.constant 1.000000e+00 : f32
    %623 = vector.broadcast %cst_109 : f32 to vector<2x192xf32>
    %624 = arith.addf %623, %622 : vector<2x192xf32>
    %625 = arith.divf %623, %624 : vector<2x192xf32>
    %626 = vector.extract_strided_slice %625 {offsets = [0, 0], sizes = [2, 64], strides = [1, 1]} : vector<2x192xf32> to vector<2x64xf32>
    %627 = vector.extract_strided_slice %625 {offsets = [0, 64], sizes = [2, 64], strides = [1, 1]} : vector<2x192xf32> to vector<2x64xf32>
    %628 = vector.extract_strided_slice %625 {offsets = [0, 128], sizes = [2, 64], strides = [1, 1]} : vector<2x192xf32> to vector<2x64xf32>
    %629 = vector.extract_strided_slice %619 {offsets = [0, 192], sizes = [2, 64], strides = [1, 1]} : vector<2x256xf32> to vector<2x64xf32>
    %630 = math.tanh %629 : vector<2x64xf32>
    %631 = arith.mulf %627, %590 : vector<2x64xf32>
    %632 = arith.mulf %626, %630 : vector<2x64xf32>
    %633 = arith.addf %631, %632 : vector<2x64xf32>
    %634 = math.tanh %633 : vector<2x64xf32>
    %635 = arith.mulf %628, %634 : vector<2x64xf32>
    %636 = vector.extract_strided_slice %72 {offsets = [26, 0], sizes = [2, 256], strides = [1, 1]} : vector<32x256xf32> to vector<2x256xf32>
    %637 = arith.truncf %612 : vector<2x64xf32> to vector<2x64xbf16>
    %cst_110 = arith.constant dense<0.000000e+00> : vector<2x256xf32>
    %638 = tpu.matmul %637, %64, %cst_110 {dimension_numbers = #tpu.dot_dimension_numbers<[1], [0], [0], [1], [0, 0, 1, 1], [], []>} : vector<2x64xbf16>, vector<64x256xbf16>, vector<2x256xf32> -> vector<2x256xf32>
    %639 = arith.addf %636, %638 : vector<2x256xf32>
    %640 = vector.extract_strided_slice %639 {offsets = [0, 0], sizes = [2, 192], strides = [1, 1]} : vector<2x256xf32> to vector<2x192xf32>
    %641 = arith.negf %640 : vector<2x192xf32>
    %642 = math.exp %641 : vector<2x192xf32>
    %cst_111 = arith.constant 1.000000e+00 : f32
    %643 = vector.broadcast %cst_111 : f32 to vector<2x192xf32>
    %644 = arith.addf %643, %642 : vector<2x192xf32>
    %645 = arith.divf %643, %644 : vector<2x192xf32>
    %646 = vector.extract_strided_slice %645 {offsets = [0, 0], sizes = [2, 64], strides = [1, 1]} : vector<2x192xf32> to vector<2x64xf32>
    %647 = vector.extract_strided_slice %645 {offsets = [0, 64], sizes = [2, 64], strides = [1, 1]} : vector<2x192xf32> to vector<2x64xf32>
    %648 = vector.extract_strided_slice %645 {offsets = [0, 128], sizes = [2, 64], strides = [1, 1]} : vector<2x192xf32> to vector<2x64xf32>
    %649 = vector.extract_strided_slice %639 {offsets = [0, 192], sizes = [2, 64], strides = [1, 1]} : vector<2x256xf32> to vector<2x64xf32>
    %650 = math.tanh %649 : vector<2x64xf32>
    %651 = arith.mulf %647, %610 : vector<2x64xf32>
    %652 = arith.mulf %646, %650 : vector<2x64xf32>
    %653 = arith.addf %651, %652 : vector<2x64xf32>
    %654 = math.tanh %653 : vector<2x64xf32>
    %655 = arith.mulf %648, %654 : vector<2x64xf32>
    %656 = arith.truncf %655 : vector<2x64xf32> to vector<2x64xbf16>
    %cst_112 = arith.constant dense<0.000000e+00> : vector<2x256xf32>
    %657 = tpu.matmul %656, %65, %cst_112 {dimension_numbers = #tpu.dot_dimension_numbers<[1], [0], [0], [1], [0, 0, 1, 1], [], []>} : vector<2x64xbf16>, vector<64x256xbf16>, vector<2x256xf32> -> vector<2x256xf32>
    %658 = arith.truncf %635 : vector<2x64xf32> to vector<2x64xbf16>
    %cst_113 = arith.constant dense<0.000000e+00> : vector<2x256xf32>
    %659 = tpu.matmul %658, %66, %cst_113 {dimension_numbers = #tpu.dot_dimension_numbers<[1], [0], [0], [1], [0, 0, 1, 1], [], []>} : vector<2x64xbf16>, vector<64x256xbf16>, vector<2x256xf32> -> vector<2x256xf32>
    %660 = arith.addf %657, %659 : vector<2x256xf32>
    %661 = vector.broadcast %68 : vector<1x256xf32> to vector<2x256xf32>
    %662 = arith.addf %660, %661 : vector<2x256xf32>
    %663 = vector.extract_strided_slice %662 {offsets = [0, 0], sizes = [2, 192], strides = [1, 1]} : vector<2x256xf32> to vector<2x192xf32>
    %664 = arith.negf %663 : vector<2x192xf32>
    %665 = math.exp %664 : vector<2x192xf32>
    %cst_114 = arith.constant 1.000000e+00 : f32
    %666 = vector.broadcast %cst_114 : f32 to vector<2x192xf32>
    %667 = arith.addf %666, %665 : vector<2x192xf32>
    %668 = arith.divf %666, %667 : vector<2x192xf32>
    %669 = vector.extract_strided_slice %668 {offsets = [0, 0], sizes = [2, 64], strides = [1, 1]} : vector<2x192xf32> to vector<2x64xf32>
    %670 = vector.extract_strided_slice %668 {offsets = [0, 64], sizes = [2, 64], strides = [1, 1]} : vector<2x192xf32> to vector<2x64xf32>
    %671 = vector.extract_strided_slice %668 {offsets = [0, 128], sizes = [2, 64], strides = [1, 1]} : vector<2x192xf32> to vector<2x64xf32>
    %672 = vector.extract_strided_slice %662 {offsets = [0, 192], sizes = [2, 64], strides = [1, 1]} : vector<2x256xf32> to vector<2x64xf32>
    %673 = math.tanh %672 : vector<2x64xf32>
    %674 = arith.mulf %670, %633 : vector<2x64xf32>
    %675 = arith.mulf %669, %673 : vector<2x64xf32>
    %676 = arith.addf %674, %675 : vector<2x64xf32>
    %677 = math.tanh %676 : vector<2x64xf32>
    %678 = arith.mulf %671, %677 : vector<2x64xf32>
    %679 = vector.extract_strided_slice %72 {offsets = [28, 0], sizes = [2, 256], strides = [1, 1]} : vector<32x256xf32> to vector<2x256xf32>
    %680 = arith.truncf %655 : vector<2x64xf32> to vector<2x64xbf16>
    %cst_115 = arith.constant dense<0.000000e+00> : vector<2x256xf32>
    %681 = tpu.matmul %680, %64, %cst_115 {dimension_numbers = #tpu.dot_dimension_numbers<[1], [0], [0], [1], [0, 0, 1, 1], [], []>} : vector<2x64xbf16>, vector<64x256xbf16>, vector<2x256xf32> -> vector<2x256xf32>
    %682 = arith.addf %679, %681 : vector<2x256xf32>
    %683 = vector.extract_strided_slice %682 {offsets = [0, 0], sizes = [2, 192], strides = [1, 1]} : vector<2x256xf32> to vector<2x192xf32>
    %684 = arith.negf %683 : vector<2x192xf32>
    %685 = math.exp %684 : vector<2x192xf32>
    %cst_116 = arith.constant 1.000000e+00 : f32
    %686 = vector.broadcast %cst_116 : f32 to vector<2x192xf32>
    %687 = arith.addf %686, %685 : vector<2x192xf32>
    %688 = arith.divf %686, %687 : vector<2x192xf32>
    %689 = vector.extract_strided_slice %688 {offsets = [0, 0], sizes = [2, 64], strides = [1, 1]} : vector<2x192xf32> to vector<2x64xf32>
    %690 = vector.extract_strided_slice %688 {offsets = [0, 64], sizes = [2, 64], strides = [1, 1]} : vector<2x192xf32> to vector<2x64xf32>
    %691 = vector.extract_strided_slice %688 {offsets = [0, 128], sizes = [2, 64], strides = [1, 1]} : vector<2x192xf32> to vector<2x64xf32>
    %692 = vector.extract_strided_slice %682 {offsets = [0, 192], sizes = [2, 64], strides = [1, 1]} : vector<2x256xf32> to vector<2x64xf32>
    %693 = math.tanh %692 : vector<2x64xf32>
    %694 = arith.mulf %690, %653 : vector<2x64xf32>
    %695 = arith.mulf %689, %693 : vector<2x64xf32>
    %696 = arith.addf %694, %695 : vector<2x64xf32>
    %697 = math.tanh %696 : vector<2x64xf32>
    %698 = arith.mulf %691, %697 : vector<2x64xf32>
    %699 = arith.truncf %698 : vector<2x64xf32> to vector<2x64xbf16>
    %cst_117 = arith.constant dense<0.000000e+00> : vector<2x256xf32>
    %700 = tpu.matmul %699, %65, %cst_117 {dimension_numbers = #tpu.dot_dimension_numbers<[1], [0], [0], [1], [0, 0, 1, 1], [], []>} : vector<2x64xbf16>, vector<64x256xbf16>, vector<2x256xf32> -> vector<2x256xf32>
    %701 = arith.truncf %678 : vector<2x64xf32> to vector<2x64xbf16>
    %cst_118 = arith.constant dense<0.000000e+00> : vector<2x256xf32>
    %702 = tpu.matmul %701, %66, %cst_118 {dimension_numbers = #tpu.dot_dimension_numbers<[1], [0], [0], [1], [0, 0, 1, 1], [], []>} : vector<2x64xbf16>, vector<64x256xbf16>, vector<2x256xf32> -> vector<2x256xf32>
    %703 = arith.addf %700, %702 : vector<2x256xf32>
    %704 = vector.broadcast %68 : vector<1x256xf32> to vector<2x256xf32>
    %705 = arith.addf %703, %704 : vector<2x256xf32>
    %706 = vector.extract_strided_slice %705 {offsets = [0, 0], sizes = [2, 192], strides = [1, 1]} : vector<2x256xf32> to vector<2x192xf32>
    %707 = arith.negf %706 : vector<2x192xf32>
    %708 = math.exp %707 : vector<2x192xf32>
    %cst_119 = arith.constant 1.000000e+00 : f32
    %709 = vector.broadcast %cst_119 : f32 to vector<2x192xf32>
    %710 = arith.addf %709, %708 : vector<2x192xf32>
    %711 = arith.divf %709, %710 : vector<2x192xf32>
    %712 = vector.extract_strided_slice %711 {offsets = [0, 0], sizes = [2, 64], strides = [1, 1]} : vector<2x192xf32> to vector<2x64xf32>
    %713 = vector.extract_strided_slice %711 {offsets = [0, 64], sizes = [2, 64], strides = [1, 1]} : vector<2x192xf32> to vector<2x64xf32>
    %714 = vector.extract_strided_slice %711 {offsets = [0, 128], sizes = [2, 64], strides = [1, 1]} : vector<2x192xf32> to vector<2x64xf32>
    %715 = vector.extract_strided_slice %705 {offsets = [0, 192], sizes = [2, 64], strides = [1, 1]} : vector<2x256xf32> to vector<2x64xf32>
    %716 = math.tanh %715 : vector<2x64xf32>
    %717 = arith.mulf %713, %676 : vector<2x64xf32>
    %718 = arith.mulf %712, %716 : vector<2x64xf32>
    %719 = arith.addf %717, %718 : vector<2x64xf32>
    %720 = math.tanh %719 : vector<2x64xf32>
    %721 = arith.mulf %714, %720 : vector<2x64xf32>
    %722 = vector.extract_strided_slice %72 {offsets = [30, 0], sizes = [2, 256], strides = [1, 1]} : vector<32x256xf32> to vector<2x256xf32>
    %723 = arith.truncf %698 : vector<2x64xf32> to vector<2x64xbf16>
    %cst_120 = arith.constant dense<0.000000e+00> : vector<2x256xf32>
    %724 = tpu.matmul %723, %64, %cst_120 {dimension_numbers = #tpu.dot_dimension_numbers<[1], [0], [0], [1], [0, 0, 1, 1], [], []>} : vector<2x64xbf16>, vector<64x256xbf16>, vector<2x256xf32> -> vector<2x256xf32>
    %725 = arith.addf %722, %724 : vector<2x256xf32>
    %726 = vector.extract_strided_slice %725 {offsets = [0, 0], sizes = [2, 192], strides = [1, 1]} : vector<2x256xf32> to vector<2x192xf32>
    %727 = arith.negf %726 : vector<2x192xf32>
    %728 = math.exp %727 : vector<2x192xf32>
    %cst_121 = arith.constant 1.000000e+00 : f32
    %729 = vector.broadcast %cst_121 : f32 to vector<2x192xf32>
    %730 = arith.addf %729, %728 : vector<2x192xf32>
    %731 = arith.divf %729, %730 : vector<2x192xf32>
    %732 = vector.extract_strided_slice %731 {offsets = [0, 0], sizes = [2, 64], strides = [1, 1]} : vector<2x192xf32> to vector<2x64xf32>
    %733 = vector.extract_strided_slice %731 {offsets = [0, 64], sizes = [2, 64], strides = [1, 1]} : vector<2x192xf32> to vector<2x64xf32>
    %734 = vector.extract_strided_slice %731 {offsets = [0, 128], sizes = [2, 64], strides = [1, 1]} : vector<2x192xf32> to vector<2x64xf32>
    %735 = vector.extract_strided_slice %725 {offsets = [0, 192], sizes = [2, 64], strides = [1, 1]} : vector<2x256xf32> to vector<2x64xf32>
    %736 = math.tanh %735 : vector<2x64xf32>
    %737 = arith.mulf %733, %696 : vector<2x64xf32>
    %738 = arith.mulf %732, %736 : vector<2x64xf32>
    %739 = arith.addf %737, %738 : vector<2x64xf32>
    %740 = math.tanh %739 : vector<2x64xf32>
    %741 = arith.mulf %734, %740 : vector<2x64xf32>
    %742 = arith.truncf %741 : vector<2x64xf32> to vector<2x64xbf16>
    %cst_122 = arith.constant dense<0.000000e+00> : vector<2x256xf32>
    %743 = tpu.matmul %742, %65, %cst_122 {dimension_numbers = #tpu.dot_dimension_numbers<[1], [0], [0], [1], [0, 0, 1, 1], [], []>} : vector<2x64xbf16>, vector<64x256xbf16>, vector<2x256xf32> -> vector<2x256xf32>
    %744 = arith.truncf %721 : vector<2x64xf32> to vector<2x64xbf16>
    %cst_123 = arith.constant dense<0.000000e+00> : vector<2x256xf32>
    %745 = tpu.matmul %744, %66, %cst_123 {dimension_numbers = #tpu.dot_dimension_numbers<[1], [0], [0], [1], [0, 0, 1, 1], [], []>} : vector<2x64xbf16>, vector<64x256xbf16>, vector<2x256xf32> -> vector<2x256xf32>
    %746 = arith.addf %743, %745 : vector<2x256xf32>
    %747 = vector.broadcast %68 : vector<1x256xf32> to vector<2x256xf32>
    %748 = arith.addf %746, %747 : vector<2x256xf32>
    %749 = vector.extract_strided_slice %748 {offsets = [0, 0], sizes = [2, 192], strides = [1, 1]} : vector<2x256xf32> to vector<2x192xf32>
    %750 = arith.negf %749 : vector<2x192xf32>
    %751 = math.exp %750 : vector<2x192xf32>
    %cst_124 = arith.constant 1.000000e+00 : f32
    %752 = vector.broadcast %cst_124 : f32 to vector<2x192xf32>
    %753 = arith.addf %752, %751 : vector<2x192xf32>
    %754 = arith.divf %752, %753 : vector<2x192xf32>
    %755 = vector.extract_strided_slice %754 {offsets = [0, 0], sizes = [2, 64], strides = [1, 1]} : vector<2x192xf32> to vector<2x64xf32>
    %756 = vector.extract_strided_slice %754 {offsets = [0, 64], sizes = [2, 64], strides = [1, 1]} : vector<2x192xf32> to vector<2x64xf32>
    %757 = vector.extract_strided_slice %754 {offsets = [0, 128], sizes = [2, 64], strides = [1, 1]} : vector<2x192xf32> to vector<2x64xf32>
    %758 = vector.extract_strided_slice %748 {offsets = [0, 192], sizes = [2, 64], strides = [1, 1]} : vector<2x256xf32> to vector<2x64xf32>
    %759 = math.tanh %758 : vector<2x64xf32>
    %760 = arith.mulf %756, %719 : vector<2x64xf32>
    %761 = arith.mulf %755, %759 : vector<2x64xf32>
    %762 = arith.addf %760, %761 : vector<2x64xf32>
    %763 = math.tanh %762 : vector<2x64xf32>
    %764 = arith.mulf %757, %763 : vector<2x64xf32>
    %c88 = arith.constant 88 : index
    %c0_125 = arith.constant 0 : index
    %765 = vector.load %arg2[%c88, %c0_125] : memref<104x256xf32, #tpu.memory_space<vmem>>, vector<1x64xf32>
    %c96 = arith.constant 96 : index
    %c0_126 = arith.constant 0 : index
    %766 = vector.load %arg2[%c96, %c0_126] : memref<104x256xf32, #tpu.memory_space<vmem>>, vector<1x1xf32>
    %767 = vector.broadcast %765 : vector<1x64xf32> to vector<2x64xf32>
    %768 = arith.mulf %764, %767 : vector<2x64xf32>
    %cst_127 = arith.constant dense<0.000000e+00> : vector<2xf32>
    %769 = vector.multi_reduction <add>, %768, %cst_127 [1] : vector<2x64xf32> to vector<2xf32>
    %770 = vector.shape_cast %769 : vector<2xf32> to vector<2x1xf32>
    %771 = vector.broadcast %766 : vector<1x1xf32> to vector<2x1xf32>
    %772 = arith.addf %770, %771 : vector<2x1xf32>
    %773 = math.tanh %772 : vector<2x1xf32>
    %c0_128 = arith.constant 0 : index
    %c0_129 = arith.constant 0 : index
    %774 = vector.load %arg3[%c0_128, %c0_129] : memref<2x1xf32, #tpu.memory_space<vmem>>, vector<2x1xf32>
    tpu.vector_store %arg3[%c0_128, %c0_129], %773 {strides = array<i32>} : memref<2x1xf32, #tpu.memory_space<vmem>>, vector<2x1xf32>,
    return
  }
}

</mosaic_0001>

<bundles_post_ra>
// kernel: tpu_custom_call.1
= control target key start
LH: loop header
LB: loop body
LE: loop exit
PB: predicated region body
PF: predicated region fallthrough
CT: control target
= control target key end

     0   :  { %8 = vsyncpa [#allocation3], 0  ;;  %s6094_s0 = inlined_call_operand.hbm [shape: f32[4,128], index: 0, kind: input, shape index: {}]   ;;  %s6095_s1 = inlined_call_operand.hbm [shape: bf16[368,256], index: 1, kind: input, shape index: {}]   ;;  %s6096_s2 = inlined_call_operand.hbm [shape: f32[104,256], index: 2, kind: input, shape index: {}]   ;;  %s6097_s3 = inlined_call_operand.vmem [shape: f32[2,1], index: 3, kind: output, shape index: {}]  }
   0x1   :  { %9 = vsyncpa [#allocation5], 0  ;;  %s5058_s12 = smov [#allocation4]   ;;  %s4988_s16 = scalar_lea.hbm %s6095_s1, 5888 }
   0x2   :  { %s25_s13 = sshll.u32 %s5058_s12, 4  ;;  %p4989_p0 = scmp.ne.s32.totalorder %s6095_s1, %s4988_s16  ;;  %s26_s13 = int_to_ptr.vmem [resolvable:$true] %s25_s13 }
   0x3   :  { %p4992_p1 = scmp.lt.u32.totalorder %s4988_s16, %s6095_s1 }
   0x5   :  { %p4994_p2 = pnand %p4992_p1, %p4989_p0 }
   0x7   :  { %4997 = shalt.err (!%p4994_p2)
}
   0x8   :  { %s4998_s21 = scalar_lea.vmem %s26_s13, 5888  ;;  %p5003_p4 = scmp.lt.s32.totalorder %s26_s13, %s26_s13 }
   0x9   :  { %p4999_p3 = scmp.ne.s32.totalorder %s26_s13, %s4998_s21  ;;  %p5004_p5 = scmp.lt.s32.totalorder %s4998_s21, %s4998_s21 }
   0xb   :  { %p5005_p6 = por %p5004_p5, %p5003_p4 }
   0xd   :  { %p5006_p7 = pnand %p5005_p6, %p4999_p3 }
   0xf   :  { %5009 = shalt.err (!%p5006_p7)
}
  0x10   :  { %s5059_s22 = smov 128   ;;  %s5060_s23 = smov 8  }
  0x11   :  { %31 = dma.hbm_to_vmem [thread:$0]  %s6095_s1, 5888, %s26_s13, [#allocation5], %s5059_s22, %s5059_s22, %s5060_s23  }
  0x12   :  { %s5061_s26 = smov [#allocation2]   ;;  %s5062_s28 = smov [#allocation6]  }
  0x13   :  { %s16_s27 = sshll.u32 %s5061_s26, 4  ;;  %s37_s29 = sshll.u32 %s5062_s28, 4  ;;  %s17_s27 = int_to_ptr.vmem [resolvable:$true] %s16_s27  ;;  %s38_s29 = int_to_ptr.vmem [resolvable:$true] %s37_s29 }
  0x14   :  { %s5010_s5 = scalar_lea.hbm %s6094_s0, 64 }
  0x15   :  { %p5011_p8 = scmp.ne.s32.totalorder %s6094_s0, %s5010_s5  ;;  %p5014_p9 = scmp.lt.u32.totalorder %s5010_s5, %s6094_s0 }
  0x17   :  { %p5016_p10 = pnand %p5014_p9, %p5011_p8 }
  0x19   :  { %5019 = shalt.err (!%p5016_p10)
}
  0x1a   :  { %s5020_s1 = scalar_lea.vmem %s17_s27, 64  ;;  %p5025_p12 = scmp.lt.s32.totalorder %s17_s27, %s17_s27 }
  0x1b   :  { %p5021_p11 = scmp.ne.s32.totalorder %s17_s27, %s5020_s1  ;;  %p5026_p13 = scmp.lt.s32.totalorder %s5020_s1, %s5020_s1 }
  0x1d   :  { %p5027_p0 = por %p5026_p13, %p5025_p12 }
  0x1f   :  { %p5028_p1 = pnand %p5027_p0, %p5021_p11 }
  0x21   :  { %5031 = shalt.err (!%p5028_p1)
}
  0x22   :  { %19 = dma.hbm_to_vmem [thread:$0]  %s6094_s0, 64, %s17_s27, [#allocation3]  }
  0x23   :  { %s5032_s14 = scalar_lea.hbm %s6096_s2, 3328 }
  0x24   :  { %p5033_p2 = scmp.ne.s32.totalorder %s6096_s2, %s5032_s14  ;;  %p5036_p3 = scmp.lt.u32.totalorder %s5032_s14, %s6096_s2 }
  0x26   :  { %p5038_p4 = pnand %p5036_p3, %p5033_p2 }
  0x28   :  { %5041 = shalt.err (!%p5038_p4)
}
  0x29   :  { %s5042_s19 = scalar_lea.vmem %s38_s29, 3328  ;;  %p5047_p6 = scmp.lt.s32.totalorder %s38_s29, %s38_s29 }
  0x2a   :  { %p5043_p5 = scmp.ne.s32.totalorder %s38_s29, %s5042_s19  ;;  %p5048_p7 = scmp.lt.s32.totalorder %s5042_s19, %s5042_s19 }
  0x2c   :  { %p5049_p8 = por %p5048_p7, %p5047_p6 }
  0x2e   :  { %p5050_p9 = pnand %p5049_p8, %p5043_p5 }
  0x30   :  { %5053 = shalt.err (!%p5050_p9)
}
  0x31   :  { %s5063_s0 = smov 256   ;;  %s5064_s20 = smov 16  }
  0x32   :  { %43 = dma.hbm_to_vmem [thread:$0]  %s6096_s2, 3328, %s38_s29, [#allocation5], %s5063_s0, %s5063_s0, %s5064_s20  }
  0x33   :  { %5054 = dma.done.wait [#allocation3], 64  }
  0x34   :  { %5055 = vsyncadd [#allocation3], 4294967232 }
  0x35   :  { %5056 = dma.done.wait [#allocation5], 9216  }
  0x36   :  { %5057 = vsyncadd [#allocation5], 4294958080  ;;  %vm83_vm0 = vcmask 31744   ;;  %v54_v0 = vld [vmem:[#allocation2] sm:$0xf]  ;;  %s5065_s23 = smov 126  }
  0x37   :  { %69 = vrot.lane.b32.xlu0 %v54_v0, %s5065_s23  ;;  %v4489_v1 = vld [vmem:[#allocation4 + $0x4] ss:$8 sps:$4 sm:$0xff]   ;;  %vm90_vm1 = vcmask 1041408   ;;  %v67_v3 = vpack.c.bf16 %v54_v0, %v54_v0  ;;  %v4490_v6 = vld [vmem:[#allocation4 + $0x14] ss:$8 sps:$4 sm:$0xff]   ;;  %v5066_v10 = vmov 0.0  }
  0x38   :  { %4395 = vmatprep.mubr.msk.bf16.mxu0 %vm83_vm0, %v4489_v1  ;;  %v4491_v7 = vld [vmem:[#allocation4] ss:$8 sps:$4 sm:$0xff]   ;;  %v4492_v9 = vld [vmem:[#allocation4 + $0x10] ss:$8 sps:$4 sm:$0xff]   ;;  %4413 = vmatprep.subr.bf16.mxu1 %v5066_v10  ;;  %vm5067_vm2 = vmmov 0   ;;  %s5068_s2 = smov 124  }
  0x39   :  { %v160_v8 = vsel %vm90_vm1, %v67_v3, 0  ;;  %v65_v11 = vld [vmem:[#allocation6 + $0x20] sm:$0xff]  ;;  %v66_v14 = vld [vmem:[#allocation6 + $0x30] sm:$0xff]  ;;  %4417 = vmatprep.mubr.msk.bf16.mxu1 %vm5067_vm2, %v5066_v10  ;;  %vm250_vm3 = vcmask 261120   ;;  %s5069_s24 = smov 120   ;;  %vm361_vm4 = vcmask 130048  }
  0x3a   :  { %v63_v12 = vld [vmem:[#allocation6] sm:$0xff]  ;;  %v64_v17 = vld [vmem:[#allocation6 + $0x10] sm:$0xff]  ;;  %vm471_vm5 = vcmask 1043456   ;;  %s5070_s25 = smov 116   ;;  %vm467_vm6 = vcmask 64512   ;;  %s5071_s26 = smov 64  }
  0x3b   :  { %v4493_v31 = vld [vmem:[#allocation4 + $0x20] ss:$8 sps:$4 sm:$0xff]   ;;  %v4494_v40 = vld [vmem:[#allocation4 + $0x24] ss:$8 sps:$4 sm:$0xff]   ;;  %v223_v45 = vld [vmem:[#allocation6 + $0x40] sm:$0xff]  ;;  %vm735_vm7 = vcmask 523264  }
  0x3c   :  { %v224_v49 = vld [vmem:[#allocation6 + $0x50] sm:$0xff]  ;;  %v348_v59 = vld [vmem:[#allocation4 + $0x30] sm:$0xf]  ;;  %v349_v0 = vld [vmem:[#allocation4 + $0x34] sm:$0xf]  ;;  %vm4189_vm8 = vcmask 517120  }
  0x3d   :  { %vm4195_vm9 = vcmask 1024  }
  0xa9   :  { %v70_v2 = vpop.permute.xlu0 %69 }
  0xaa   :  { %v72_v4 = vpack.c.bf16 %v70_v2, %v70_v2 }
  0xac   :  { %4457 = vmatprep.subr.msk.bf16.mxu0 %vm90_vm1, %v72_v4  ;;  %v92_v5 = vsel %vm90_vm1, %v72_v4, 0 }
  0xad   :  { %4394 = vmatpush3.bf16.msra.mxu0 %v92_v5  ;;  %v350_v5 = vld [vmem:[#allocation6 + $0x60] sm:$0xff] }
  0xae   :  { %4458 = vmatprep.subr.msk.bf16.mxu0 %vm90_vm1, %v67_v3 }
  0xb0   :  { %4396 = vmatmul.mubr.msk.bf16.vlgmr.msra.gmra.mrb[0].mxu0 %vm83_vm0, %v4490_v6 }
  0xb1   :  { %4400 = vmatpush3.bf16.msra.mxu0 %v160_v8  ;;  %4401 = vmatprep.mubr.msk.bf16.mxu0 %vm83_vm0, %v4491_v7 }
  0xb2   :  { %4405 = vmatprep.subr.bf16.mxu0 %v5066_v10 }
  0xbc   :  { %4402 = vmatmul.mubr.msk.bf16.vlgmr.msra.gmra.mrb[0].mxu0 %vm83_vm0, %v4492_v9 }
  0xbd   :  { %4409 = vmatprep.mubr.msk.bf16.mxu0 %vm5067_vm2, %v5066_v10 }
 0x18f   :  { %v4403_v13 = vpop.f32.mrb[0].mxu0 }
 0x190   :  { %v213_v15 = vadd.f32 %v4403_v13, %v65_v11  ;;  %v196_v16 = vpop.f32.mrb[1].mxu0 }
 0x191   :  { %v211_v18 = vadd.f32 %v196_v16, %v63_v12  ;;  %v4404_v19 = vpop.f32.mrb[2].mxu0  ;;  %v4496_v16 = vld [vmem:[#allocation4 + $0x40] ss:$8 sps:$4 sm:$0xff]  }
 0x192   :  { %v214_v20 = vadd.f32 %v4404_v19, %v66_v14  ;;  %v199_v21 = vpop.f32.mrb[3].mxu0  ;;  %v217_v23 = vmax.f32 %v213_v15, 0.0  ;;  %v4495_v19 = vld [vmem:[#allocation4 + $0x44] ss:$8 sps:$4 sm:$0xff]  }
 0x193   :  { %v212_v22 = vadd.f32 %v199_v21, %v64_v17  ;;  %v215_v25 = vmax.f32 %v211_v18, 0.0 }
 0x194   :  { %v218_v24 = vmax.f32 %v214_v20, 0.0 }
 0x195   :  { %v216_v26 = vmax.f32 %v212_v22, 0.0 }
 0x196   :  { %v226_v27 = vpack.c.bf16 %v218_v24, %v217_v23  ;;  %v4479_v28 = vpack.i.bf16 %v218_v24, %v217_v23  ;;  %v4497_v24 = vld [vmem:[#allocation4 + $0x50] ss:$8 sps:$4 sm:$0xff]  }
 0x197   :  { %v4474_v29 = vpack.i.bf16 %v216_v26, %v215_v25  ;;  %v225_v30 = vpack.c.bf16 %v216_v26, %v215_v25  ;;  %v454_v26 = vld [vmem:[#allocation6 + $0x70] sm:$0xff] }
 0x198   :  { %4480 = vrot.lane.b32.xlu1 %v4479_v28, %s5068_s2 }
 0x199   :  { %4475 = vrot.lane.b32.xlu0 %v4474_v29, %s5068_s2  ;;  %4414 = vmatpush3.bf16.msra.mxu1 %v225_v30  ;;  %v455_v30 = vld [vmem:[#allocation6 + $0x80] sm:$0xff] }
 0x19a   :  { %4415 = vmatprep.subr.bf16.mxu1 %v5066_v10 }
 0x19d   :  { %4416 = vmatpush3.bf16.msra.mxu1 %v226_v27 }
 0x19e   :  { %4427 = vmatprep.subr.bf16.mxu1 %v5066_v10 }
 0x1a0   :  { %4418 = vmatmul.mubr.msk.bf16.vlgmr.msra.gmra.mrb[0].mxu1 %vm250_vm3, %v4493_v31  ;;  %v4499_v31 = vld [vmem:[#allocation4 + $0x70] ss:$8 sps:$4 sm:$0xff]  }
 0x1a1   :  { %4429 = vmatprep.mubr.msk.bf16.mxu1 %vm5067_vm2, %v5066_v10 }
 0x20a   :  { %v4481_v32 = vpop.permute.xlu1 %4480 }
 0x20b   :  { %v4476_v33 = vpop.permute.xlu0 %4475  ;;  %v4483_v36 = vunpack.i.h.bf16 %v4481_v32  ;;  %v4482_v37 = vunpack.i.l.bf16 %v4481_v32  ;;  %v4501_v32 = vld [vmem:[#allocation4 + $0x74] ss:$8 sps:$4 sm:$0xff]  }
 0x20c   :  { %v4478_v34 = vunpack.i.h.bf16 %v4476_v33  ;;  %v4477_v35 = vunpack.i.l.bf16 %v4476_v33 }
 0x20d   :  { %v244_v39 = vpack.c.bf16 %v4483_v36, %v4482_v37  ;;  %v4507_v36 = vld [vmem:[#allocation4 + $0x84] ss:$8 sps:$4 sm:$0xff]  }
 0x20e   :  { %v243_v38 = vpack.c.bf16 %v4478_v34, %v4477_v35 }
 0x210   :  { %4406 = vmatpush3.bf16.msra.mxu0 %v243_v38  ;;  %v4505_v38 = vld [vmem:[#allocation4 + $0x80] ss:$8 sps:$4 sm:$0xff]  }
 0x211   :  { %4407 = vmatprep.subr.bf16.mxu0 %v5066_v10 }
 0x214   :  { %4408 = vmatpush3.bf16.msra.mxu0 %v244_v39 }
 0x215   :  { %4421 = vmatprep.subr.bf16.mxu0 %v5066_v10 }
 0x217   :  { %4410 = vmatmul.mubr.msk.bf16.vlgmr.msra.gmra.mrb[4].mxu0 %vm250_vm3, %v4494_v40 }
 0x218   :  { %4423 = vmatprep.mubr.msk.bf16.mxu0 %vm5067_vm2, %v5066_v10 }
 0x273   :  { %v337_v41 = vpop.f32.mrb[0].mxu1 }
 0x274   :  { %v4419_v42 = vpop.f32.mrb[1].mxu1 }
 0x275   :  { %v340_v43 = vpop.f32.mrb[2].mxu1 }
 0x276   :  { %v4420_v44 = vpop.f32.mrb[3].mxu1 }
 0x277   :  { %v5157_v44 = vld [vmem:[#allocation4 + $0xb4] ss:$8 sps:$4 sm:$0xff]  }
 0x2ea   :  { %v288_v46 = vpop.f32.mrb[4].mxu0 }
 0x2eb   :  { %v338_v47 = vadd.f32 %v337_v41, %v288_v46  ;;  %v4411_v48 = vpop.f32.mrb[5].mxu0  ;;  %v4513_v41 = vld [vmem:[#allocation4 + $0x94] ss:$8 sps:$4 sm:$0xff]   ;;  %v4498_v46 = vld [vmem:[#allocation4 + $0x60] ss:$8 sps:$4 sm:$0xff]  }
 0x2ec   :  { %v291_v50 = vpop.f32.mrb[6].mxu0  ;;  %v5162_v48 = vld [vmem:[#allocation4 + $0xc4] ss:$8 sps:$4 sm:$0xff]  }
 0x2ed   :  { %v344_v51 = vadd.f32 %v338_v47, %v223_v45  ;;  %v341_v52 = vadd.f32 %v340_v43, %v291_v50  ;;  %v4412_v53 = vpop.f32.mrb[7].mxu0  ;;  %v4511_v43 = vld [vmem:[#allocation4 + $0x90] ss:$8 sps:$4 sm:$0xff]   ;;  %v5170_v50 = vld [vmem:[#allocation4 + $0xd4] ss:$8 sps:$4 sm:$0xff]  }
 0x2ee   :  { %v5159_v47 = vld [vmem:[#allocation4 + $0xb0] ss:$8 sps:$4 sm:$0xff]   ;;  %v4519_v53 = vld [vmem:[#allocation4 + $0xa4] ss:$8 sps:$4 sm:$0xff]  }
 0x2ef   :  { %v345_v54 = vadd.f32 %v341_v52, %v224_v49  ;;  %v346_v55 = vmax.f32 %v344_v51, 0.0  ;;  %v5166_v49 = vld [vmem:[#allocation4 + $0xc0] ss:$8 sps:$4 sm:$0xff]   ;;  %v5172_v51 = vld [vmem:[#allocation4 + $0xd0] ss:$8 sps:$4 sm:$0xff]  }
 0x2f0   :  { %v5176_v52 = vld [vmem:[#allocation4 + $0xe4] ss:$8 sps:$4 sm:$0xff]  }
 0x2f1   :  { %v347_v56 = vmax.f32 %v345_v54, 0.0  ;;  %v5178_v54 = vld [vmem:[#allocation4 + $0xe0] ss:$8 sps:$4 sm:$0xff]  }
 0x2f3   :  { %v351_v57 = vpack.c.bf16 %v347_v56, %v346_v55  ;;  %v4484_v58 = vpack.i.bf16 %v347_v56, %v346_v55  ;;  %v4517_v55 = vld [vmem:[#allocation4 + $0xa0] ss:$8 sps:$4 sm:$0xff]   ;;  %v5072_v56 = vmov 0  }
 0x2f5   :  { %4485 = vrot.lane.b32.xlu1 %v4484_v58, %s5069_s24  ;;  %4428 = vmatpush3.bf16.msra.mxu1 %v351_v57 }
 0x2f6   :  { %4439 = vmatprep.subr.bf16.mxu1 %v5066_v10 }
 0x2f8   :  { %4430 = vmatmul.mubr.msk.bf16.vlgmr.msra.gmra.mrb[4].mxu1 %vm361_vm4, %v348_v59 }
 0x2f9   :  { %4441 = vmatprep.mubr.msk.bf16.mxu1 %vm5067_vm2, %v5066_v10 }
 0x367   :  { %v4486_v60 = vpop.permute.xlu1 %4485 }
 0x368   :  { %v4488_v61 = vunpack.i.h.bf16 %v4486_v60  ;;  %v4487_v62 = vunpack.i.l.bf16 %v4486_v60 }
 0x36a   :  { %v360_v63 = vpack.c.bf16 %v4488_v61, %v4487_v62 }
 0x36c   :  { %4422 = vmatpush3.bf16.msra.mxu0 %v360_v63 }
 0x36d   :  { %4433 = vmatprep.subr.bf16.mxu0 %v5066_v10 }
 0x36f   :  { %4424 = vmatmul.mubr.msk.bf16.vlgmr.msra.gmra.mrb[8].mxu0 %vm361_vm4, %v349_v0 }
 0x370   :  { %4435 = vmatprep.mubr.msk.bf16.mxu0 %vm5067_vm2, %v5066_v10 }
 0x3cb   :  { %v442_v1 = vpop.f32.mrb[4].mxu1 }
 0x3cc   :  { %v4431_v2 = vpop.f32.mrb[5].mxu1 }
 0x3cd   :  { %v445_v3 = vpop.f32.mrb[6].mxu1 }
 0x3ce   :  { %v4432_v4 = vpop.f32.mrb[7].mxu1  ;;  %v685_v3 = vlaneseq }
 0x3d0   :  { %v5190_v4 = vshrl.u32 %v685_v3, 7 }
 0x442   :  { %v399_v6 = vpop.f32.mrb[8].mxu0 }
 0x443   :  { %v443_v7 = vadd.f32 %v442_v1, %v399_v6  ;;  %v4425_v8 = vpop.f32.mrb[9].mxu0  ;;  %v679_v6 = vld [vmem:[#allocation6 + $0x90] ss:$8 sm:$0x3] }
 0x444   :  { %v402_v9 = vpop.f32.mrb[10].mxu0 }
 0x445   :  { %v448_v11 = vadd.f32 %v443_v7, %v350_v5  ;;  %v4426_v12 = vpop.f32.mrb[11].mxu0  ;;  %v691_v5 = vsub.s32 1, %v5190_v4  ;;  %v687_v7 = vsub.s32 0, %v5190_v4 }
 0x447   :  { %v449_v13 = vmax.f32 %v448_v11, 0.0  ;;  %v692_v8 = vrot.slane %v679_v6, %v691_v5  ;;  %v688_v11 = vrot.slane %v679_v6, %v687_v7 }
 0x449   :  { %v456_v14 = vpack.c.bf16 %v449_v13, %v449_v13  ;;  %458 = vrot.lane.b32.xlu0 %v449_v13, %s5070_s25 }
 0x44b   :  { %v525_v15 = vsel %vm471_vm5, %v456_v14, 0 }
 0x44c   :  { %4440 = vmatpush3.bf16.msra.mxu1 %v525_v15 }
 0x44d   :  { %742 = vmatprep.subr.bf16.mxu1 %v4501_v32 }
 0x44f   :  { %4442 = vmatmul.mubr.msk.bf16.vlgmr.msra.gmra.mrb[8].mxu1 %vm467_vm6, %v4496_v16 }
 0x450   :  { %743 = vmatpush1.bf16.msra.mxu1 %v4499_v31  ;;  %774 = vmatprep.mubr.bf16.mxu1 %v5072_v56 }
 0x451   :  { %744 = vmatprep.subr.bf16.mxu1 %v4507_v36  ;;  %v5223_v36 = vld [vmem:[#allocation4 + $0x130] ss:$8 sps:$4 sm:$0xff]  }
 0x454   :  { %745 = vmatpush1.bf16.msra.mxu1 %v4505_v38  ;;  %v5228_v38 = vld [vmem:[#allocation4 + $0xf4] ss:$8 sps:$4 sm:$0xff]  }
 0x455   :  { %746 = vmatprep.subr.bf16.mxu1 %v4513_v41  ;;  %v5235_v41 = vld [vmem:[#allocation4 + $0x104] ss:$8 sps:$4 sm:$0xff]  }
 0x458   :  { %747 = vmatpush1.bf16.msra.mxu1 %v4511_v43  ;;  %v5242_v43 = vld [vmem:[#allocation4 + $0x100] ss:$8 sps:$4 sm:$0xff]  }
 0x459   :  { %748 = vmatprep.subr.bf16.mxu1 %v4519_v53  ;;  %v5251_v53 = vld [vmem:[#allocation4 + $0x164] ss:$8 sps:$4 sm:$0xff]  }
 0x45c   :  { %749 = vmatpush1.bf16.msra.mxu1 %v4517_v55  ;;  %v5254_v55 = vld [vmem:[#allocation4 + $0x110] ss:$8 sps:$4 sm:$0xff]  }
 0x4bb   :  { %v459_v10 = vpop.permute.xlu0 %458 }
 0x4bc   :  { %v461_v17 = vpack.c.bf16 %v459_v10, %v459_v10 }
 0x4be   :  { %v473_v18 = vsel %vm471_vm5, %v461_v17, 0 }
 0x4bf   :  { %4434 = vmatpush3.bf16.msra.mxu0 %v473_v18 }
 0x4c2   :  { %4436 = vmatmul.mubr.msk.bf16.vlgmr.msra.gmra.mrb[12].mxu0 %vm467_vm6, %v4495_v19 }
 0x4c3   :  { %4449 = vmatprep.mubr.msk.bf16.mxu0 %vm250_vm3, %v4497_v24 }
 0x522   :  { %v561_v20 = vpop.f32.mrb[8].mxu1 }
 0x523   :  { %v4443_v21 = vpop.f32.mrb[9].mxu1 }
 0x524   :  { %v564_v22 = vpop.f32.mrb[10].mxu1 }
 0x525   :  { %v4444_v23 = vpop.f32.mrb[11].mxu1 }
 0x595   :  { %v509_v25 = vpop.f32.mrb[12].mxu0 }
 0x596   :  { %v562_v27 = vadd.f32 %v561_v20, %v509_v25  ;;  %v4437_v28 = vpop.f32.mrb[13].mxu0 }
 0x597   :  { %v512_v29 = vpop.f32.mrb[14].mxu0 }
 0x598   :  { %v568_v33 = vadd.f32 %v562_v27, %v454_v26  ;;  %v565_v34 = vadd.f32 %v564_v22, %v512_v29  ;;  %v4438_v35 = vpop.f32.mrb[15].mxu0 }
 0x599   :  { %v5221_v35 = vld [vmem:[#allocation4 + $0x134] ss:$8 sps:$4 sm:$0xff]  }
 0x59a   :  { %v569_v37 = vadd.f32 %v565_v34, %v455_v30  ;;  %v570_v39 = vmax.f32 %v568_v33, 0.0  ;;  %952 = vmatprep.subr.bf16.mxu1 %v5221_v35 }
 0x59c   :  { %v571_v40 = vmax.f32 %v569_v37, 0.0  ;;  %v5225_v37 = vld [vmem:[#allocation4 + $0x144] ss:$8 sps:$4 sm:$0xff]  }
 0x59e   :  { %v572_v42 = vpack.c.bf16 %v571_v40, %v570_v39  ;;  %v5231_v39 = vld [vmem:[#allocation4 + $0x140] ss:$8 sps:$4 sm:$0xff]   ;;  %v5233_v40 = vld [vmem:[#allocation4 + $0xf0] ss:$8 sps:$4 sm:$0xff]  }
 0x5a0   :  { %574 = vrot.lane.b32.xlu1 %v572_v42, %s5071_s26  ;;  %4445 = vmatprep.subr.bf16.mxu0 %v572_v42 }
 0x5a1   :  { %4446 = vmatpush3.bf16.msra.mxu0 %v572_v42  ;;  %v5238_v42 = vld [vmem:[#allocation4 + $0x154] ss:$8 sps:$4 sm:$0xff]  }
 0x612   :  { %v575_v45 = vpop.permute.xlu1 %574 }
 0x613   :  { %4447 = vmatprep.subr.bf16.mxu0 %v575_v45 }
 0x614   :  { %4448 = vmatpush3.bf16.msra.mxu0 %v575_v45  ;;  %v5245_v45 = vld [vmem:[#allocation4 + $0x114] ss:$8 sps:$4 sm:$0xff]  }
 0x615   :  { %838 = vmatprep.subr.bf16.mxu0 %v5157_v44 }
 0x617   :  { %4450 = vmatmul.mubr.msk.bf16.vlgmr.msra.gmra.mrb[16].mxu0 %vm250_vm3, %v4498_v46  ;;  %v5248_v46 = vld [vmem:[#allocation4 + $0x150] ss:$8 sps:$4 sm:$0xff]  }
 0x618   :  { %839 = vmatpush1.bf16.msra.mxu0 %v5159_v47  ;;  %870 = vmatprep.mubr.bf16.mxu0 %v5072_v56 }
 0x619   :  { %840 = vmatprep.subr.bf16.mxu0 %v5162_v48 }
 0x61c   :  { %841 = vmatpush1.bf16.msra.mxu0 %v5166_v49 }
 0x61d   :  { %842 = vmatprep.subr.bf16.mxu0 %v5170_v50 }
 0x620   :  { %843 = vmatpush1.bf16.msra.mxu0 %v5172_v51 }
 0x621   :  { %844 = vmatprep.subr.bf16.mxu0 %v5176_v52 }
 0x624   :  { %845 = vmatpush1.bf16.msra.mxu0 %v5178_v54 }
 0x625   :  { %1036 = vmatprep.subr.bf16.mxu0 %v5228_v38 }
 0x627   :  { %871 = vmatmul.mubr.bf16.vlgmr.msra.gmra.mrb[20].mxu0 %v5072_v56 }
 0x628   :  { %1068 = vmatprep.mubr.bf16.mxu0 %v5072_v56  ;;  %1037 = vmatpush1.bf16.msra.mxu0 %v5233_v40 }
 0x629   :  { %1038 = vmatprep.subr.bf16.mxu0 %v5235_v41 }
 0x62c   :  { %1039 = vmatpush1.bf16.msra.mxu0 %v5242_v43 }
 0x62d   :  { %1040 = vmatprep.subr.bf16.mxu0 %v5245_v45 }
 0x630   :  { %1041 = vmatpush1.bf16.msra.mxu0 %v5254_v55 }
 0x6ea   :  { %v4451_v57 = vpop.f32.mrb[16].mxu0 }
 0x6eb   :  { %v631_v58 = vpop.f32.mrb[17].mxu0 }
 0x6ec   :  { %v4452_v59 = vpop.f32.mrb[18].mxu0 }
 0x6ed   :  { %v683_v60 = vpack.c.bf16 %v4452_v59, %v4451_v57  ;;  %v634_v61 = vpop.f32.mrb[19].mxu0  ;;  %v5258_v57 = vld [vmem:[#allocation4 + $0x160] ss:$8 sps:$4 sm:$0xff]   ;;  %v5274_v59 = vld [vmem:[#allocation4 + $0x124] ss:$8 sps:$4 sm:$0xff]  }
 0x6ee   :  { %v682_v62 = vpack.c.bf16 %v634_v61, %v631_v58  ;;  %v5276_v61 = vld [vmem:[#allocation4 + $0x120] ss:$8 sps:$4 sm:$0xff]   ;;  %1042 = vmatprep.subr.bf16.mxu0 %v5274_v59 }
 0x6ef   :  { %1043 = vmatpush1.bf16.msra.mxu0 %v5276_v61 }
 0x6f0   :  { %4233 = vmatmul.mubr.msk.bf16.vlgmr.msra.gmra.mrb[12].mxu1 %vm735_vm7, %v682_v62  ;;  %1207 = vmatprep.subr.bf16.mxu0 %v5221_v35 }
 0x6f1   :  { %784 = vmatprep.mubr.bf16.mxu1 %v5072_v56  ;;  %953 = vmatpush1.bf16.msra.mxu1 %v5223_v36 }
 0x6f2   :  { %954 = vmatprep.subr.bf16.mxu1 %v5225_v37 }
 0x6f5   :  { %955 = vmatpush1.bf16.msra.mxu1 %v5231_v39 }
 0x6f6   :  { %956 = vmatprep.subr.bf16.mxu1 %v5238_v42 }
 0x6f8   :  { %4234 = vmatmul.mubr.msk.bf16.gmra.mrb[16].mxu1 %vm735_vm7, %v683_v60 }
 0x6f9   :  { %984 = vmatprep.mubr.bf16.mxu1 %v5072_v56  ;;  %957 = vmatpush1.bf16.msra.mxu1 %v5248_v46 }
 0x6fa   :  { %v872_v63 = vpop.f32.mrb[20].mxu0  ;;  %958 = vmatprep.subr.bf16.mxu1 %v5251_v53 }
 0x6fb   :  { %v874_v0 = vpop.f32.mrb[21].mxu0 }
 0x6fc   :  { %v876_v1 = vpop.f32.mrb[22].mxu0 }
 0x6fd   :  { %v877_v2 = vpop.f32.mrb[23].mxu0  ;;  %959 = vmatpush1.bf16.msra.mxu1 %v5258_v57 }
 0x6fe   :  { %1120 = vmatprep.subr.bf16.mxu1 %v5157_v44 }
 0x700   :  { %985 = vmatmul.mubr.bf16.vlgmr.msra.gmra.mrb[20].mxu1 %v5072_v56 }
 0x701   :  { %1121 = vmatpush1.bf16.msra.mxu1 %v5159_v47  ;;  %1152 = vmatprep.mubr.bf16.mxu1 %v5072_v56 }
 0x702   :  { %1122 = vmatprep.subr.bf16.mxu1 %v5162_v48 }
 0x705   :  { %1123 = vmatpush1.bf16.msra.mxu1 %v5166_v49 }
 0x706   :  { %1124 = vmatprep.subr.bf16.mxu1 %v5170_v50 }
 0x709   :  { %1125 = vmatpush1.bf16.msra.mxu1 %v5172_v51 }
 0x70a   :  { %1126 = vmatprep.subr.bf16.mxu1 %v5176_v52 }
 0x70d   :  { %1127 = vmatpush1.bf16.msra.mxu1 %v5178_v54 }
 0x70e   :  { %1253 = vmatprep.subr.bf16.mxu1 %v5228_v38 }
 0x7c3   :  { %v776_v9 = vpop.f32.mrb[12].mxu1 }
 0x7c4   :  { %v778_v12 = vpop.f32.mrb[13].mxu1  ;;  %v5217_v27 = vadd.f32 %v776_v9, %v688_v11 }
 0x7c5   :  { %v5198_v13 = vadd.f32 %v778_v12, %v692_v8  ;;  %v780_v14 = vpop.f32.mrb[14].mxu1 }
 0x7c6   :  { %v5200_v15 = vadd.f32 %v780_v14, %v688_v11  ;;  %v782_v16 = vpop.f32.mrb[15].mxu1  ;;  %v879_v28 = vadd.f32 %v872_v63, %v5217_v27 }
 0x7c7   :  { %v5202_v10 = vadd.f32 %v782_v16, %v692_v8  ;;  %v5205_v17 = vadd.f32 %v874_v0, %v5198_v13 }
 0x7c8   :  { %v4243_v29 = vmul.f32 -1.442695, %v879_v28 }
 0x7c9   :  { %4547 = vtanh.f32 %v5205_v17  ;;  %v4244_v0 = vmul.f32 -1.442695, %v5205_v17  ;;  %v681_v17 = vld [vmem:[#allocation6 + $0xa0] ss:$8 sm:$0x3] }
 0x7ca   :  { %4549 = vpow2.f32 %v4243_v29 }
 0x7cb   :  { %v786_v18 = vpop.f32.mrb[16].mxu1 }
 0x7cc   :  { %v5208_v19 = vadd.f32 %v786_v18, %v688_v11  ;;  %v788_v20 = vpop.f32.mrb[17].mxu1  ;;  %v5308_v18 = vrot.slane %v681_v17, %v691_v5 }
 0x7cd   :  { %v5210_v21 = vadd.f32 %v788_v20, %v692_v8  ;;  %v790_v22 = vpop.f32.mrb[18].mxu1 }
 0x7ce   :  { %v5212_v23 = vadd.f32 %v790_v22, %v688_v11  ;;  %v792_v24 = vpop.f32.mrb[19].mxu1 }
 0x7cf   :  { %v5214_v25 = vadd.f32 %v792_v24, %v692_v8 }
 0x7d3   :  { %v4548_v26 = vpop.eup %4547  ;;  %v986_v3 = vpop.f32.mrb[20].mxu1 }
 0x7d4   :  { %896 = vrot.lane.b32.xlu0 %v4548_v26, %s5071_s26  ;;  %v4550_v30 = vpop.eup %4549  ;;  %v988_v6 = vpop.f32.mrb[21].mxu1 }
 0x7d5   :  { %v887_v31 = vadd.f32 1.0, %v4550_v30  ;;  %v990_v8 = vpop.f32.mrb[22].mxu1 }
 0x7d6   :  { %v991_v9 = vpop.f32.mrb[23].mxu1 }
 0x7d7   :  { %4551 = vrcp.f32 %v887_v31 }
 0x7e1   :  { %v4552_v32 = vpop.eup %4551 }
 0x7e2   :  { %v894_v58 = vmul.f32 0.0, %v4552_v32 }
 0x846   :  { %v897_v33 = vpop.permute.xlu0 %896 }
 0x847   :  { %v899_v34 = vmul.f32 %v4552_v32, %v897_v33 }
 0x849   :  { %901 = vrot.lane.b32.xlu1 %v899_v34, %s5071_s26 }
 0x8bb   :  { %v902_v60 = vpop.permute.xlu1 %901 }
 0x8bc   :  { %v5278_v62 = vadd.f32 %v902_v60, %v894_v58 }
 0x8be   :  { %4553 = vtanh.f32 %v5278_v62 }
 0x8bf   :  { %4555 = vpow2.f32 %v4244_v0  ;;  %v5316_v0 = vrot.slane %v681_v17, %v687_v7 }
 0x8c8   :  { %v4554_v63 = vpop.eup %4553 }
 0x8c9   :  { %907 = vrot.lane.b32.xlu0 %v4554_v63, %s5071_s26  ;;  %v4556_v1 = vpop.eup %4555 }
 0x8ca   :  { %v888_v2 = vadd.f32 1.0, %v4556_v1 }
 0x8cc   :  { %4557 = vrcp.f32 %v888_v2 }
 0x8d6   :  { %v4558_v11 = vpop.eup %4557 }
 0x93b   :  { %v908_v12 = vpop.permute.xlu0 %907 }
 0x93c   :  { %v910_v14 = vmul.f32 %v4558_v11, %v908_v12 }
 0x93e   :  { %v911_v16 = vpack.c.bf16 %v910_v14, %v910_v14 }
 0x940   :  { %4261 = vmatmul.mubr.msk.bf16.vlgmr.msra.gmra.mrb[24].mxu0 %vm735_vm7, %v911_v16  ;;  %4264 = vmatmul.mubr.msk.bf16.vlgmr.msra.gmra.mrb[24].mxu1 %vm735_vm7, %v911_v16 }
 0x941   :  { %1208 = vmatpush1.bf16.msra.mxu0 %v5223_v36  ;;  %1254 = vmatpush1.bf16.msra.mxu1 %v5233_v40 }
 0x942   :  { %1209 = vmatprep.subr.bf16.mxu0 %v5225_v37  ;;  %1255 = vmatprep.subr.bf16.mxu1 %v5235_v41 }
 0x943   :  { %1239 = vmatprep.mubr.bf16.mxu0 %v5072_v56  ;;  %1285 = vmatprep.mubr.bf16.mxu1 %v5072_v56 }
 0x945   :  { %1210 = vmatpush1.bf16.msra.mxu0 %v5231_v39  ;;  %1256 = vmatpush1.bf16.msra.mxu1 %v5242_v43 }
 0x946   :  { %1211 = vmatprep.subr.bf16.mxu0 %v5238_v42  ;;  %1257 = vmatprep.subr.bf16.mxu1 %v5245_v45 }
 0x949   :  { %1212 = vmatpush1.bf16.msra.mxu0 %v5248_v46  ;;  %1258 = vmatpush1.bf16.msra.mxu1 %v5254_v55 }
 0x94a   :  { %1213 = vmatprep.subr.bf16.mxu0 %v5251_v53  ;;  %1259 = vmatprep.subr.bf16.mxu1 %v5274_v59 }
 0x94d   :  { %1214 = vmatpush1.bf16.msra.mxu0 %v5258_v57  ;;  %1260 = vmatpush1.bf16.msra.mxu1 %v5276_v61 }
 0x94e   :  { %1326 = vmatprep.subr.bf16.mxu0 %v5157_v44  ;;  %1413 = vmatprep.subr.bf16.mxu1 %v5221_v35 }
 0xa13   :  { %v1070_v20 = vpop.f32.mrb[24].mxu0  ;;  %v1154_v22 = vpop.f32.mrb[24].mxu1 }
 0xa14   :  { %v1071_v24 = vadd.f32 %v1070_v20, %v986_v3  ;;  %v1072_v26 = vpop.f32.mrb[25].mxu0  ;;  %v1156_v28 = vpop.f32.mrb[25].mxu1  ;;  %v1163_v2 = vrot.slane %v1154_v22, 6 }
 0xa15   :  { %v1073_v29 = vadd.f32 %v1072_v26, %v988_v6  ;;  %v1074_v30 = vpop.f32.mrb[26].mxu0  ;;  %v1158_v31 = vpop.f32.mrb[26].mxu1  ;;  %v1164_v32 = vrot.slane %v1156_v28, 6 }
 0xa16   :  { %v1075_v33 = vpop.f32.mrb[27].mxu0  ;;  %v1159_v34 = vpop.f32.mrb[27].mxu1  ;;  %v1088_v1 = vadd.f32 %v5316_v0, %v1071_v24  ;;  %v1167_v6 = vadd.f32 %v1163_v2, %v5217_v27 }
 0xa17   :  { %v1089_v58 = vadd.f32 %v5308_v18, %v1073_v29  ;;  %v1168_v60 = vadd.f32 %v1164_v32, %v5198_v13  ;;  %v1183_v29 = vrot.slane %v5278_v62, 6 }
 0xa18   :  { %v4262_v3 = vmul.f32 -1.442695, %v1088_v1  ;;  %v4265_v8 = vmul.f32 -1.442695, %v1167_v6 }
 0xa19   :  { %4559 = vtanh.f32 %v1089_v58 }
 0xa1a   :  { %4561 = vtanh.f32 %v1168_v60 }
 0xa1b   :  { %4563 = vpow2.f32 %v4262_v3 }
 0xa1c   :  { %4565 = vpow2.f32 %v4265_v8 }
 0xa23   :  { %v4560_v63 = vpop.eup %4559 }
 0xa24   :  { %1105 = vrot.lane.b32.xlu1 %v4560_v63, %s5071_s26  ;;  %v4562_v5 = vpop.eup %4561  ;;  %v4263_v63 = vmul.f32 -1.442695, %v1089_v58 }
 0xa25   :  { %1187 = vrot.lane.b32.xlu0 %v4562_v5, %s5071_s26  ;;  %v4564_v9 = vpop.eup %4563  ;;  %v4266_v5 = vmul.f32 -1.442695, %v1168_v60 }
 0xa26   :  { %v1096_v11 = vadd.f32 1.0, %v4564_v9  ;;  %v4566_v12 = vpop.eup %4565 }
 0xa27   :  { %v1175_v14 = vadd.f32 1.0, %v4566_v12 }
 0xa28   :  { %4567 = vrcp.f32 %v1096_v11 }
 0xa29   :  { %4569 = vrcp.f32 %v1175_v14 }
 0xa32   :  { %v4568_v16 = vpop.eup %4567 }
 0xa33   :  { %v4570_v7 = vpop.eup %4569  ;;  %v1103_v24 = vmul.f32 0.0, %v4568_v16 }
 0xa34   :  { %v1185_v30 = vmul.f32 %v4570_v7, %v1183_v29 }
 0xa96   :  { %v1106_v20 = vpop.permute.xlu1 %1105 }
 0xa97   :  { %v1108_v4 = vmul.f32 %v4568_v16, %v1106_v20  ;;  %v1188_v17 = vpop.permute.xlu0 %1187 }
 0xa98   :  { %v1190_v22 = vmul.f32 %v4570_v7, %v1188_v17 }
 0xa99   :  { %1110 = vrot.lane.b32.xlu1 %v1108_v4, %s5071_s26 }
 0xa9a   :  { %1192 = vrot.lane.b32.xlu0 %v1190_v22, %s5071_s26 }
 0xb0b   :  { %v1111_v26 = vpop.permute.xlu1 %1110 }
 0xb0c   :  { %v5322_v28 = vadd.f32 %v1111_v26, %v1103_v24  ;;  %v1193_v31 = vpop.permute.xlu0 %1192 }
 0xb0d   :  { %v5326_v32 = vadd.f32 %v1193_v31, %v1185_v30 }
 0xb0e   :  { %4571 = vtanh.f32 %v5322_v28 }
 0xb0f   :  { %4573 = vtanh.f32 %v5326_v32 }
 0xb10   :  { %4575 = vpow2.f32 %v4263_v63 }
 0xb11   :  { %4577 = vpow2.f32 %v4266_v5 }
 0xb18   :  { %v4572_v33 = vpop.eup %4571 }
 0xb19   :  { %1116 = vrot.lane.b32.xlu1 %v4572_v33, %s5071_s26  ;;  %v4574_v34 = vpop.eup %4573 }
 0xb1a   :  { %1198 = vrot.lane.b32.xlu0 %v4574_v34, %s5071_s26  ;;  %v4576_v1 = vpop.eup %4575 }
 0xb1b   :  { %v1097_v62 = vadd.f32 1.0, %v4576_v1  ;;  %v4578_v2 = vpop.eup %4577 }
 0xb1c   :  { %v1176_v3 = vadd.f32 1.0, %v4578_v2 }
 0xb1d   :  { %4579 = vrcp.f32 %v1097_v62 }
 0xb1e   :  { %4581 = vrcp.f32 %v1176_v3 }
 0xb27   :  { %v4580_v6 = vpop.eup %4579 }
 0xb28   :  { %v4582_v12 = vpop.eup %4581 }
 0xb8b   :  { %v1117_v8 = vpop.permute.xlu1 %1116 }
 0xb8c   :  { %v1119_v9 = vmul.f32 %v4580_v6, %v1117_v8  ;;  %v1199_v14 = vpop.permute.xlu0 %1198 }
 0xb8d   :  { %v1201_v16 = vmul.f32 %v4582_v12, %v1199_v14 }
 0xb8e   :  { %v1203_v11 = vpack.c.bf16 %v1119_v9, %v1119_v9 }
 0xb8f   :  { %v1202_v58 = vpack.c.bf16 %v1201_v16, %v1201_v16 }
 0xb90   :  { %4267 = vmatmul.mubr.msk.bf16.vlgmr.msra.gmra.mrb[28].mxu0 %vm735_vm7, %v1203_v11 }
 0xb91   :  { %1327 = vmatpush1.bf16.msra.mxu0 %v5159_v47  ;;  %1358 = vmatprep.mubr.bf16.mxu0 %v5072_v56  ;;  %v1249_v60 = vrot.slane %v1202_v58, 1 }
 0xb92   :  { %1328 = vmatprep.subr.bf16.mxu0 %v5162_v48 }
 0xb93   :  { %4268 = vmatmul.mubr.msk.bf16.vlgmr.msra.gmra.mrb[28].mxu1 %vm735_vm7, %v1249_v60 }
 0xb94   :  { %1414 = vmatpush1.bf16.msra.mxu1 %v5223_v36  ;;  %1445 = vmatprep.mubr.bf16.mxu1 %v5072_v56 }
 0xb95   :  { %1329 = vmatpush1.bf16.msra.mxu0 %v5166_v49  ;;  %1415 = vmatprep.subr.bf16.mxu1 %v5225_v37 }
 0xb96   :  { %1330 = vmatprep.subr.bf16.mxu0 %v5170_v50 }
 0xb98   :  { %1416 = vmatpush1.bf16.msra.mxu1 %v5231_v39 }
 0xb99   :  { %1331 = vmatpush1.bf16.msra.mxu0 %v5172_v51  ;;  %1417 = vmatprep.subr.bf16.mxu1 %v5238_v42 }
 0xb9a   :  { %1332 = vmatprep.subr.bf16.mxu0 %v5176_v52 }
 0xb9c   :  { %1418 = vmatpush1.bf16.msra.mxu1 %v5248_v46 }
 0xb9d   :  { %1333 = vmatpush1.bf16.msra.mxu0 %v5178_v54  ;;  %1419 = vmatprep.subr.bf16.mxu1 %v5251_v53 }
 0xb9e   :  { %1459 = vmatprep.subr.bf16.mxu0 %v5228_v38 }
 0xba0   :  { %4271 = vmatmul.mubr.msk.bf16.vlgmr.msra.gmra.mrb[32].mxu0 %vm735_vm7, %v1249_v60  ;;  %1420 = vmatpush1.bf16.msra.mxu1 %v5258_v57 }
 0xba1   :  { %1460 = vmatpush1.bf16.msra.mxu0 %v5233_v40  ;;  %1491 = vmatprep.mubr.bf16.mxu0 %v5072_v56 }
 0xba2   :  { %1461 = vmatprep.subr.bf16.mxu0 %v5235_v41  ;;  %1532 = vmatprep.subr.bf16.mxu1 %v5157_v44 }
 0xba5   :  { %1462 = vmatpush1.bf16.msra.mxu0 %v5242_v43 }
 0xba6   :  { %1463 = vmatprep.subr.bf16.mxu0 %v5245_v45 }
 0xba9   :  { %1464 = vmatpush1.bf16.msra.mxu0 %v5254_v55 }
 0xbaa   :  { %1465 = vmatprep.subr.bf16.mxu0 %v5274_v59 }
 0xbad   :  { %1466 = vmatpush1.bf16.msra.mxu0 %v5276_v61 }
 0xbae   :  { %1619 = vmatprep.subr.bf16.mxu0 %v5221_v35 }
 0xc63   :  { %v1241_v20 = vpop.f32.mrb[28].mxu0 }
 0xc64   :  { %v1243_v4 = vpop.f32.mrb[29].mxu0 }
 0xc65   :  { %v1245_v7 = vpop.f32.mrb[30].mxu0 }
 0xc66   :  { %v1246_v17 = vpop.f32.mrb[31].mxu0  ;;  %v1287_v22 = vpop.f32.mrb[28].mxu1 }
 0xc67   :  { %v1288_v24 = vadd.f32 %v1287_v22, %v1241_v20  ;;  %v1289_v26 = vpop.f32.mrb[29].mxu1 }
 0xc68   :  { %v1290_v29 = vadd.f32 %v1289_v26, %v1243_v4  ;;  %v1291_v30 = vpop.f32.mrb[30].mxu1 }
 0xc69   :  { %v1292_v31 = vpop.f32.mrb[31].mxu1  ;;  %v1294_v8 = vadd.f32 %v1288_v24, %v5316_v0 }
 0xc6a   :  { %v1295_v33 = vadd.f32 %v1290_v29, %v5308_v18 }
 0xc6b   :  { %v4269_v9 = vmul.f32 -1.442695, %v1294_v8 }
 0xc6c   :  { %4583 = vtanh.f32 %v1295_v33 }
 0xc73   :  { %v1360_v34 = vpop.f32.mrb[32].mxu0 }
 0xc74   :  { %v1362_v63 = vpop.f32.mrb[33].mxu0  ;;  %v1369_v11 = vrot.slane %v1360_v34, 4  ;;  %v1389_v34 = vrot.slane %v5326_v32, 6 }
 0xc75   :  { %v1370_v5 = vrot.slane %v1362_v63, 4  ;;  %v1364_v1 = vpop.f32.mrb[34].mxu0 }
 0xc76   :  { %v1365_v62 = vpop.f32.mrb[35].mxu0  ;;  %v4584_v3 = vpop.eup %4583  ;;  %v1373_v12 = vadd.f32 %v1369_v11, %v5217_v27 }
 0xc77   :  { %v1374_v2 = vadd.f32 %v1370_v5, %v5198_v13  ;;  %1311 = vrot.lane.b32.xlu1 %v4584_v3, %s5071_s26 }
 0xc78   :  { %v4272_v14 = vmul.f32 -1.442695, %v1373_v12 }
 0xc79   :  { %4585 = vtanh.f32 %v1374_v2 }
 0xc7a   :  { %4587 = vpow2.f32 %v4269_v9 }
 0xc7b   :  { %4589 = vpow2.f32 %v4272_v14 }
 0xc83   :  { %v4586_v6 = vpop.eup %4585 }
 0xc84   :  { %1393 = vrot.lane.b32.xlu0 %v4586_v6, %s5071_s26  ;;  %v4588_v16 = vpop.eup %4587  ;;  %v4273_v6 = vmul.f32 -1.442695, %v1374_v2 }
 0xc85   :  { %v1302_v58 = vadd.f32 1.0, %v4588_v16  ;;  %v4590_v60 = vpop.eup %4589 }
 0xc86   :  { %v1381_v20 = vadd.f32 1.0, %v4590_v60 }
 0xc87   :  { %4591 = vrcp.f32 %v1302_v58 }
 0xc88   :  { %4593 = vrcp.f32 %v1381_v20 }
 0xc91   :  { %v4592_v4 = vpop.eup %4591 }
 0xc92   :  { %v4594_v22 = vpop.eup %4593  ;;  %v1309_v29 = vmul.f32 %v4592_v4, %v5322_v28  ;;  %v4270_v28 = vmul.f32 -1.442695, %v1295_v33 }
 0xc93   :  { %v1391_v63 = vmul.f32 %v4594_v22, %v1389_v34 }
 0xce9   :  { %v1312_v7 = vpop.permute.xlu1 %1311 }
 0xcea   :  { %v1314_v17 = vmul.f32 %v4592_v4, %v1312_v7 }
 0xcec   :  { %1316 = vrot.lane.b32.xlu1 %v1314_v17, %s5071_s26 }
 0xcf6   :  { %v1394_v24 = vpop.permute.xlu0 %1393 }
 0xcf7   :  { %v1396_v26 = vmul.f32 %v4594_v22, %v1394_v24 }
 0xcf9   :  { %1398 = vrot.lane.b32.xlu0 %v1396_v26, %s5071_s26 }
 0xd5e   :  { %v1317_v30 = vpop.permute.xlu1 %1316 }
 0xd5f   :  { %v5370_v31 = vadd.f32 %v1317_v30, %v1309_v29 }
 0xd61   :  { %4595 = vtanh.f32 %v5370_v31 }
 0xd6b   :  { %v1399_v5 = vpop.permute.xlu0 %1398  ;;  %v4596_v62 = vpop.eup %4595 }
 0xd6c   :  { %v5374_v1 = vadd.f32 %v1399_v5, %v1391_v63  ;;  %1322 = vrot.lane.b32.xlu1 %v4596_v62, %s5071_s26 }
 0xd6e   :  { %4597 = vtanh.f32 %v5374_v1 }
 0xd6f   :  { %4599 = vpow2.f32 %v4270_v28 }
 0xd70   :  { %4601 = vpow2.f32 %v4273_v6 }
 0xd78   :  { %v4598_v3 = vpop.eup %4597 }
 0xd79   :  { %1404 = vrot.lane.b32.xlu0 %v4598_v3, %s5071_s26  ;;  %v4600_v8 = vpop.eup %4599 }
 0xd7a   :  { %v1303_v9 = vadd.f32 1.0, %v4600_v8  ;;  %v4602_v32 = vpop.eup %4601 }
 0xd7b   :  { %v1382_v11 = vadd.f32 1.0, %v4602_v32 }
 0xd7c   :  { %4603 = vrcp.f32 %v1303_v9 }
 0xd7d   :  { %4605 = vrcp.f32 %v1382_v11 }
 0xd86   :  { %v4604_v12 = vpop.eup %4603 }
 0xd87   :  { %v4606_v33 = vpop.eup %4605 }
 0xdde   :  { %v1323_v14 = vpop.permute.xlu1 %1322 }
 0xddf   :  { %v1325_v16 = vmul.f32 %v4604_v12, %v1323_v14 }
 0xde1   :  { %v1409_v58 = vpack.c.bf16 %v1325_v16, %v1325_v16 }
 0xde3   :  { %4274 = vmatmul.mubr.msk.bf16.vlgmr.msra.gmra.mrb[32].mxu1 %vm735_vm7, %v1409_v58 }
 0xde4   :  { %1533 = vmatpush1.bf16.msra.mxu1 %v5159_v47  ;;  %1564 = vmatprep.mubr.bf16.mxu1 %v5072_v56 }
 0xde5   :  { %1534 = vmatprep.subr.bf16.mxu1 %v5162_v48 }
 0xde8   :  { %1535 = vmatpush1.bf16.msra.mxu1 %v5166_v49 }
 0xde9   :  { %1536 = vmatprep.subr.bf16.mxu1 %v5170_v50 }
 0xdeb   :  { %v1405_v2 = vpop.permute.xlu0 %1404 }
 0xdec   :  { %v1407_v60 = vmul.f32 %v4606_v33, %v1405_v2  ;;  %1537 = vmatpush1.bf16.msra.mxu1 %v5172_v51 }
 0xded   :  { %1538 = vmatprep.subr.bf16.mxu1 %v5176_v52 }
 0xdee   :  { %v1408_v20 = vpack.c.bf16 %v1407_v60, %v1407_v60 }
 0xdf0   :  { %v1455_v4 = vrot.slane %v1408_v20, 2  ;;  %1539 = vmatpush1.bf16.msra.mxu1 %v5178_v54 }
 0xdf1   :  { %1665 = vmatprep.subr.bf16.mxu1 %v5228_v38 }
 0xdf2   :  { %4275 = vmatmul.mubr.msk.bf16.vlgmr.msra.gmra.mrb[36].mxu0 %vm735_vm7, %v1455_v4 }
 0xdf3   :  { %1620 = vmatpush1.bf16.msra.mxu0 %v5223_v36  ;;  %1651 = vmatprep.mubr.bf16.mxu0 %v5072_v56 }
 0xdf4   :  { %1621 = vmatprep.subr.bf16.mxu0 %v5225_v37  ;;  %4278 = vmatmul.mubr.msk.bf16.vlgmr.msra.gmra.mrb[36].mxu1 %vm735_vm7, %v1455_v4 }
 0xdf5   :  { %1666 = vmatpush1.bf16.msra.mxu1 %v5233_v40  ;;  %1697 = vmatprep.mubr.bf16.mxu1 %v5072_v56 }
 0xdf6   :  { %1667 = vmatprep.subr.bf16.mxu1 %v5235_v41 }
 0xdf7   :  { %1622 = vmatpush1.bf16.msra.mxu0 %v5231_v39 }
 0xdf8   :  { %1623 = vmatprep.subr.bf16.mxu0 %v5238_v42 }
 0xdf9   :  { %1668 = vmatpush1.bf16.msra.mxu1 %v5242_v43 }
 0xdfa   :  { %1669 = vmatprep.subr.bf16.mxu1 %v5245_v45 }
 0xdfb   :  { %1624 = vmatpush1.bf16.msra.mxu0 %v5248_v46 }
 0xdfc   :  { %1625 = vmatprep.subr.bf16.mxu0 %v5251_v53 }
 0xdfd   :  { %1670 = vmatpush1.bf16.msra.mxu1 %v5254_v55 }
 0xdfe   :  { %1671 = vmatprep.subr.bf16.mxu1 %v5274_v59 }
 0xdff   :  { %1626 = vmatpush1.bf16.msra.mxu0 %v5258_v57 }
 0xe00   :  { %1738 = vmatprep.subr.bf16.mxu0 %v5157_v44 }
 0xe01   :  { %1672 = vmatpush1.bf16.msra.mxu1 %v5276_v61 }
 0xe02   :  { %1819 = vmatprep.subr.bf16.mxu1 %v5221_v35 }
 0xeb6   :  { %v1447_v7 = vpop.f32.mrb[32].mxu1 }
 0xeb7   :  { %v1449_v17 = vpop.f32.mrb[33].mxu1 }
 0xeb8   :  { %v1451_v22 = vpop.f32.mrb[34].mxu1 }
 0xeb9   :  { %v1452_v24 = vpop.f32.mrb[35].mxu1 }
 0xec5   :  { %v1493_v26 = vpop.f32.mrb[36].mxu0 }
 0xec6   :  { %v1494_v29 = vadd.f32 %v1493_v26, %v1447_v7  ;;  %v1495_v30 = vpop.f32.mrb[37].mxu0 }
 0xec7   :  { %v1496_v34 = vadd.f32 %v1495_v30, %v1449_v17  ;;  %v1497_v63 = vpop.f32.mrb[38].mxu0  ;;  %v1566_v3 = vpop.f32.mrb[36].mxu1 }
 0xec8   :  { %v1498_v5 = vpop.f32.mrb[39].mxu0  ;;  %v1568_v28 = vpop.f32.mrb[37].mxu1  ;;  %v1500_v14 = vadd.f32 %v1494_v29, %v5316_v0  ;;  %v1575_v16 = vrot.slane %v1566_v3, 2  ;;  %v1595_v63 = vrot.slane %v5374_v1, 6 }
 0xec9   :  { %v1501_v62 = vadd.f32 %v1496_v34, %v5308_v18  ;;  %v1576_v6 = vrot.slane %v1568_v28, 2  ;;  %v1570_v8 = vpop.f32.mrb[38].mxu1 }
 0xeca   :  { %v1571_v9 = vpop.f32.mrb[39].mxu1  ;;  %v4276_v58 = vmul.f32 -1.442695, %v1500_v14  ;;  %v1579_v33 = vadd.f32 %v1575_v16, %v5217_v27 }
 0xecb   :  { %4607 = vtanh.f32 %v1501_v62  ;;  %v1580_v32 = vadd.f32 %v1576_v6, %v5198_v13 }
 0xecc   :  { %v4279_v2 = vmul.f32 -1.442695, %v1579_v33 }
 0xecd   :  { %4609 = vtanh.f32 %v1580_v32  ;;  %v4280_v9 = vmul.f32 -1.442695, %v1580_v32 }
 0xece   :  { %4611 = vpow2.f32 %v4276_v58 }
 0xecf   :  { %4613 = vpow2.f32 %v4279_v2 }
 0xed5   :  { %v4608_v11 = vpop.eup %4607 }
 0xed6   :  { %1517 = vrot.lane.b32.xlu0 %v4608_v11, %s5071_s26 }
 0xed7   :  { %v4610_v12 = vpop.eup %4609 }
 0xed8   :  { %1599 = vrot.lane.b32.xlu1 %v4610_v12, %s5071_s26  ;;  %v4612_v60 = vpop.eup %4611 }
 0xed9   :  { %v1508_v20 = vadd.f32 1.0, %v4612_v60  ;;  %v4614_v4 = vpop.eup %4613 }
 0xeda   :  { %v1587_v13 = vadd.f32 1.0, %v4614_v4 }
 0xedb   :  { %4615 = vrcp.f32 %v1508_v20 }
 0xedc   :  { %4617 = vrcp.f32 %v1587_v13 }
 0xee5   :  { %v4616_v7 = vpop.eup %4615 }
 0xee6   :  { %v4618_v24 = vpop.eup %4617  ;;  %v1515_v27 = vmul.f32 %v4616_v7, %v5370_v31  ;;  %v4277_v31 = vmul.f32 -1.442695, %v1501_v62 }
 0xee7   :  { %v1597_v5 = vmul.f32 %v4618_v24, %v1595_v63 }
 0xf48   :  { %v1518_v17 = vpop.permute.xlu0 %1517 }
 0xf49   :  { %v1520_v22 = vmul.f32 %v4616_v7, %v1518_v17 }
 0xf4a   :  { %v1600_v26 = vpop.permute.xlu1 %1599 }
 0xf4b   :  { %1522 = vrot.lane.b32.xlu0 %v1520_v22, %s5071_s26  ;;  %v1602_v29 = vmul.f32 %v4618_v24, %v1600_v26 }
 0xf4d   :  { %1604 = vrot.lane.b32.xlu1 %v1602_v29, %s5071_s26 }
 0xfbd   :  { %v1523_v30 = vpop.permute.xlu0 %1522 }
 0xfbe   :  { %v5418_v34 = vadd.f32 %v1523_v30, %v1515_v27 }
 0xfbf   :  { %v1605_v3 = vpop.permute.xlu1 %1604 }
 0xfc0   :  { %4619 = vtanh.f32 %v5418_v34  ;;  %v5422_v28 = vadd.f32 %v1605_v3, %v1597_v5 }
 0xfc2   :  { %4621 = vtanh.f32 %v5422_v28 }
 0xfc3   :  { %4623 = vpow2.f32 %v4277_v31 }
 0xfc4   :  { %4625 = vpow2.f32 %v4280_v9 }
 0xfca   :  { %v4620_v6 = vpop.eup %4619 }
 0xfcb   :  { %1528 = vrot.lane.b32.xlu0 %v4620_v6, %s5071_s26 }
 0xfcc   :  { %v4622_v8 = vpop.eup %4621 }
 0xfcd   :  { %1610 = vrot.lane.b32.xlu1 %v4622_v8, %s5071_s26  ;;  %v4624_v11 = vpop.eup %4623 }
 0xfce   :  { %v1509_v1 = vadd.f32 1.0, %v4624_v11  ;;  %v4626_v12 = vpop.eup %4625 }
 0xfcf   :  { %v1588_v14 = vadd.f32 1.0, %v4626_v12 }
 0xfd0   :  { %4627 = vrcp.f32 %v1509_v1 }
 0xfd1   :  { %4629 = vrcp.f32 %v1588_v14 }
 0xfda   :  { %v4628_v16 = vpop.eup %4627 }
 0xfdb   :  { %v4630_v60 = vpop.eup %4629 }
0x103d   :  { %v1529_v58 = vpop.permute.xlu0 %1528 }
0x103e   :  { %v1531_v33 = vmul.f32 %v4628_v16, %v1529_v58 }
0x103f   :  { %v1611_v20 = vpop.permute.xlu1 %1610 }
0x1040   :  { %v1615_v2 = vpack.c.bf16 %v1531_v33, %v1531_v33  ;;  %v1613_v4 = vmul.f32 %v4630_v60, %v1611_v20 }
0x1042   :  { %4281 = vmatmul.mubr.msk.bf16.vlgmr.msra.gmra.mrb[40].mxu0 %vm735_vm7, %v1615_v2  ;;  %v1614_v62 = vpack.c.bf16 %v1613_v4, %v1613_v4 }
0x1043   :  { %1739 = vmatpush1.bf16.msra.mxu0 %v5159_v47  ;;  %1770 = vmatprep.mubr.bf16.mxu0 %v5072_v56 }
0x1044   :  { %1740 = vmatprep.subr.bf16.mxu0 %v5162_v48  ;;  %v1661_v32 = vrot.slane %v1614_v62, 3  ;;  %v1795_v62 = vrot.slane %v5422_v28, 6 }
0x1046   :  { %4282 = vmatmul.mubr.msk.bf16.vlgmr.msra.gmra.mrb[40].mxu1 %vm735_vm7, %v1661_v32 }
0x1047   :  { %1741 = vmatpush1.bf16.msra.mxu0 %v5166_v49  ;;  %1820 = vmatpush1.bf16.msra.mxu1 %v5223_v36 }
0x1048   :  { %1742 = vmatprep.subr.bf16.mxu0 %v5170_v50  ;;  %1851 = vmatprep.mubr.bf16.mxu1 %v5072_v56 }
0x1049   :  { %1821 = vmatprep.subr.bf16.mxu1 %v5225_v37 }
0x104b   :  { %1743 = vmatpush1.bf16.msra.mxu0 %v5172_v51  ;;  %1822 = vmatpush1.bf16.msra.mxu1 %v5231_v39 }
0x104c   :  { %1744 = vmatprep.subr.bf16.mxu0 %v5176_v52  ;;  %1823 = vmatprep.subr.bf16.mxu1 %v5238_v42 }
0x104f   :  { %1745 = vmatpush1.bf16.msra.mxu0 %v5178_v54  ;;  %1824 = vmatpush1.bf16.msra.mxu1 %v5248_v46 }
0x1050   :  { %1863 = vmatprep.subr.bf16.mxu0 %v5228_v38  ;;  %1825 = vmatprep.subr.bf16.mxu1 %v5251_v53 }
0x1052   :  { %4285 = vmatmul.mubr.msk.bf16.vlgmr.msra.gmra.mrb[44].mxu0 %vm735_vm7, %v1661_v32 }
0x1053   :  { %1864 = vmatpush1.bf16.msra.mxu0 %v5233_v40  ;;  %1895 = vmatprep.mubr.bf16.mxu0 %v5072_v56 }
0x1054   :  { %1865 = vmatprep.subr.bf16.mxu0 %v5235_v41  ;;  %1826 = vmatpush1.bf16.msra.mxu1 %v5258_v57 }
0x1055   :  { %1936 = vmatprep.subr.bf16.mxu1 %v5157_v44 }
0x1057   :  { %1866 = vmatpush1.bf16.msra.mxu0 %v5242_v43 }
0x1058   :  { %1867 = vmatprep.subr.bf16.mxu0 %v5245_v45 }
0x105b   :  { %1868 = vmatpush1.bf16.msra.mxu0 %v5254_v55 }
0x105c   :  { %1869 = vmatprep.subr.bf16.mxu0 %v5274_v59 }
0x105f   :  { %1870 = vmatpush1.bf16.msra.mxu0 %v5276_v61 }
0x1060   :  { %2023 = vmatprep.subr.bf16.mxu0 %v5221_v35 }
0x1115   :  { %v1653_v47 = vpop.f32.mrb[40].mxu0 }
0x1116   :  { %v1655_v48 = vpop.f32.mrb[41].mxu0 }
0x1117   :  { %v1657_v49 = vpop.f32.mrb[42].mxu0 }
0x1118   :  { %v1658_v50 = vpop.f32.mrb[43].mxu0 }
0x1119   :  { %v1699_v51 = vpop.f32.mrb[40].mxu1 }
0x111a   :  { %v1700_v52 = vadd.f32 %v1699_v51, %v1653_v47  ;;  %v1701_v54 = vpop.f32.mrb[41].mxu1 }
0x111b   :  { %v1702_v44 = vadd.f32 %v1701_v54, %v1655_v48  ;;  %v1703_v13 = vpop.f32.mrb[42].mxu1 }
0x111c   :  { %v1704_v7 = vpop.f32.mrb[43].mxu1  ;;  %v1706_v5 = vadd.f32 %v1700_v52, %v5316_v0 }
0x111d   :  { %v1707_v17 = vadd.f32 %v1702_v44, %v5308_v18 }
0x111e   :  { %v4283_v3 = vmul.f32 -1.442695, %v1706_v5 }
0x111f   :  { %4631 = vtanh.f32 %v1707_v17 }
0x1125   :  { %v1772_v22 = vpop.f32.mrb[44].mxu0 }
0x1126   :  { %v1774_v24 = vpop.f32.mrb[45].mxu0  ;;  %v1779_v6 = vadd.f32 %v1772_v22, %v5200_v15 }
0x1127   :  { %v1780_v26 = vadd.f32 %v1774_v24, %v5202_v10  ;;  %v1776_v29 = vpop.f32.mrb[46].mxu0 }
0x1128   :  { %v1777_v27 = vpop.f32.mrb[47].mxu0  ;;  %v4286_v8 = vmul.f32 -1.442695, %v1779_v6  ;;  %v5476_v29 = vld [vmem:[#allocation4 + $0xb0] ss:$8 sps:$4 sm:$0xff]  }
0x1129   :  { %4633 = vtanh.f32 %v1780_v26  ;;  %v4632_v30 = vpop.eup %4631  ;;  %v4287_v51 = vmul.f32 -1.442695, %v1780_v26  ;;  %v5480_v26 = vld [vmem:[#allocation4 + $0xc4] ss:$8 sps:$4 sm:$0xff]   ;;  %v5492_v6 = vld [vmem:[#allocation4 + $0xd0] ss:$8 sps:$4 sm:$0xff]  }
0x112a   :  { %1723 = vrot.lane.b32.xlu1 %v4632_v30, %s5071_s26  ;;  %4635 = vpow2.f32 %v4283_v3  ;;  %v5486_v3 = vld [vmem:[#allocation4 + $0xd4] ss:$8 sps:$4 sm:$0xff]  }
0x112b   :  { %4637 = vpow2.f32 %v4286_v8  ;;  %v5496_v8 = vld [vmem:[#allocation4 + $0xe4] ss:$8 sps:$4 sm:$0xff]  }
0x1133   :  { %v4634_v63 = vpop.eup %4633 }
0x1134   :  { %1799 = vrot.lane.b32.xlu0 %v4634_v63, %s5071_s26  ;;  %v4636_v31 = vpop.eup %4635  ;;  %v5483_v63 = vld [vmem:[#allocation4 + $0xc0] ss:$8 sps:$4 sm:$0xff]  }
0x1135   :  { %v1714_v9 = vadd.f32 1.0, %v4636_v31  ;;  %v4638_v11 = vpop.eup %4637  ;;  %v5500_v31 = vld [vmem:[#allocation4 + $0xe0] ss:$8 sps:$4 sm:$0xff]  }
0x1136   :  { %v1787_v1 = vadd.f32 1.0, %v4638_v11 }
0x1137   :  { %4639 = vrcp.f32 %v1714_v9 }
0x1138   :  { %4641 = vrcp.f32 %v1787_v1 }
0x1141   :  { %v4640_v12 = vpop.eup %4639 }
0x1142   :  { %v4642_v58 = vpop.eup %4641  ;;  %v1721_v60 = vmul.f32 %v4640_v12, %v5418_v34  ;;  %v4284_v34 = vmul.f32 -1.442695, %v1707_v17 }
0x1143   :  { %v1797_v32 = vmul.f32 %v4642_v58, %v1795_v62 }
0x119c   :  { %v1724_v14 = vpop.permute.xlu1 %1723 }
0x119d   :  { %v1726_v16 = vmul.f32 %v4640_v12, %v1724_v14 }
0x119f   :  { %1728 = vrot.lane.b32.xlu1 %v1726_v16, %s5071_s26 }
0x11a6   :  { %v1800_v33 = vpop.permute.xlu0 %1799 }
0x11a7   :  { %v1802_v2 = vmul.f32 %v4642_v58, %v1800_v33 }
0x11a9   :  { %1804 = vrot.lane.b32.xlu0 %v1802_v2, %s5071_s26 }
0x1211   :  { %v1729_v20 = vpop.permute.xlu1 %1728 }
0x1212   :  { %v5466_v4 = vadd.f32 %v1729_v20, %v1721_v60 }
0x1214   :  { %4643 = vtanh.f32 %v5466_v4 }
0x121b   :  { %v1805_v47 = vpop.permute.xlu0 %1804 }
0x121c   :  { %v5470_v48 = vadd.f32 %v1805_v47, %v1797_v32 }
0x121e   :  { %4645 = vtanh.f32 %v5470_v48  ;;  %v4644_v49 = vpop.eup %4643 }
0x121f   :  { %1734 = vrot.lane.b32.xlu1 %v4644_v49, %s5071_s26  ;;  %4647 = vpow2.f32 %v4284_v34 }
0x1220   :  { %4649 = vpow2.f32 %v4287_v51 }
0x1228   :  { %v4646_v50 = vpop.eup %4645 }
0x1229   :  { %1810 = vrot.lane.b32.xlu0 %v4646_v50, %s5071_s26  ;;  %v4648_v52 = vpop.eup %4647 }
0x122a   :  { %v1715_v54 = vadd.f32 1.0, %v4648_v52  ;;  %v4650_v44 = vpop.eup %4649 }
0x122b   :  { %v1788_v28 = vadd.f32 1.0, %v4650_v44 }
0x122c   :  { %4651 = vrcp.f32 %v1715_v54 }
0x122d   :  { %4653 = vrcp.f32 %v1788_v28 }
0x1236   :  { %v4652_v13 = vpop.eup %4651 }
0x1237   :  { %v4654_v17 = vpop.eup %4653 }
0x1291   :  { %v1735_v7 = vpop.permute.xlu1 %1734 }
0x1292   :  { %v1737_v22 = vmul.f32 %v4652_v13, %v1735_v7  ;;  %v1999_v13 = vrot.slane %v5470_v48, 6 }
0x1294   :  { %v1815_v24 = vpack.c.bf16 %v1737_v22, %v1737_v22 }
0x1296   :  { %4288 = vmatmul.mubr.msk.bf16.vlgmr.msra.gmra.mrb[44].mxu1 %vm735_vm7, %v1815_v24 }
0x1297   :  { %1937 = vmatpush1.bf16.msra.mxu1 %v5476_v29  ;;  %1968 = vmatprep.mubr.bf16.mxu1 %v5072_v56 }
0x1298   :  { %1938 = vmatprep.subr.bf16.mxu1 %v5480_v26 }
0x129b   :  { %v1811_v27 = vpop.permute.xlu0 %1810  ;;  %1939 = vmatpush1.bf16.msra.mxu1 %v5483_v63 }
0x129c   :  { %v1813_v30 = vmul.f32 %v4654_v17, %v1811_v27  ;;  %1940 = vmatprep.subr.bf16.mxu1 %v5486_v3 }
0x129e   :  { %v1814_v5 = vpack.c.bf16 %v1813_v30, %v1813_v30 }
0x129f   :  { %1941 = vmatpush1.bf16.msra.mxu1 %v5492_v6 }
0x12a0   :  { %4289 = vmatmul.mubr.msk.bf16.vlgmr.msra.gmra.mrb[48].mxu0 %vm735_vm7, %v1814_v5  ;;  %1942 = vmatprep.subr.bf16.mxu1 %v5496_v8 }
0x12a1   :  { %2024 = vmatpush1.bf16.msra.mxu0 %v5223_v36  ;;  %2055 = vmatprep.mubr.bf16.mxu0 %v5072_v56  ;;  %v5513_v36 = vld [vmem:[#allocation4 + $0xb4] ss:$8 sps:$4 sm:$0xff]  }
0x12a2   :  { %2025 = vmatprep.subr.bf16.mxu0 %v5225_v37 }
0x12a3   :  { %1943 = vmatpush1.bf16.msra.mxu1 %v5500_v31 }
0x12a4   :  { %2069 = vmatprep.subr.bf16.mxu1 %v5228_v38 }
0x12a5   :  { %2026 = vmatpush1.bf16.msra.mxu0 %v5231_v39 }
0x12a6   :  { %2027 = vmatprep.subr.bf16.mxu0 %v5238_v42  ;;  %4292 = vmatmul.mubr.msk.bf16.vlgmr.msra.gmra.mrb[48].mxu1 %vm735_vm7, %v1814_v5 }
0x12a7   :  { %2070 = vmatpush1.bf16.msra.mxu1 %v5233_v40  ;;  %2101 = vmatprep.mubr.bf16.mxu1 %v5072_v56 }
0x12a8   :  { %2071 = vmatprep.subr.bf16.mxu1 %v5235_v41 }
0x12a9   :  { %2028 = vmatpush1.bf16.msra.mxu0 %v5248_v46 }
0x12aa   :  { %2029 = vmatprep.subr.bf16.mxu0 %v5251_v53 }
0x12ab   :  { %2072 = vmatpush1.bf16.msra.mxu1 %v5242_v43 }
0x12ac   :  { %2073 = vmatprep.subr.bf16.mxu1 %v5245_v45 }
0x12ad   :  { %2030 = vmatpush1.bf16.msra.mxu0 %v5258_v57 }
0x12ae   :  { %2142 = vmatprep.subr.bf16.mxu0 %v5513_v36 }
0x12af   :  { %2074 = vmatpush1.bf16.msra.mxu1 %v5254_v55 }
0x12b0   :  { %2075 = vmatprep.subr.bf16.mxu1 %v5274_v59 }
0x12b3   :  { %2076 = vmatpush1.bf16.msra.mxu1 %v5276_v61 }
0x12b4   :  { %2229 = vmatprep.subr.bf16.mxu1 %v5221_v35 }
0x1369   :  { %v1853_v37 = vpop.f32.mrb[44].mxu1 }
0x136a   :  { %v1855_v38 = vpop.f32.mrb[45].mxu1 }
0x136b   :  { %v1857_v39 = vpop.f32.mrb[46].mxu1 }
0x136c   :  { %v1858_v40 = vpop.f32.mrb[47].mxu1 }
0x1373   :  { %v1897_v41 = vpop.f32.mrb[48].mxu0 }
0x1374   :  { %v1898_v42 = vadd.f32 %v1897_v41, %v1853_v37  ;;  %v1899_v43 = vpop.f32.mrb[49].mxu0 }
0x1375   :  { %v1900_v46 = vadd.f32 %v1899_v43, %v1855_v38  ;;  %v1901_v53 = vpop.f32.mrb[50].mxu0 }
0x1376   :  { %v1902_v57 = vpop.f32.mrb[51].mxu0  ;;  %v1904_v14 = vadd.f32 %v1898_v42, %v5316_v0 }
0x1377   :  { %v1905_v45 = vadd.f32 %v1900_v46, %v5308_v18 }
0x1378   :  { %v4290_v16 = vmul.f32 -1.442695, %v1904_v14  ;;  %v5576_v14 = vld [vmem:[#allocation4 + $0x164] ss:$8 sps:$4 sm:$0xff]  }
0x1379   :  { %4655 = vtanh.f32 %v1905_v45  ;;  %v1970_v55 = vpop.f32.mrb[48].mxu1 }
0x137a   :  { %v1972_v9 = vpop.f32.mrb[49].mxu1  ;;  %v1979_v58 = vrot.slane %v1970_v55, 6  ;;  %v5548_v55 = vld [vmem:[#allocation4 + $0x130] ss:$8 sps:$4 sm:$0xff]  }
0x137b   :  { %v1980_v59 = vrot.slane %v1972_v9, 6  ;;  %v1974_v11 = vpop.f32.mrb[50].mxu1  ;;  %v5553_v9 = vld [vmem:[#allocation4 + $0x144] ss:$8 sps:$4 sm:$0xff]  }
0x137c   :  { %v1975_v61 = vpop.f32.mrb[51].mxu1  ;;  %v1983_v33 = vadd.f32 %v1979_v58, %v5200_v15  ;;  %v5560_v11 = vld [vmem:[#allocation4 + $0x140] ss:$8 sps:$4 sm:$0xff]   ;;  %v5582_v58 = vld [vmem:[#allocation4 + $0x114] ss:$8 sps:$4 sm:$0xff]  }
0x137d   :  { %v1984_v35 = vadd.f32 %v1980_v59, %v5202_v10  ;;  %v5556_v59 = vld [vmem:[#allocation4 + $0xf4] ss:$8 sps:$4 sm:$0xff]  }
0x137e   :  { %v4293_v2 = vmul.f32 -1.442695, %v1983_v33  ;;  %v5563_v61 = vld [vmem:[#allocation4 + $0x154] ss:$8 sps:$4 sm:$0xff]   ;;  %v5585_v33 = vld [vmem:[#allocation4 + $0x160] ss:$8 sps:$4 sm:$0xff]  }
0x137f   :  { %4657 = vtanh.f32 %v1984_v35  ;;  %v4294_v30 = vmul.f32 -1.442695, %v1984_v35  ;;  %v5566_v35 = vld [vmem:[#allocation4 + $0xf0] ss:$8 sps:$4 sm:$0xff]  }
0x1380   :  { %4659 = vpow2.f32 %v4290_v16  ;;  %v5579_v16 = vld [vmem:[#allocation4 + $0x100] ss:$8 sps:$4 sm:$0xff]  }
0x1381   :  { %4661 = vpow2.f32 %v4293_v2  ;;  %v5589_v2 = vld [vmem:[#allocation4 + $0x110] ss:$8 sps:$4 sm:$0xff]  }
0x1383   :  { %v4656_v1 = vpop.eup %4655 }
0x1384   :  { %1921 = vrot.lane.b32.xlu1 %v4656_v1, %s5071_s26  ;;  %v5569_v1 = vld [vmem:[#allocation4 + $0x104] ss:$8 sps:$4 sm:$0xff]  }
0x1389   :  { %v4658_v12 = vpop.eup %4657 }
0x138a   :  { %2003 = vrot.lane.b32.xlu0 %v4658_v12, %s5071_s26  ;;  %v4660_v60 = vpop.eup %4659  ;;  %v5573_v12 = vld [vmem:[#allocation4 + $0x150] ss:$8 sps:$4 sm:$0xff]  }
0x138b   :  { %v1912_v20 = vadd.f32 1.0, %v4660_v60  ;;  %v4662_v62 = vpop.eup %4661  ;;  %v5592_v60 = vld [vmem:[#allocation4 + $0x124] ss:$8 sps:$4 sm:$0xff]  }
0x138c   :  { %v1991_v32 = vadd.f32 1.0, %v4662_v62  ;;  %v5598_v62 = vld [vmem:[#allocation4 + $0x134] ss:$8 sps:$4 sm:$0xff]  }
0x138d   :  { %4663 = vrcp.f32 %v1912_v20  ;;  %v5595_v20 = vld [vmem:[#allocation4 + $0x120] ss:$8 sps:$4 sm:$0xff]  }
0x138e   :  { %4665 = vrcp.f32 %v1991_v32 }
0x1397   :  { %v4664_v47 = vpop.eup %4663 }
0x1398   :  { %v4666_v34 = vpop.eup %4665  ;;  %v1919_v54 = vmul.f32 %v4664_v47, %v5466_v4  ;;  %v4291_v4 = vmul.f32 -1.442695, %v1905_v45 }
0x1399   :  { %v2001_v7 = vmul.f32 %v4666_v34, %v1999_v13 }
0x13f6   :  { %v1922_v49 = vpop.permute.xlu1 %1921 }
0x13f7   :  { %v1924_v50 = vmul.f32 %v4664_v47, %v1922_v49 }
0x13f9   :  { %1926 = vrot.lane.b32.xlu1 %v1924_v50, %s5071_s26 }
0x13fc   :  { %v2004_v51 = vpop.permute.xlu0 %2003 }
0x13fd   :  { %v2006_v52 = vmul.f32 %v4666_v34, %v2004_v51 }
0x13ff   :  { %2008 = vrot.lane.b32.xlu0 %v2006_v52, %s5071_s26 }
0x146b   :  { %v1927_v44 = vpop.permute.xlu1 %1926 }
0x146c   :  { %v5530_v28 = vadd.f32 %v1927_v44, %v1919_v54 }
0x146e   :  { %4667 = vtanh.f32 %v5530_v28 }
0x1471   :  { %v2009_v22 = vpop.permute.xlu0 %2008 }
0x1472   :  { %v5534_v24 = vadd.f32 %v2009_v22, %v2001_v7 }
0x1474   :  { %4669 = vtanh.f32 %v5534_v24 }
0x1475   :  { %4671 = vpow2.f32 %v4291_v4 }
0x1476   :  { %4673 = vpow2.f32 %v4294_v30 }
0x1478   :  { %v4668_v17 = vpop.eup %4667 }
0x1479   :  { %1932 = vrot.lane.b32.xlu1 %v4668_v17, %s5071_s26 }
0x147e   :  { %v4670_v27 = vpop.eup %4669 }
0x147f   :  { %2014 = vrot.lane.b32.xlu0 %v4670_v27, %s5071_s26  ;;  %v4672_v5 = vpop.eup %4671 }
0x1480   :  { %v1913_v37 = vadd.f32 1.0, %v4672_v5  ;;  %v4674_v48 = vpop.eup %4673 }
0x1481   :  { %v1992_v38 = vadd.f32 1.0, %v4674_v48 }
0x1482   :  { %4675 = vrcp.f32 %v1913_v37 }
0x1483   :  { %4677 = vrcp.f32 %v1992_v38 }
0x148c   :  { %v4676_v39 = vpop.eup %4675 }
0x148d   :  { %v4678_v43 = vpop.eup %4677 }
0x14eb   :  { %v1933_v40 = vpop.permute.xlu1 %1932 }
0x14ec   :  { %v1935_v41 = vmul.f32 %v4676_v39, %v1933_v40 }
0x14ee   :  { %v2019_v42 = vpack.c.bf16 %v1935_v41, %v1935_v41 }
0x14f0   :  { %4295 = vmatmul.mubr.msk.bf16.vlgmr.msra.gmra.mrb[52].mxu0 %vm735_vm7, %v2019_v42 }
0x14f1   :  { %2143 = vmatpush1.bf16.msra.mxu0 %v5476_v29  ;;  %2174 = vmatprep.mubr.bf16.mxu0 %v5072_v56  ;;  %v2015_v46 = vpop.permute.xlu0 %2014 }
0x14f2   :  { %2144 = vmatprep.subr.bf16.mxu0 %v5480_v26  ;;  %v2017_v53 = vmul.f32 %v4678_v43, %v2015_v46 }
0x14f4   :  { %v2018_v57 = vpack.c.bf16 %v2017_v53, %v2017_v53 }
0x14f5   :  { %2145 = vmatpush1.bf16.msra.mxu0 %v5483_v63 }
0x14f6   :  { %2146 = vmatprep.subr.bf16.mxu0 %v5486_v3  ;;  %v2065_v45 = vrot.slane %v2018_v57, 1 }
0x14f8   :  { %4296 = vmatmul.mubr.msk.bf16.vlgmr.msra.gmra.mrb[52].mxu1 %vm735_vm7, %v2065_v45 }
0x14f9   :  { %2147 = vmatpush1.bf16.msra.mxu0 %v5492_v6  ;;  %2230 = vmatpush1.bf16.msra.mxu1 %v5548_v55 }
0x14fa   :  { %2148 = vmatprep.subr.bf16.mxu0 %v5496_v8  ;;  %2261 = vmatprep.mubr.bf16.mxu1 %v5072_v56 }
0x14fb   :  { %2231 = vmatprep.subr.bf16.mxu1 %v5553_v9 }
0x14fd   :  { %2149 = vmatpush1.bf16.msra.mxu0 %v5500_v31  ;;  %2232 = vmatpush1.bf16.msra.mxu1 %v5560_v11 }
0x14fe   :  { %2275 = vmatprep.subr.bf16.mxu0 %v5556_v59  ;;  %2233 = vmatprep.subr.bf16.mxu1 %v5563_v61 }
0x1500   :  { %4299 = vmatmul.mubr.msk.bf16.vlgmr.msra.gmra.mrb[56].mxu0 %vm735_vm7, %v2065_v45 }
0x1501   :  { %2276 = vmatpush1.bf16.msra.mxu0 %v5566_v35  ;;  %2307 = vmatprep.mubr.bf16.mxu0 %v5072_v56 }
0x1502   :  { %2277 = vmatprep.subr.bf16.mxu0 %v5569_v1  ;;  %2234 = vmatpush1.bf16.msra.mxu1 %v5573_v12 }
0x1503   :  { %2235 = vmatprep.subr.bf16.mxu1 %v5576_v14 }
0x1505   :  { %2278 = vmatpush1.bf16.msra.mxu0 %v5579_v16 }
0x1506   :  { %2279 = vmatprep.subr.bf16.mxu0 %v5582_v58  ;;  %2236 = vmatpush1.bf16.msra.mxu1 %v5585_v33 }
0x1507   :  { %2348 = vmatprep.subr.bf16.mxu1 %v5513_v36 }
0x1509   :  { %2280 = vmatpush1.bf16.msra.mxu0 %v5589_v2 }
0x150a   :  { %2281 = vmatprep.subr.bf16.mxu0 %v5592_v60 }
0x150d   :  { %2282 = vmatpush1.bf16.msra.mxu0 %v5595_v20 }
0x150e   :  { %2435 = vmatprep.subr.bf16.mxu0 %v5598_v62 }
0x15c3   :  { %v2057_v32 = vpop.f32.mrb[52].mxu0 }
0x15c4   :  { %v2059_v47 = vpop.f32.mrb[53].mxu0 }
0x15c5   :  { %v2061_v49 = vpop.f32.mrb[54].mxu0 }
0x15c6   :  { %v2062_v50 = vpop.f32.mrb[55].mxu0 }
0x15cb   :  { %v2103_v34 = vpop.f32.mrb[52].mxu1 }
0x15cc   :  { %v2104_v51 = vadd.f32 %v2103_v34, %v2057_v32  ;;  %v2105_v52 = vpop.f32.mrb[53].mxu1 }
0x15cd   :  { %v2106_v54 = vadd.f32 %v2105_v52, %v2059_v47  ;;  %v2107_v44 = vpop.f32.mrb[54].mxu1 }
0x15ce   :  { %v2108_v13 = vpop.f32.mrb[55].mxu1  ;;  %v2110_v38 = vadd.f32 %v2104_v51, %v5316_v0  ;;  %v2205_v44 = vrot.slane %v5534_v24, 6 }
0x15cf   :  { %v2111_v7 = vadd.f32 %v2106_v54, %v5308_v18 }
0x15d0   :  { %v4297_v40 = vmul.f32 -1.442695, %v2110_v38 }
0x15d1   :  { %4679 = vtanh.f32 %v2111_v7 }
0x15d3   :  { %v2176_v22 = vpop.f32.mrb[56].mxu0 }
0x15d4   :  { %v2178_v17 = vpop.f32.mrb[57].mxu0  ;;  %v2185_v39 = vrot.slane %v2176_v22, 4 }
0x15d5   :  { %v2186_v27 = vrot.slane %v2178_v17, 4  ;;  %v2180_v4 = vpop.f32.mrb[58].mxu0 }
0x15d6   :  { %v2181_v30 = vpop.f32.mrb[59].mxu0  ;;  %v2189_v41 = vadd.f32 %v2185_v39, %v5200_v15 }
0x15d7   :  { %v2190_v5 = vadd.f32 %v2186_v27, %v5202_v10 }
0x15d8   :  { %v4300_v42 = vmul.f32 -1.442695, %v2189_v41 }
0x15d9   :  { %4681 = vtanh.f32 %v2190_v5  ;;  %v4301_v30 = vmul.f32 -1.442695, %v2190_v5 }
0x15da   :  { %4683 = vpow2.f32 %v4297_v40 }
0x15db   :  { %v4680_v37 = vpop.eup %4679  ;;  %4685 = vpow2.f32 %v4300_v42 }
0x15dc   :  { %2127 = vrot.lane.b32.xlu1 %v4680_v37, %s5071_s26 }
0x15e3   :  { %v4682_v48 = vpop.eup %4681 }
0x15e4   :  { %2209 = vrot.lane.b32.xlu0 %v4682_v48, %s5071_s26  ;;  %v4684_v43 = vpop.eup %4683 }
0x15e5   :  { %v2118_v46 = vadd.f32 1.0, %v4684_v43  ;;  %v4686_v53 = vpop.eup %4685 }
0x15e6   :  { %v2197_v57 = vadd.f32 1.0, %v4686_v53 }
0x15e7   :  { %4687 = vrcp.f32 %v2118_v46 }
0x15e8   :  { %4689 = vrcp.f32 %v2197_v57 }
0x15f1   :  { %v4688_v45 = vpop.eup %4687 }
0x15f2   :  { %v4690_v49 = vpop.eup %4689  ;;  %v2125_v51 = vmul.f32 %v4688_v45, %v5530_v28  ;;  %v4298_v28 = vmul.f32 -1.442695, %v2111_v7 }
0x15f3   :  { %v2207_v13 = vmul.f32 %v4690_v49, %v2205_v44 }
0x164e   :  { %v2128_v32 = vpop.permute.xlu1 %2127 }
0x164f   :  { %v2130_v47 = vmul.f32 %v4688_v45, %v2128_v32 }
0x1651   :  { %2132 = vrot.lane.b32.xlu1 %v2130_v47, %s5071_s26 }
0x1656   :  { %v2210_v50 = vpop.permute.xlu0 %2209 }
0x1657   :  { %v2212_v34 = vmul.f32 %v4690_v49, %v2210_v50 }
0x1659   :  { %2214 = vrot.lane.b32.xlu0 %v2212_v34, %s5071_s26 }
0x16c3   :  { %v2133_v52 = vpop.permute.xlu1 %2132 }
0x16c4   :  { %v5610_v54 = vadd.f32 %v2133_v52, %v2125_v51 }
0x16c6   :  { %4691 = vtanh.f32 %v5610_v54 }
0x16cb   :  { %v2215_v22 = vpop.permute.xlu0 %2214 }
0x16cc   :  { %v5614_v17 = vadd.f32 %v2215_v22, %v2207_v13 }
0x16ce   :  { %4693 = vtanh.f32 %v5614_v17 }
0x16cf   :  { %4695 = vpow2.f32 %v4298_v28 }
0x16d0   :  { %v4692_v27 = vpop.eup %4691  ;;  %4697 = vpow2.f32 %v4301_v30 }
0x16d1   :  { %2138 = vrot.lane.b32.xlu1 %v4692_v27, %s5071_s26 }
0x16d8   :  { %v4694_v4 = vpop.eup %4693 }
0x16d9   :  { %2220 = vrot.lane.b32.xlu0 %v4694_v4, %s5071_s26  ;;  %v4696_v37 = vpop.eup %4695 }
0x16da   :  { %v2119_v24 = vadd.f32 1.0, %v4696_v37  ;;  %v4698_v48 = vpop.eup %4697 }
0x16db   :  { %v2198_v38 = vadd.f32 1.0, %v4698_v48 }
0x16dc   :  { %4699 = vrcp.f32 %v2119_v24 }
0x16dd   :  { %4701 = vrcp.f32 %v2198_v38 }
0x16e6   :  { %v4700_v39 = vpop.eup %4699 }
0x16e7   :  { %v4702_v43 = vpop.eup %4701 }
0x1743   :  { %v2139_v40 = vpop.permute.xlu1 %2138 }
0x1744   :  { %v2141_v41 = vmul.f32 %v4700_v39, %v2139_v40 }
0x1746   :  { %v2225_v42 = vpack.c.bf16 %v2141_v41, %v2141_v41 }
0x1748   :  { %4302 = vmatmul.mubr.msk.bf16.vlgmr.msra.gmra.mrb[56].mxu1 %vm735_vm7, %v2225_v42 }
0x1749   :  { %2349 = vmatpush1.bf16.msra.mxu1 %v5476_v29  ;;  %2380 = vmatprep.mubr.bf16.mxu1 %v5072_v56 }
0x174a   :  { %2350 = vmatprep.subr.bf16.mxu1 %v5480_v26 }
0x174b   :  { %v2221_v46 = vpop.permute.xlu0 %2220 }
0x174c   :  { %v2223_v7 = vmul.f32 %v4702_v43, %v2221_v46 }
0x174d   :  { %2351 = vmatpush1.bf16.msra.mxu1 %v5483_v63 }
0x174e   :  { %v2224_v5 = vpack.c.bf16 %v2223_v7, %v2223_v7  ;;  %2352 = vmatprep.subr.bf16.mxu1 %v5486_v3 }
0x1750   :  { %v2271_v53 = vrot.slane %v2224_v5, 2 }
0x1751   :  { %2353 = vmatpush1.bf16.msra.mxu1 %v5492_v6 }
0x1752   :  { %4303 = vmatmul.mubr.msk.bf16.vlgmr.msra.gmra.mrb[60].mxu0 %vm735_vm7, %v2271_v53  ;;  %2354 = vmatprep.subr.bf16.mxu1 %v5496_v8 }
0x1753   :  { %2436 = vmatpush1.bf16.msra.mxu0 %v5548_v55  ;;  %2467 = vmatprep.mubr.bf16.mxu0 %v5072_v56 }
0x1754   :  { %2437 = vmatprep.subr.bf16.mxu0 %v5553_v9 }
0x1755   :  { %2355 = vmatpush1.bf16.msra.mxu1 %v5500_v31 }
0x1756   :  { %2481 = vmatprep.subr.bf16.mxu1 %v5556_v59 }
0x1757   :  { %2438 = vmatpush1.bf16.msra.mxu0 %v5560_v11 }
0x1758   :  { %2439 = vmatprep.subr.bf16.mxu0 %v5563_v61  ;;  %4306 = vmatmul.mubr.msk.bf16.vlgmr.msra.gmra.mrb[60].mxu1 %vm735_vm7, %v2271_v53 }
0x1759   :  { %2482 = vmatpush1.bf16.msra.mxu1 %v5566_v35  ;;  %2513 = vmatprep.mubr.bf16.mxu1 %v5072_v56 }
0x175a   :  { %2483 = vmatprep.subr.bf16.mxu1 %v5569_v1 }
0x175b   :  { %2440 = vmatpush1.bf16.msra.mxu0 %v5573_v12 }
0x175c   :  { %2441 = vmatprep.subr.bf16.mxu0 %v5576_v14 }
0x175d   :  { %2484 = vmatpush1.bf16.msra.mxu1 %v5579_v16 }
0x175e   :  { %2485 = vmatprep.subr.bf16.mxu1 %v5582_v58 }
0x175f   :  { %2442 = vmatpush1.bf16.msra.mxu0 %v5585_v33 }
0x1760   :  { %2554 = vmatprep.subr.bf16.mxu0 %v5513_v36 }
0x1761   :  { %2486 = vmatpush1.bf16.msra.mxu1 %v5589_v2 }
0x1762   :  { %2487 = vmatprep.subr.bf16.mxu1 %v5592_v60 }
0x1765   :  { %2488 = vmatpush1.bf16.msra.mxu1 %v5595_v20 }
0x1766   :  { %2635 = vmatprep.subr.bf16.mxu1 %v5598_v62 }
0x181b   :  { %v2263_v57 = vpop.f32.mrb[56].mxu1 }
0x181c   :  { %v2265_v45 = vpop.f32.mrb[57].mxu1 }
0x181d   :  { %v2267_v32 = vpop.f32.mrb[58].mxu1 }
0x181e   :  { %v2268_v47 = vpop.f32.mrb[59].mxu1 }
0x1825   :  { %v2309_v49 = vpop.f32.mrb[60].mxu0 }
0x1826   :  { %v2310_v50 = vadd.f32 %v2309_v49, %v2263_v57  ;;  %v2311_v34 = vpop.f32.mrb[61].mxu0 }
0x1827   :  { %v2312_v51 = vadd.f32 %v2311_v34, %v2265_v45  ;;  %v2313_v52 = vpop.f32.mrb[62].mxu0  ;;  %v2411_v34 = vrot.slane %v5614_v17, 6 }
0x1828   :  { %v2314_v44 = vpop.f32.mrb[63].mxu0  ;;  %v2316_v38 = vadd.f32 %v2310_v50, %v5316_v0 }
0x1829   :  { %v2317_v13 = vadd.f32 %v2312_v51, %v5308_v18 }
0x182a   :  { %v4304_v39 = vmul.f32 -1.442695, %v2316_v38 }
0x182b   :  { %4703 = vtanh.f32 %v2317_v13  ;;  %v2382_v22 = vpop.f32.mrb[60].mxu1 }
0x182c   :  { %v2384_v27 = vpop.f32.mrb[61].mxu1  ;;  %v2391_v40 = vrot.slane %v2382_v22, 2 }
0x182d   :  { %v2392_v4 = vrot.slane %v2384_v27, 2  ;;  %v2386_v28 = vpop.f32.mrb[62].mxu1 }
0x182e   :  { %v2387_v30 = vpop.f32.mrb[63].mxu1  ;;  %v2395_v41 = vadd.f32 %v2391_v40, %v5200_v15 }
0x182f   :  { %v2396_v37 = vadd.f32 %v2392_v4, %v5202_v10 }
0x1830   :  { %v4307_v42 = vmul.f32 -1.442695, %v2395_v41 }
0x1831   :  { %4705 = vtanh.f32 %v2396_v37  ;;  %v4308_v4 = vmul.f32 -1.442695, %v2396_v37 }
0x1832   :  { %4707 = vpow2.f32 %v4304_v39 }
0x1833   :  { %4709 = vpow2.f32 %v4307_v42 }
0x1835   :  { %v4704_v24 = vpop.eup %4703 }
0x1836   :  { %2333 = vrot.lane.b32.xlu0 %v4704_v24, %s5071_s26 }
0x183b   :  { %v4706_v48 = vpop.eup %4705 }
0x183c   :  { %2415 = vrot.lane.b32.xlu1 %v4706_v48, %s5071_s26  ;;  %v4708_v43 = vpop.eup %4707 }
0x183d   :  { %v2324_v46 = vadd.f32 1.0, %v4708_v43  ;;  %v4710_v10 = vpop.eup %4709 }
0x183e   :  { %v2403_v7 = vadd.f32 1.0, %v4710_v10 }
0x183f   :  { %4711 = vrcp.f32 %v2324_v46 }
0x1840   :  { %4713 = vrcp.f32 %v2403_v7 }
0x1849   :  { %v4712_v5 = vpop.eup %4711 }
0x184a   :  { %v4714_v45 = vpop.eup %4713  ;;  %v2331_v15 = vmul.f32 %v4712_v5, %v5610_v54  ;;  %v4305_v54 = vmul.f32 -1.442695, %v2317_v13 }
0x184b   :  { %v2413_v51 = vmul.f32 %v4714_v45, %v2411_v34 }
0x18a8   :  { %v2334_v53 = vpop.permute.xlu0 %2333 }
0x18a9   :  { %v2336_v57 = vmul.f32 %v4712_v5, %v2334_v53 }
0x18ab   :  { %2338 = vrot.lane.b32.xlu0 %v2336_v57, %s5071_s26 }
0x18ae   :  { %v2416_v32 = vpop.permute.xlu1 %2415 }
0x18af   :  { %v2418_v47 = vmul.f32 %v4714_v45, %v2416_v32 }
0x18b1   :  { %2420 = vrot.lane.b32.xlu1 %v2418_v47, %s5071_s26 }
0x191d   :  { %v2339_v49 = vpop.permute.xlu0 %2338 }
0x191e   :  { %v5658_v50 = vadd.f32 %v2339_v49, %v2331_v15 }
0x1920   :  { %4715 = vtanh.f32 %v5658_v50 }
0x1923   :  { %v2421_v52 = vpop.permute.xlu1 %2420 }
0x1924   :  { %v5662_v44 = vadd.f32 %v2421_v52, %v2413_v51 }
0x1926   :  { %4717 = vtanh.f32 %v5662_v44 }
0x1927   :  { %4719 = vpow2.f32 %v4305_v54 }
0x1928   :  { %4721 = vpow2.f32 %v4308_v4 }
0x192a   :  { %v4716_v22 = vpop.eup %4715 }
0x192b   :  { %2344 = vrot.lane.b32.xlu0 %v4716_v22, %s5071_s26 }
0x1930   :  { %v4718_v27 = vpop.eup %4717 }
0x1931   :  { %2426 = vrot.lane.b32.xlu1 %v4718_v27, %s5071_s26  ;;  %v4720_v28 = vpop.eup %4719 }
0x1932   :  { %v2325_v30 = vadd.f32 1.0, %v4720_v28  ;;  %v4722_v17 = vpop.eup %4721 }
0x1933   :  { %v2404_v24 = vadd.f32 1.0, %v4722_v17 }
0x1934   :  { %4723 = vrcp.f32 %v2325_v30 }
0x1935   :  { %4725 = vrcp.f32 %v2404_v24 }
0x193e   :  { %v4724_v48 = vpop.eup %4723 }
0x193f   :  { %v4726_v13 = vpop.eup %4725 }
0x199d   :  { %v2345_v38 = vpop.permute.xlu0 %2344 }
0x199e   :  { %v2347_v39 = vmul.f32 %v4724_v48, %v2345_v38 }
0x19a0   :  { %v2431_v40 = vpack.c.bf16 %v2347_v39, %v2347_v39 }
0x19a2   :  { %4309 = vmatmul.mubr.msk.bf16.vlgmr.msra.gmra.mrb[64].mxu0 %vm735_vm7, %v2431_v40 }
0x19a3   :  { %2555 = vmatpush1.bf16.msra.mxu0 %v5476_v29  ;;  %2586 = vmatprep.mubr.bf16.mxu0 %v5072_v56  ;;  %v2427_v37 = vpop.permute.xlu1 %2426 }
0x19a4   :  { %2556 = vmatprep.subr.bf16.mxu0 %v5480_v26  ;;  %v2429_v41 = vmul.f32 %v4726_v13, %v2427_v37 }
0x19a6   :  { %v2430_v42 = vpack.c.bf16 %v2429_v41, %v2429_v41 }
0x19a7   :  { %2557 = vmatpush1.bf16.msra.mxu0 %v5483_v63 }
0x19a8   :  { %2558 = vmatprep.subr.bf16.mxu0 %v5486_v3  ;;  %v2477_v43 = vrot.slane %v2430_v42, 3 }
0x19aa   :  { %4310 = vmatmul.mubr.msk.bf16.vlgmr.msra.gmra.mrb[64].mxu1 %vm735_vm7, %v2477_v43 }
0x19ab   :  { %2559 = vmatpush1.bf16.msra.mxu0 %v5492_v6  ;;  %2636 = vmatpush1.bf16.msra.mxu1 %v5548_v55 }
0x19ac   :  { %2560 = vmatprep.subr.bf16.mxu0 %v5496_v8  ;;  %2667 = vmatprep.mubr.bf16.mxu1 %v5072_v56 }
0x19ad   :  { %2637 = vmatprep.subr.bf16.mxu1 %v5553_v9 }
0x19af   :  { %2561 = vmatpush1.bf16.msra.mxu0 %v5500_v31  ;;  %2638 = vmatpush1.bf16.msra.mxu1 %v5560_v11 }
0x19b0   :  { %2679 = vmatprep.subr.bf16.mxu0 %v5556_v59  ;;  %2639 = vmatprep.subr.bf16.mxu1 %v5563_v61 }
0x19b2   :  { %4313 = vmatmul.mubr.msk.bf16.vlgmr.msra.gmra.mrb[68].mxu0 %vm735_vm7, %v2477_v43 }
0x19b3   :  { %2680 = vmatpush1.bf16.msra.mxu0 %v5566_v35  ;;  %2711 = vmatprep.mubr.bf16.mxu0 %v5072_v56 }
0x19b4   :  { %2681 = vmatprep.subr.bf16.mxu0 %v5569_v1  ;;  %2640 = vmatpush1.bf16.msra.mxu1 %v5573_v12 }
0x19b5   :  { %2641 = vmatprep.subr.bf16.mxu1 %v5576_v14 }
0x19b7   :  { %2682 = vmatpush1.bf16.msra.mxu0 %v5579_v16 }
0x19b8   :  { %2683 = vmatprep.subr.bf16.mxu0 %v5582_v58  ;;  %2642 = vmatpush1.bf16.msra.mxu1 %v5585_v33 }
0x19b9   :  { %2752 = vmatprep.subr.bf16.mxu1 %v5513_v36 }
0x19bb   :  { %2684 = vmatpush1.bf16.msra.mxu0 %v5589_v2 }
0x19bc   :  { %2685 = vmatprep.subr.bf16.mxu0 %v5592_v60 }
0x19bf   :  { %2686 = vmatpush1.bf16.msra.mxu0 %v5595_v20 }
0x19c0   :  { %2839 = vmatprep.subr.bf16.mxu0 %v5598_v62 }
0x1a75   :  { %v2469_v46 = vpop.f32.mrb[64].mxu0 }
0x1a76   :  { %v2471_v10 = vpop.f32.mrb[65].mxu0 }
0x1a77   :  { %v2473_v7 = vpop.f32.mrb[66].mxu0 }
0x1a78   :  { %v2474_v5 = vpop.f32.mrb[67].mxu0  ;;  %v2611_v7 = vrot.slane %v5662_v44, 6 }
0x1a7d   :  { %v2515_v53 = vpop.f32.mrb[64].mxu1 }
0x1a7e   :  { %v2516_v57 = vadd.f32 %v2515_v53, %v2469_v46  ;;  %v2517_v45 = vpop.f32.mrb[65].mxu1 }
0x1a7f   :  { %v2518_v32 = vadd.f32 %v2517_v45, %v2471_v10  ;;  %v2519_v47 = vpop.f32.mrb[66].mxu1 }
0x1a80   :  { %v2520_v15 = vpop.f32.mrb[67].mxu1  ;;  %v2522_v28 = vadd.f32 %v2516_v57, %v5316_v0 }
0x1a81   :  { %v2523_v49 = vadd.f32 %v2518_v32, %v5308_v18 }
0x1a82   :  { %v4311_v17 = vmul.f32 -1.442695, %v2522_v28 }
0x1a83   :  { %4727 = vtanh.f32 %v2523_v49 }
0x1a85   :  { %v2588_v34 = vpop.f32.mrb[68].mxu0 }
0x1a86   :  { %v2590_v51 = vpop.f32.mrb[69].mxu0  ;;  %v2595_v30 = vadd.f32 %v2588_v34, %v5208_v19 }
0x1a87   :  { %v2596_v52 = vadd.f32 %v2590_v51, %v5210_v21  ;;  %v2592_v22 = vpop.f32.mrb[70].mxu0 }
0x1a88   :  { %v2593_v27 = vpop.f32.mrb[71].mxu0  ;;  %v4314_v24 = vmul.f32 -1.442695, %v2595_v30 }
0x1a89   :  { %4729 = vtanh.f32 %v2596_v52  ;;  %v4315_v34 = vmul.f32 -1.442695, %v2596_v52 }
0x1a8a   :  { %4731 = vpow2.f32 %v4311_v17 }
0x1a8b   :  { %4733 = vpow2.f32 %v4314_v24 }
0x1a8d   :  { %v4728_v54 = vpop.eup %4727 }
0x1a8e   :  { %2539 = vrot.lane.b32.xlu1 %v4728_v54, %s5071_s26 }
0x1a93   :  { %v4730_v4 = vpop.eup %4729 }
0x1a94   :  { %2615 = vrot.lane.b32.xlu0 %v4730_v4, %s5071_s26  ;;  %v4732_v48 = vpop.eup %4731 }
0x1a95   :  { %v4734_v38 = vpop.eup %4733  ;;  %v2530_v39 = vadd.f32 1.0, %v4732_v48 }
0x1a96   :  { %v2603_v40 = vadd.f32 1.0, %v4734_v38 }
0x1a97   :  { %4735 = vrcp.f32 %v2530_v39 }
0x1a98   :  { %4737 = vrcp.f32 %v2603_v40 }
0x1aa1   :  { %v4736_v13 = vpop.eup %4735 }
0x1aa2   :  { %v4738_v42 = vpop.eup %4737  ;;  %v2537_v10 = vmul.f32 %v4736_v13, %v5658_v50  ;;  %v4312_v50 = vmul.f32 -1.442695, %v2523_v49 }
0x1aa3   :  { %v2613_v57 = vmul.f32 %v4738_v42, %v2611_v7 }
0x1b00   :  { %v2540_v37 = vpop.permute.xlu1 %2539 }
0x1b01   :  { %v2542_v41 = vmul.f32 %v4736_v13, %v2540_v37 }
0x1b03   :  { %2544 = vrot.lane.b32.xlu1 %v2542_v41, %s5071_s26 }
0x1b06   :  { %v2616_v43 = vpop.permute.xlu0 %2615 }
0x1b07   :  { %v2618_v46 = vmul.f32 %v4738_v42, %v2616_v43 }
0x1b09   :  { %2620 = vrot.lane.b32.xlu0 %v2618_v46, %s5071_s26 }
0x1b75   :  { %v2545_v5 = vpop.permute.xlu1 %2544 }
0x1b76   :  { %v5707_v53 = vadd.f32 %v2545_v5, %v2537_v10 }
0x1b78   :  { %4739 = vtanh.f32 %v5707_v53 }
0x1b7b   :  { %v2621_v45 = vpop.permute.xlu0 %2620 }
0x1b7c   :  { %v5710_v32 = vadd.f32 %v2621_v45, %v2613_v57 }
0x1b7e   :  { %4741 = vtanh.f32 %v5710_v32 }
0x1b7f   :  { %4743 = vpow2.f32 %v4312_v50 }
0x1b80   :  { %4745 = vpow2.f32 %v4315_v34 }
0x1b82   :  { %v4740_v47 = vpop.eup %4739 }
0x1b83   :  { %2550 = vrot.lane.b32.xlu1 %v4740_v47, %s5071_s26 }
0x1b88   :  { %v4742_v15 = vpop.eup %4741 }
0x1b89   :  { %2626 = vrot.lane.b32.xlu0 %v4742_v15, %s5071_s26  ;;  %v4744_v44 = vpop.eup %4743 }
0x1b8a   :  { %v4746_v51 = vpop.eup %4745  ;;  %v2531_v22 = vadd.f32 1.0, %v4744_v44 }
0x1b8b   :  { %v2604_v27 = vadd.f32 1.0, %v4746_v51 }
0x1b8c   :  { %4747 = vrcp.f32 %v2531_v22 }
0x1b8d   :  { %4749 = vrcp.f32 %v2604_v27 }
0x1b96   :  { %v4748_v54 = vpop.eup %4747 }
0x1b97   :  { %v4750_v30 = vpop.eup %4749 }
0x1bf5   :  { %v2551_v4 = vpop.permute.xlu1 %2550 }
0x1bf6   :  { %v2553_v28 = vmul.f32 %v4748_v54, %v2551_v4 }
0x1bf8   :  { %v2631_v17 = vpack.c.bf16 %v2553_v28, %v2553_v28 }
0x1bfa   :  { %4316 = vmatmul.mubr.msk.bf16.vlgmr.msra.gmra.mrb[68].mxu1 %vm735_vm7, %v2631_v17 }
0x1bfb   :  { %v2627_v24 = vpop.permute.xlu0 %2626  ;;  %2753 = vmatpush1.bf16.msra.mxu1 %v5476_v29  ;;  %2784 = vmatprep.mubr.bf16.mxu1 %v5072_v56 }
0x1bfc   :  { %v2629_v48 = vmul.f32 %v4750_v30, %v2627_v24  ;;  %2754 = vmatprep.subr.bf16.mxu1 %v5480_v26 }
0x1bfe   :  { %v2630_v49 = vpack.c.bf16 %v2629_v48, %v2629_v48  ;;  %v2815_v48 = vrot.slane %v5710_v32, 6 }
0x1bff   :  { %2755 = vmatpush1.bf16.msra.mxu1 %v5483_v63 }
0x1c00   :  { %4317 = vmatmul.mubr.msk.bf16.vlgmr.msra.gmra.mrb[72].mxu0 %vm735_vm7, %v2630_v49  ;;  %2756 = vmatprep.subr.bf16.mxu1 %v5486_v3 }
0x1c01   :  { %2840 = vmatpush1.bf16.msra.mxu0 %v5548_v55  ;;  %2871 = vmatprep.mubr.bf16.mxu0 %v5072_v56 }
0x1c02   :  { %2841 = vmatprep.subr.bf16.mxu0 %v5553_v9 }
0x1c03   :  { %2757 = vmatpush1.bf16.msra.mxu1 %v5492_v6 }
0x1c04   :  { %2758 = vmatprep.subr.bf16.mxu1 %v5496_v8 }
0x1c05   :  { %2842 = vmatpush1.bf16.msra.mxu0 %v5560_v11 }
0x1c06   :  { %2843 = vmatprep.subr.bf16.mxu0 %v5563_v61 }
0x1c07   :  { %2759 = vmatpush1.bf16.msra.mxu1 %v5500_v31 }
0x1c08   :  { %2885 = vmatprep.subr.bf16.mxu1 %v5556_v59 }
0x1c09   :  { %2844 = vmatpush1.bf16.msra.mxu0 %v5573_v12 }
0x1c0a   :  { %2845 = vmatprep.subr.bf16.mxu0 %v5576_v14  ;;  %4320 = vmatmul.mubr.msk.bf16.vlgmr.msra.gmra.mrb[72].mxu1 %vm735_vm7, %v2630_v49 }
0x1c0b   :  { %2886 = vmatpush1.bf16.msra.mxu1 %v5566_v35  ;;  %2917 = vmatprep.mubr.bf16.mxu1 %v5072_v56 }
0x1c0c   :  { %2887 = vmatprep.subr.bf16.mxu1 %v5569_v1 }
0x1c0d   :  { %2846 = vmatpush1.bf16.msra.mxu0 %v5585_v33 }
0x1c0e   :  { %2958 = vmatprep.subr.bf16.mxu0 %v5513_v36 }
0x1c0f   :  { %2888 = vmatpush1.bf16.msra.mxu1 %v5579_v16 }
0x1c10   :  { %2889 = vmatprep.subr.bf16.mxu1 %v5582_v58 }
0x1c13   :  { %2890 = vmatpush1.bf16.msra.mxu1 %v5589_v2 }
0x1c14   :  { %2891 = vmatprep.subr.bf16.mxu1 %v5592_v60 }
0x1c17   :  { %2892 = vmatpush1.bf16.msra.mxu1 %v5595_v20 }
0x1c18   :  { %3045 = vmatprep.subr.bf16.mxu1 %v5598_v62 }
0x1ccd   :  { %v2669_v29 = vpop.f32.mrb[68].mxu1 }
0x1cce   :  { %v2671_v26 = vpop.f32.mrb[69].mxu1 }
0x1ccf   :  { %v2673_v63 = vpop.f32.mrb[70].mxu1 }
0x1cd0   :  { %v2674_v3 = vpop.f32.mrb[71].mxu1 }
0x1cd3   :  { %v2713_v6 = vpop.f32.mrb[72].mxu0 }
0x1cd4   :  { %v2714_v8 = vadd.f32 %v2713_v6, %v2669_v29  ;;  %v2715_v31 = vpop.f32.mrb[73].mxu0 }
0x1cd5   :  { %v2716_v36 = vadd.f32 %v2715_v31, %v2671_v26  ;;  %v2717_v52 = vpop.f32.mrb[74].mxu0 }
0x1cd6   :  { %v2718_v38 = vpop.f32.mrb[75].mxu0  ;;  %v2720_v7 = vadd.f32 %v2714_v8, %v5316_v0 }
0x1cd7   :  { %v2721_v39 = vadd.f32 %v2716_v36, %v5308_v18 }
0x1cd8   :  { %v4318_v5 = vmul.f32 -1.442695, %v2720_v7  ;;  %v5777_v7 = vld [vmem:[#allocation4 + $0xd0] ss:$8 sps:$4 sm:$0xff]  }
0x1cd9   :  { %4751 = vtanh.f32 %v2721_v39 }
0x1cdd   :  { %v2786_v40 = vpop.f32.mrb[72].mxu1 }
0x1cde   :  { %v2788_v13 = vpop.f32.mrb[73].mxu1  ;;  %v2795_v57 = vrot.slane %v2786_v40, 6 }
0x1cdf   :  { %v2796_v37 = vrot.slane %v2788_v13, 6  ;;  %v2790_v41 = vpop.f32.mrb[74].mxu1 }
0x1ce0   :  { %v2791_v43 = vpop.f32.mrb[75].mxu1  ;;  %v2799_v45 = vadd.f32 %v2795_v57, %v5208_v19  ;;  %v5771_v41 = vld [vmem:[#allocation4 + $0xc0] ss:$8 sps:$4 sm:$0xff]  }
0x1ce1   :  { %v2800_v46 = vadd.f32 %v2796_v37, %v5210_v21  ;;  %v5764_v37 = vld [vmem:[#allocation4 + $0xb0] ss:$8 sps:$4 sm:$0xff]  }
0x1ce2   :  { %v4321_v47 = vmul.f32 -1.442695, %v2799_v45 }
0x1ce3   :  { %v4752_v42 = vpop.eup %4751  ;;  %4753 = vtanh.f32 %v2800_v46  ;;  %v4322_v6 = vmul.f32 -1.442695, %v2800_v46 }
0x1ce4   :  { %2737 = vrot.lane.b32.xlu1 %v4752_v42, %s5071_s26  ;;  %4755 = vpow2.f32 %v4318_v5  ;;  %v5774_v42 = vld [vmem:[#allocation4 + $0xd4] ss:$8 sps:$4 sm:$0xff]   ;;  %v5780_v5 = vld [vmem:[#allocation4 + $0xe4] ss:$8 sps:$4 sm:$0xff]  }
0x1ce5   :  { %4757 = vpow2.f32 %v4321_v47  ;;  %v5783_v47 = vld [vmem:[#allocation4 + $0xe0] ss:$8 sps:$4 sm:$0xff]  }
0x1ced   :  { %v4754_v10 = vpop.eup %4753 }
0x1cee   :  { %2819 = vrot.lane.b32.xlu0 %v4754_v10, %s5071_s26  ;;  %v4756_v15 = vpop.eup %4755 }
0x1cef   :  { %v2728_v50 = vadd.f32 1.0, %v4756_v15  ;;  %v4758_v34 = vpop.eup %4757 }
0x1cf0   :  { %v2807_v44 = vadd.f32 1.0, %v4758_v34 }
0x1cf1   :  { %4759 = vrcp.f32 %v2728_v50 }
0x1cf2   :  { %4761 = vrcp.f32 %v2807_v44 }
0x1cfb   :  { %v4760_v51 = vpop.eup %4759 }
0x1cfc   :  { %v4762_v54 = vpop.eup %4761  ;;  %v2735_v30 = vmul.f32 %v4760_v51, %v5707_v53  ;;  %v4319_v53 = vmul.f32 -1.442695, %v2721_v39  ;;  %v5768_v39 = vld [vmem:[#allocation4 + $0xc4] ss:$8 sps:$4 sm:$0xff]  }
0x1cfd   :  { %v2817_v49 = vmul.f32 %v4762_v54, %v2815_v48 }
0x1d56   :  { %v2738_v22 = vpop.permute.xlu1 %2737 }
0x1d57   :  { %v2740_v27 = vmul.f32 %v4760_v51, %v2738_v22 }
0x1d59   :  { %2742 = vrot.lane.b32.xlu1 %v2740_v27, %s5071_s26 }
0x1d60   :  { %v2820_v4 = vpop.permute.xlu0 %2819 }
0x1d61   :  { %v2822_v28 = vmul.f32 %v4762_v54, %v2820_v4 }
0x1d63   :  { %2824 = vrot.lane.b32.xlu0 %v2822_v28, %s5071_s26 }
0x1dcb   :  { %v2743_v17 = vpop.permute.xlu1 %2742 }
0x1dcc   :  { %v5754_v24 = vadd.f32 %v2743_v17, %v2735_v30 }
0x1dce   :  { %4763 = vtanh.f32 %v5754_v24 }
0x1dd5   :  { %v2825_v26 = vpop.permute.xlu0 %2824 }
0x1dd6   :  { %v5758_v63 = vadd.f32 %v2825_v26, %v2817_v49 }
0x1dd8   :  { %v4764_v29 = vpop.eup %4763  ;;  %4765 = vtanh.f32 %v5758_v63 }
0x1dd9   :  { %2748 = vrot.lane.b32.xlu1 %v4764_v29, %s5071_s26  ;;  %4767 = vpow2.f32 %v4319_v53 }
0x1dda   :  { %4769 = vpow2.f32 %v4322_v6 }
0x1de2   :  { %v4766_v3 = vpop.eup %4765 }
0x1de3   :  { %2830 = vrot.lane.b32.xlu0 %v4766_v3, %s5071_s26  ;;  %v4768_v8 = vpop.eup %4767 }
0x1de4   :  { %v2729_v31 = vadd.f32 1.0, %v4768_v8  ;;  %v4770_v32 = vpop.eup %4769 }
0x1de5   :  { %v2808_v36 = vadd.f32 1.0, %v4770_v32 }
0x1de6   :  { %4771 = vrcp.f32 %v2729_v31 }
0x1de7   :  { %4773 = vrcp.f32 %v2808_v36  ;;  %v3021_v36 = vrot.slane %v5758_v63, 6 }
0x1df0   :  { %v4772_v52 = vpop.eup %4771 }
0x1df1   :  { %v4774_v43 = vpop.eup %4773 }
0x1e4b   :  { %v2749_v38 = vpop.permute.xlu1 %2748 }
0x1e4c   :  { %v2751_v40 = vmul.f32 %v4772_v52, %v2749_v38 }
0x1e4e   :  { %v2835_v13 = vpack.c.bf16 %v2751_v40, %v2751_v40 }
0x1e50   :  { %4323 = vmatmul.mubr.msk.bf16.vlgmr.msra.gmra.mrb[76].mxu0 %vm735_vm7, %v2835_v13 }
0x1e51   :  { %2959 = vmatpush1.bf16.msra.mxu0 %v5764_v37  ;;  %2990 = vmatprep.mubr.bf16.mxu0 %v5072_v56 }
0x1e52   :  { %2960 = vmatprep.subr.bf16.mxu0 %v5768_v39 }
0x1e55   :  { %2961 = vmatpush1.bf16.msra.mxu0 %v5771_v41  ;;  %v2831_v46 = vpop.permute.xlu0 %2830 }
0x1e56   :  { %2962 = vmatprep.subr.bf16.mxu0 %v5774_v42  ;;  %v2833_v10 = vmul.f32 %v4774_v43, %v2831_v46 }
0x1e58   :  { %v2834_v57 = vpack.c.bf16 %v2833_v10, %v2833_v10 }
0x1e59   :  { %2963 = vmatpush1.bf16.msra.mxu0 %v5777_v7 }
0x1e5a   :  { %2964 = vmatprep.subr.bf16.mxu0 %v5780_v5  ;;  %v2881_v45 = vrot.slane %v2834_v57, 1 }
0x1e5c   :  { %4324 = vmatmul.mubr.msk.bf16.vlgmr.msra.gmra.mrb[76].mxu1 %vm735_vm7, %v2881_v45 }
0x1e5d   :  { %2965 = vmatpush1.bf16.msra.mxu0 %v5783_v47  ;;  %3046 = vmatpush1.bf16.msra.mxu1 %v5548_v55  ;;  %v5804_v55 = vld [vmem:[#allocation4 + $0xb4] ss:$8 sps:$4 sm:$0xff]  }
0x1e5e   :  { %3091 = vmatprep.subr.bf16.mxu0 %v5556_v59  ;;  %3047 = vmatprep.subr.bf16.mxu1 %v5553_v9 }
0x1e5f   :  { %3077 = vmatprep.mubr.bf16.mxu1 %v5072_v56 }
0x1e60   :  { %4327 = vmatmul.mubr.msk.bf16.vlgmr.msra.gmra.mrb[80].mxu0 %vm735_vm7, %v2881_v45 }
0x1e61   :  { %3092 = vmatpush1.bf16.msra.mxu0 %v5566_v35  ;;  %3123 = vmatprep.mubr.bf16.mxu0 %v5072_v56 }
0x1e62   :  { %3093 = vmatprep.subr.bf16.mxu0 %v5569_v1  ;;  %3048 = vmatpush1.bf16.msra.mxu1 %v5560_v11 }
0x1e63   :  { %3049 = vmatprep.subr.bf16.mxu1 %v5563_v61 }
0x1e65   :  { %3094 = vmatpush1.bf16.msra.mxu0 %v5579_v16 }
0x1e66   :  { %3095 = vmatprep.subr.bf16.mxu0 %v5582_v58  ;;  %3050 = vmatpush1.bf16.msra.mxu1 %v5573_v12 }
0x1e67   :  { %3051 = vmatprep.subr.bf16.mxu1 %v5576_v14 }
0x1e69   :  { %3096 = vmatpush1.bf16.msra.mxu0 %v5589_v2 }
0x1e6a   :  { %3097 = vmatprep.subr.bf16.mxu0 %v5592_v60  ;;  %3052 = vmatpush1.bf16.msra.mxu1 %v5585_v33 }
0x1e6b   :  { %3164 = vmatprep.subr.bf16.mxu1 %v5804_v55 }
0x1e6d   :  { %3098 = vmatpush1.bf16.msra.mxu0 %v5595_v20 }
0x1e6e   :  { %3251 = vmatprep.subr.bf16.mxu0 %v5598_v62 }
0x1f23   :  { %v2873_v9 = vpop.f32.mrb[76].mxu0 }
0x1f24   :  { %v2875_v59 = vpop.f32.mrb[77].mxu0 }
0x1f25   :  { %v2877_v11 = vpop.f32.mrb[78].mxu0 }
0x1f26   :  { %v2878_v61 = vpop.f32.mrb[79].mxu0 }
0x1f2f   :  { %v2919_v35 = vpop.f32.mrb[76].mxu1 }
0x1f30   :  { %v2920_v1 = vadd.f32 %v2919_v35, %v2873_v9  ;;  %v2921_v12 = vpop.f32.mrb[77].mxu1 }
0x1f31   :  { %v2922_v16 = vadd.f32 %v2921_v12, %v2875_v59  ;;  %v2923_v58 = vpop.f32.mrb[78].mxu1 }
0x1f32   :  { %v2924_v33 = vpop.f32.mrb[79].mxu1  ;;  %v2926_v51 = vadd.f32 %v2920_v1, %v5316_v0  ;;  %v5834_v58 = vld [vmem:[#allocation4 + $0x130] ss:$8 sps:$4 sm:$0xff]  }
0x1f33   :  { %v2992_v14 = vpop.f32.mrb[80].mxu0  ;;  %v2927_v50 = vadd.f32 %v2922_v16, %v5308_v18  ;;  %v5843_v33 = vld [vmem:[#allocation4 + $0x140] ss:$8 sps:$4 sm:$0xff]  }
0x1f34   :  { %v2994_v2 = vpop.f32.mrb[81].mxu0  ;;  %v3001_v22 = vrot.slane %v2992_v14, 4  ;;  %v4325_v27 = vmul.f32 -1.442695, %v2926_v51  ;;  %v5870_v51 = vld [vmem:[#allocation4 + $0x100] ss:$8 sps:$4 sm:$0xff]  }
0x1f35   :  { %v3002_v60 = vrot.slane %v2994_v2, 4  ;;  %v2996_v15 = vpop.f32.mrb[82].mxu0  ;;  %4775 = vtanh.f32 %v2927_v50  ;;  %v5839_v2 = vld [vmem:[#allocation4 + $0x144] ss:$8 sps:$4 sm:$0xff]  }
0x1f36   :  { %v2997_v34 = vpop.f32.mrb[83].mxu0  ;;  %v3005_v54 = vadd.f32 %v3001_v22, %v5208_v19  ;;  %v5850_v15 = vld [vmem:[#allocation4 + $0xf4] ss:$8 sps:$4 sm:$0xff]  }
0x1f37   :  { %v3006_v20 = vadd.f32 %v3002_v60, %v5210_v21  ;;  %v5847_v60 = vld [vmem:[#allocation4 + $0x154] ss:$8 sps:$4 sm:$0xff]   ;;  %v5857_v34 = vld [vmem:[#allocation4 + $0x164] ss:$8 sps:$4 sm:$0xff]  }
0x1f38   :  { %v4328_v4 = vmul.f32 -1.442695, %v3005_v54  ;;  %v5874_v22 = vld [vmem:[#allocation4 + $0x114] ss:$8 sps:$4 sm:$0xff]   ;;  %v5880_v54 = vld [vmem:[#allocation4 + $0x124] ss:$8 sps:$4 sm:$0xff]  }
0x1f39   :  { %4777 = vtanh.f32 %v3006_v20  ;;  %v4329_v46 = vmul.f32 -1.442695, %v3006_v20  ;;  %v5860_v20 = vld [vmem:[#allocation4 + $0xf0] ss:$8 sps:$4 sm:$0xff]  }
0x1f3a   :  { %4779 = vpow2.f32 %v4325_v27  ;;  %v5877_v27 = vld [vmem:[#allocation4 + $0x110] ss:$8 sps:$4 sm:$0xff]  }
0x1f3b   :  { %4781 = vpow2.f32 %v4328_v4  ;;  %v5883_v4 = vld [vmem:[#allocation4 + $0x120] ss:$8 sps:$4 sm:$0xff]  }
0x1f3f   :  { %v4776_v62 = vpop.eup %4775 }
0x1f40   :  { %2943 = vrot.lane.b32.xlu1 %v4776_v62, %s5071_s26  ;;  %v5863_v62 = vld [vmem:[#allocation4 + $0x104] ss:$8 sps:$4 sm:$0xff]  }
0x1f43   :  { %v4778_v44 = vpop.eup %4777 }
0x1f44   :  { %3025 = vrot.lane.b32.xlu0 %v4778_v44, %s5071_s26  ;;  %v4780_v28 = vpop.eup %4779  ;;  %v5867_v44 = vld [vmem:[#allocation4 + $0x160] ss:$8 sps:$4 sm:$0xff]  }
0x1f45   :  { %v2934_v30 = vadd.f32 1.0, %v4780_v28  ;;  %v4782_v17 = vpop.eup %4781  ;;  %v5886_v28 = vld [vmem:[#allocation4 + $0x134] ss:$8 sps:$4 sm:$0xff]  }
0x1f46   :  { %v3013_v48 = vadd.f32 1.0, %v4782_v17 }
0x1f47   :  { %4783 = vrcp.f32 %v2934_v30 }
0x1f48   :  { %4785 = vrcp.f32 %v3013_v48 }
0x1f51   :  { %v4784_v49 = vpop.eup %4783 }
0x1f52   :  { %v4786_v3 = vpop.eup %4785  ;;  %v2941_v8 = vmul.f32 %v4784_v49, %v5754_v24  ;;  %v4326_v24 = vmul.f32 -1.442695, %v2927_v50  ;;  %v5854_v50 = vld [vmem:[#allocation4 + $0x150] ss:$8 sps:$4 sm:$0xff]  }
0x1f53   :  { %v3023_v52 = vmul.f32 %v4786_v3, %v3021_v36 }
0x1fb2   :  { %v2944_v29 = vpop.permute.xlu1 %2943 }
0x1fb3   :  { %v2946_v26 = vmul.f32 %v4784_v49, %v2944_v29 }
0x1fb5   :  { %2948 = vrot.lane.b32.xlu1 %v2946_v26, %s5071_s26 }
0x1fb6   :  { %v3026_v53 = vpop.permute.xlu0 %3025 }
0x1fb7   :  { %v3028_v6 = vmul.f32 %v4786_v3, %v3026_v53 }
0x1fb9   :  { %3030 = vrot.lane.b32.xlu0 %v3028_v6, %s5071_s26 }
0x2027   :  { %v2949_v31 = vpop.permute.xlu1 %2948 }
0x2028   :  { %v5818_v32 = vadd.f32 %v2949_v31, %v2941_v8 }
0x202a   :  { %4787 = vtanh.f32 %v5818_v32 }
0x202b   :  { %v3031_v38 = vpop.permute.xlu0 %3030 }
0x202c   :  { %v5822_v40 = vadd.f32 %v3031_v38, %v3023_v52 }
0x202e   :  { %4789 = vtanh.f32 %v5822_v40 }
0x202f   :  { %4791 = vpow2.f32 %v4326_v24 }
0x2030   :  { %4793 = vpow2.f32 %v4329_v46 }
0x2034   :  { %v4788_v13 = vpop.eup %4787 }
0x2035   :  { %2954 = vrot.lane.b32.xlu1 %v4788_v13, %s5071_s26 }
0x2038   :  { %v4790_v43 = vpop.eup %4789 }
0x2039   :  { %3036 = vrot.lane.b32.xlu0 %v4790_v43, %s5071_s26  ;;  %v4792_v10 = vpop.eup %4791 }
0x203a   :  { %v2935_v63 = vadd.f32 1.0, %v4792_v10  ;;  %v4794_v57 = vpop.eup %4793 }
0x203b   :  { %v3014_v45 = vadd.f32 1.0, %v4794_v57 }
0x203c   :  { %4795 = vrcp.f32 %v2935_v63 }
0x203d   :  { %4797 = vrcp.f32 %v3014_v45 }
0x2046   :  { %v4796_v9 = vpop.eup %4795 }
0x2047   :  { %v4798_v35 = vpop.eup %4797 }
0x20a7   :  { %v2955_v59 = vpop.permute.xlu1 %2954 }
0x20a8   :  { %v2957_v11 = vmul.f32 %v4796_v9, %v2955_v59 }
0x20aa   :  { %v3041_v61 = vpack.c.bf16 %v2957_v11, %v2957_v11 }
0x20ab   :  { %v3037_v1 = vpop.permute.xlu0 %3036 }
0x20ac   :  { %4330 = vmatmul.mubr.msk.bf16.vlgmr.msra.gmra.mrb[80].mxu1 %vm735_vm7, %v3041_v61  ;;  %v3039_v12 = vmul.f32 %v4798_v35, %v3037_v1 }
0x20ad   :  { %3165 = vmatpush1.bf16.msra.mxu1 %v5764_v37  ;;  %3196 = vmatprep.mubr.bf16.mxu1 %v5072_v56 }
0x20ae   :  { %3166 = vmatprep.subr.bf16.mxu1 %v5768_v39  ;;  %v3040_v14 = vpack.c.bf16 %v3039_v12, %v3039_v12 }
0x20b0   :  { %v3087_v16 = vrot.slane %v3040_v14, 2 }
0x20b1   :  { %3167 = vmatpush1.bf16.msra.mxu1 %v5771_v41 }
0x20b2   :  { %3168 = vmatprep.subr.bf16.mxu1 %v5774_v42  ;;  %4331 = vmatmul.mubr.msk.bf16.vlgmr.msra.gmra.mrb[84].mxu0 %vm735_vm7, %v3087_v16 }
0x20b3   :  { %3252 = vmatpush1.bf16.msra.mxu0 %v5834_v58  ;;  %3283 = vmatprep.mubr.bf16.mxu0 %v5072_v56 }
0x20b4   :  { %3253 = vmatprep.subr.bf16.mxu0 %v5839_v2 }
0x20b5   :  { %3169 = vmatpush1.bf16.msra.mxu1 %v5777_v7 }
0x20b6   :  { %3170 = vmatprep.subr.bf16.mxu1 %v5780_v5 }
0x20b7   :  { %3254 = vmatpush1.bf16.msra.mxu0 %v5843_v33 }
0x20b8   :  { %3255 = vmatprep.subr.bf16.mxu0 %v5847_v60 }
0x20b9   :  { %3171 = vmatpush1.bf16.msra.mxu1 %v5783_v47 }
0x20ba   :  { %3297 = vmatprep.subr.bf16.mxu1 %v5850_v15 }
0x20bb   :  { %3256 = vmatpush1.bf16.msra.mxu0 %v5854_v50 }
0x20bc   :  { %4334 = vmatmul.mubr.msk.bf16.vlgmr.msra.gmra.mrb[84].mxu1 %vm735_vm7, %v3087_v16  ;;  %3257 = vmatprep.subr.bf16.mxu0 %v5857_v34 }
0x20bd   :  { %3298 = vmatpush1.bf16.msra.mxu1 %v5860_v20  ;;  %3329 = vmatprep.mubr.bf16.mxu1 %v5072_v56 }
0x20be   :  { %3299 = vmatprep.subr.bf16.mxu1 %v5863_v62 }
0x20bf   :  { %3258 = vmatpush1.bf16.msra.mxu0 %v5867_v44 }
0x20c0   :  { %3370 = vmatprep.subr.bf16.mxu0 %v5804_v55 }
0x20c1   :  { %3300 = vmatpush1.bf16.msra.mxu1 %v5870_v51 }
0x20c2   :  { %3301 = vmatprep.subr.bf16.mxu1 %v5874_v22 }
0x20c5   :  { %3302 = vmatpush1.bf16.msra.mxu1 %v5877_v27 }
0x20c6   :  { %3303 = vmatprep.subr.bf16.mxu1 %v5880_v54 }
0x20c9   :  { %3304 = vmatpush1.bf16.msra.mxu1 %v5883_v4 }
0x20ca   :  { %3451 = vmatprep.subr.bf16.mxu1 %v5886_v28 }
0x217f   :  { %v3079_v30 = vpop.f32.mrb[80].mxu1 }
0x2180   :  { %v3081_v17 = vpop.f32.mrb[81].mxu1 }
0x2181   :  { %v3083_v48 = vpop.f32.mrb[82].mxu1 }
0x2182   :  { %v3084_v49 = vpop.f32.mrb[83].mxu1 }
0x2185   :  { %v3125_v29 = vpop.f32.mrb[84].mxu0 }
0x2186   :  { %v3126_v26 = vadd.f32 %v3125_v29, %v3079_v30  ;;  %v3127_v3 = vpop.f32.mrb[85].mxu0  ;;  %v3227_v29 = vrot.slane %v5822_v40, 6 }
0x2187   :  { %v3128_v53 = vadd.f32 %v3127_v3, %v3081_v17  ;;  %v3129_v6 = vpop.f32.mrb[86].mxu0 }
0x2188   :  { %v3130_v8 = vpop.f32.mrb[87].mxu0  ;;  %v3132_v63 = vadd.f32 %v3126_v26, %v5316_v0 }
0x2189   :  { %v3133_v31 = vadd.f32 %v3128_v53, %v5308_v18 }
0x218a   :  { %v4332_v57 = vmul.f32 -1.442695, %v3132_v63 }
0x218b   :  { %4799 = vtanh.f32 %v3133_v31 }
0x218f   :  { %v3198_v36 = vpop.f32.mrb[84].mxu1 }
0x2190   :  { %v3200_v52 = vpop.f32.mrb[85].mxu1  ;;  %v3207_v45 = vrot.slane %v3198_v36, 2 }
0x2191   :  { %v3208_v38 = vrot.slane %v3200_v52, 2  ;;  %v3202_v13 = vpop.f32.mrb[86].mxu1 }
0x2192   :  { %v3203_v43 = vpop.f32.mrb[87].mxu1  ;;  %v3211_v9 = vadd.f32 %v3207_v45, %v5208_v19 }
0x2193   :  { %v3212_v24 = vadd.f32 %v3208_v38, %v5210_v21 }
0x2194   :  { %v4335_v59 = vmul.f32 -1.442695, %v3211_v9 }
0x2195   :  { %4801 = vtanh.f32 %v3212_v24  ;;  %v4800_v46 = vpop.eup %4799  ;;  %v4336_v36 = vmul.f32 -1.442695, %v3212_v24 }
0x2196   :  { %3149 = vrot.lane.b32.xlu0 %v4800_v46, %s5071_s26  ;;  %4803 = vpow2.f32 %v4332_v57 }
0x2197   :  { %4805 = vpow2.f32 %v4335_v59 }
0x219f   :  { %v4802_v10 = vpop.eup %4801 }
0x21a0   :  { %3231 = vrot.lane.b32.xlu1 %v4802_v10, %s5071_s26  ;;  %v4804_v11 = vpop.eup %4803 }
0x21a1   :  { %v3140_v61 = vadd.f32 1.0, %v4804_v11  ;;  %v4806_v21 = vpop.eup %4805 }
0x21a2   :  { %v3219_v35 = vadd.f32 1.0, %v4806_v21 }
0x21a3   :  { %4807 = vrcp.f32 %v3140_v61 }
0x21a4   :  { %4809 = vrcp.f32 %v3219_v35 }
0x21ad   :  { %v4808_v1 = vpop.eup %4807 }
0x21ae   :  { %v4810_v16 = vpop.eup %4809  ;;  %v3147_v19 = vmul.f32 %v4808_v1, %v5818_v32  ;;  %v4333_v32 = vmul.f32 -1.442695, %v3133_v31 }
0x21af   :  { %v3229_v26 = vmul.f32 %v4810_v16, %v3227_v29 }
0x2208   :  { %v3150_v12 = vpop.permute.xlu0 %3149 }
0x2209   :  { %v3152_v14 = vmul.f32 %v4808_v1, %v3150_v12 }
0x220b   :  { %3154 = vrot.lane.b32.xlu0 %v3152_v14, %s5071_s26 }
0x2212   :  { %v3232_v30 = vpop.permute.xlu1 %3231 }
0x2213   :  { %v3234_v17 = vmul.f32 %v4810_v16, %v3232_v30 }
0x2215   :  { %3236 = vrot.lane.b32.xlu1 %v3234_v17, %s5071_s26 }
0x227d   :  { %v3155_v48 = vpop.permute.xlu0 %3154 }
0x227e   :  { %v5898_v49 = vadd.f32 %v3155_v48, %v3147_v19 }
0x2280   :  { %4811 = vtanh.f32 %v5898_v49 }
0x2287   :  { %v3237_v3 = vpop.permute.xlu1 %3236 }
0x2288   :  { %v5902_v53 = vadd.f32 %v3237_v3, %v3229_v26 }
0x228a   :  { %4813 = vtanh.f32 %v5902_v53  ;;  %v4812_v6 = vpop.eup %4811 }
0x228b   :  { %3160 = vrot.lane.b32.xlu0 %v4812_v6, %s5071_s26  ;;  %4815 = vpow2.f32 %v4333_v32 }
0x228c   :  { %4817 = vpow2.f32 %v4336_v36 }
0x2294   :  { %v4814_v8 = vpop.eup %4813 }
0x2295   :  { %3242 = vrot.lane.b32.xlu1 %v4814_v8, %s5071_s26  ;;  %v4816_v52 = vpop.eup %4815 }
0x2296   :  { %v3141_v38 = vadd.f32 1.0, %v4816_v52  ;;  %v4818_v40 = vpop.eup %4817 }
0x2297   :  { %v3220_v13 = vadd.f32 1.0, %v4818_v40 }
0x2298   :  { %4819 = vrcp.f32 %v3141_v38 }
0x2299   :  { %4821 = vrcp.f32 %v3220_v13 }
0x22a2   :  { %v4820_v43 = vpop.eup %4819 }
0x22a3   :  { %v4822_v31 = vpop.eup %4821 }
0x22fd   :  { %v3161_v46 = vpop.permute.xlu0 %3160 }
0x22fe   :  { %v3163_v10 = vmul.f32 %v4820_v43, %v3161_v46 }
0x2300   :  { %v3247_v63 = vpack.c.bf16 %v3163_v10, %v3163_v10 }
0x2302   :  { %4337 = vmatmul.mubr.msk.bf16.vlgmr.msra.gmra.mrb[88].mxu0 %vm735_vm7, %v3247_v63 }
0x2303   :  { %3371 = vmatpush1.bf16.msra.mxu0 %v5764_v37  ;;  %3402 = vmatprep.mubr.bf16.mxu0 %v5072_v56 }
0x2304   :  { %3372 = vmatprep.subr.bf16.mxu0 %v5768_v39 }
0x2307   :  { %v3243_v24 = vpop.permute.xlu1 %3242  ;;  %3373 = vmatpush1.bf16.msra.mxu0 %v5771_v41 }
0x2308   :  { %v3245_v57 = vmul.f32 %v4822_v31, %v3243_v24  ;;  %3374 = vmatprep.subr.bf16.mxu0 %v5774_v42 }
0x230a   :  { %v3246_v45 = vpack.c.bf16 %v3245_v57, %v3245_v57 }
0x230b   :  { %3375 = vmatpush1.bf16.msra.mxu0 %v5777_v7 }
0x230c   :  { %v3293_v9 = vrot.slane %v3246_v45, 3  ;;  %3376 = vmatprep.subr.bf16.mxu0 %v5780_v5 }
0x230e   :  { %4338 = vmatmul.mubr.msk.bf16.vlgmr.msra.gmra.mrb[88].mxu1 %vm735_vm7, %v3293_v9 }
0x230f   :  { %3452 = vmatpush1.bf16.msra.mxu1 %v5834_v58  ;;  %3483 = vmatprep.mubr.bf16.mxu1 %v5072_v56 }
0x2310   :  { %3377 = vmatpush1.bf16.msra.mxu0 %v5783_v47  ;;  %3453 = vmatprep.subr.bf16.mxu1 %v5839_v2 }
0x2311   :  { %3495 = vmatprep.subr.bf16.mxu0 %v5850_v15 }
0x2313   :  { %4341 = vmatmul.mubr.msk.bf16.vlgmr.msra.gmra.mrb[92].mxu0 %vm735_vm7, %v3293_v9  ;;  %3454 = vmatpush1.bf16.msra.mxu1 %v5843_v33 }
0x2314   :  { %3496 = vmatpush1.bf16.msra.mxu0 %v5860_v20  ;;  %3455 = vmatprep.subr.bf16.mxu1 %v5847_v60 }
0x2315   :  { %3497 = vmatprep.subr.bf16.mxu0 %v5863_v62  ;;  %3527 = vmatprep.mubr.bf16.mxu0 %v5072_v56 }
0x2317   :  { %3456 = vmatpush1.bf16.msra.mxu1 %v5854_v50 }
0x2318   :  { %3498 = vmatpush1.bf16.msra.mxu0 %v5870_v51  ;;  %3457 = vmatprep.subr.bf16.mxu1 %v5857_v34 }
0x2319   :  { %3499 = vmatprep.subr.bf16.mxu0 %v5874_v22 }
0x231b   :  { %3458 = vmatpush1.bf16.msra.mxu1 %v5867_v44 }
0x231c   :  { %3500 = vmatpush1.bf16.msra.mxu0 %v5877_v27  ;;  %3568 = vmatprep.subr.bf16.mxu1 %v5804_v55 }
0x231d   :  { %3501 = vmatprep.subr.bf16.mxu0 %v5880_v54 }
0x2320   :  { %3502 = vmatpush1.bf16.msra.mxu0 %v5883_v4 }
0x2321   :  { %3655 = vmatprep.subr.bf16.mxu0 %v5886_v28 }
0x23d5   :  { %v3285_v59 = vpop.f32.mrb[88].mxu0 }
0x23d6   :  { %v3287_v11 = vpop.f32.mrb[89].mxu0 }
0x23d7   :  { %v3289_v61 = vpop.f32.mrb[90].mxu0 }
0x23d8   :  { %v3290_v21 = vpop.f32.mrb[91].mxu0 }
0x23e1   :  { %v3331_v35 = vpop.f32.mrb[88].mxu1 }
0x23e2   :  { %v3332_v1 = vadd.f32 %v3331_v35, %v3285_v59  ;;  %v3333_v12 = vpop.f32.mrb[89].mxu1  ;;  %v3427_v59 = vrot.slane %v5902_v53, 6 }
0x23e3   :  { %v3334_v14 = vadd.f32 %v3333_v12, %v3287_v11  ;;  %v3335_v16 = vpop.f32.mrb[90].mxu1 }
0x23e4   :  { %v3336_v30 = vpop.f32.mrb[91].mxu1  ;;  %v3338_v32 = vadd.f32 %v3332_v1, %v5316_v0 }
0x23e5   :  { %v3339_v17 = vadd.f32 %v3334_v14, %v5308_v18 }
0x23e6   :  { %v3404_v19 = vpop.f32.mrb[92].mxu0  ;;  %v4339_v52 = vmul.f32 -1.442695, %v3338_v32 }
0x23e7   :  { %4823 = vtanh.f32 %v3339_v17  ;;  %v3406_v48 = vpop.f32.mrb[93].mxu0  ;;  %v3411_v36 = vadd.f32 %v3404_v19, %v5212_v23 }
0x23e8   :  { %v3412_v29 = vadd.f32 %v3406_v48, %v5214_v25  ;;  %v3408_v26 = vpop.f32.mrb[94].mxu0 }
0x23e9   :  { %v3409_v3 = vpop.f32.mrb[95].mxu0  ;;  %v4342_v38 = vmul.f32 -1.442695, %v3411_v36 }
0x23ea   :  { %4825 = vtanh.f32 %v3412_v29  ;;  %v4343_v16 = vmul.f32 -1.442695, %v3412_v29 }
0x23eb   :  { %4827 = vpow2.f32 %v4339_v52 }
0x23ec   :  { %4829 = vpow2.f32 %v4342_v38 }
0x23f1   :  { %v4824_v6 = vpop.eup %4823 }
0x23f2   :  { %3355 = vrot.lane.b32.xlu1 %v4824_v6, %s5071_s26 }
0x23f4   :  { %v4826_v8 = vpop.eup %4825 }
0x23f5   :  { %3431 = vrot.lane.b32.xlu0 %v4826_v8, %s5071_s26  ;;  %v4828_v40 = vpop.eup %4827 }
0x23f6   :  { %v4830_v13 = vpop.eup %4829  ;;  %v3346_v43 = vadd.f32 1.0, %v4828_v40 }
0x23f7   :  { %v3419_v46 = vadd.f32 1.0, %v4830_v13 }
0x23f8   :  { %4831 = vrcp.f32 %v3346_v43 }
0x23f9   :  { %4833 = vrcp.f32 %v3419_v46 }
0x2402   :  { %v4832_v10 = vpop.eup %4831 }
0x2403   :  { %v4834_v24 = vpop.eup %4833  ;;  %v3353_v9 = vmul.f32 %v4832_v10, %v5898_v49  ;;  %v4340_v49 = vmul.f32 -1.442695, %v3339_v17 }
0x2404   :  { %v3429_v21 = vmul.f32 %v4834_v24, %v3427_v59 }
0x2464   :  { %v3356_v63 = vpop.permute.xlu1 %3355 }
0x2465   :  { %v3358_v31 = vmul.f32 %v4832_v10, %v3356_v63 }
0x2467   :  { %3360 = vrot.lane.b32.xlu1 %v3358_v31, %s5071_s26  ;;  %v3432_v57 = vpop.permute.xlu0 %3431 }
0x2468   :  { %v3434_v45 = vmul.f32 %v4834_v24, %v3432_v57 }
0x246a   :  { %3436 = vrot.lane.b32.xlu0 %v3434_v45, %s5071_s26 }
0x24d9   :  { %v3361_v11 = vpop.permute.xlu1 %3360 }
0x24da   :  { %v5947_v61 = vadd.f32 %v3361_v11, %v3353_v9 }
0x24dc   :  { %4835 = vtanh.f32 %v5947_v61  ;;  %v3437_v35 = vpop.permute.xlu0 %3436 }
0x24dd   :  { %v5950_v1 = vadd.f32 %v3437_v35, %v3429_v21 }
0x24df   :  { %4837 = vtanh.f32 %v5950_v1 }
0x24e0   :  { %4839 = vpow2.f32 %v4340_v49 }
0x24e1   :  { %4841 = vpow2.f32 %v4343_v16 }
0x24e6   :  { %v4836_v12 = vpop.eup %4835 }
0x24e7   :  { %3366 = vrot.lane.b32.xlu1 %v4836_v12, %s5071_s26 }
0x24e9   :  { %v4838_v14 = vpop.eup %4837 }
0x24ea   :  { %3442 = vrot.lane.b32.xlu0 %v4838_v14, %s5071_s26  ;;  %v4840_v53 = vpop.eup %4839 }
0x24eb   :  { %v4842_v30 = vpop.eup %4841  ;;  %v3347_v19 = vadd.f32 1.0, %v4840_v53 }
0x24ec   :  { %v3420_v48 = vadd.f32 1.0, %v4842_v30 }
0x24ed   :  { %4843 = vrcp.f32 %v3347_v19 }
0x24ee   :  { %4845 = vrcp.f32 %v3420_v48 }
0x24f7   :  { %v4844_v26 = vpop.eup %4843 }
0x24f8   :  { %v4846_v8 = vpop.eup %4845 }
0x2559   :  { %v3367_v3 = vpop.permute.xlu1 %3366 }
0x255a   :  { %v3369_v6 = vmul.f32 %v4844_v26, %v3367_v3 }
0x255c   :  { %v3447_v32 = vpack.c.bf16 %v3369_v6, %v3369_v6  ;;  %v3443_v36 = vpop.permute.xlu0 %3442 }
0x255d   :  { %v3445_v52 = vmul.f32 %v4846_v8, %v3443_v36 }
0x255e   :  { %4344 = vmatmul.mubr.msk.bf16.vlgmr.msra.gmra.mrb[92].mxu1 %vm735_vm7, %v3447_v32 }
0x255f   :  { %v3446_v38 = vpack.c.bf16 %v3445_v52, %v3445_v52  ;;  %3569 = vmatpush1.bf16.msra.mxu1 %v5764_v37  ;;  %3600 = vmatprep.mubr.bf16.mxu1 %v5072_v56 }
0x2560   :  { %3570 = vmatprep.subr.bf16.mxu1 %v5768_v39 }
0x2561   :  { %4345 = vmatmul.mubr.msk.bf16.vlgmr.msra.gmra.mrb[96].mxu0 %vm735_vm7, %v3446_v38 }
0x2562   :  { %3656 = vmatpush1.bf16.msra.mxu0 %v5834_v58  ;;  %3687 = vmatprep.mubr.bf16.mxu0 %v5072_v56 }
0x2563   :  { %3571 = vmatpush1.bf16.msra.mxu1 %v5771_v41  ;;  %3657 = vmatprep.subr.bf16.mxu0 %v5839_v2 }
0x2564   :  { %3572 = vmatprep.subr.bf16.mxu1 %v5774_v42 }
0x2566   :  { %3658 = vmatpush1.bf16.msra.mxu0 %v5843_v33 }
0x2567   :  { %3573 = vmatpush1.bf16.msra.mxu1 %v5777_v7  ;;  %3659 = vmatprep.subr.bf16.mxu0 %v5847_v60 }
0x2568   :  { %3574 = vmatprep.subr.bf16.mxu1 %v5780_v5 }
0x256a   :  { %3660 = vmatpush1.bf16.msra.mxu0 %v5854_v50 }
0x256b   :  { %3575 = vmatpush1.bf16.msra.mxu1 %v5783_v47  ;;  %3661 = vmatprep.subr.bf16.mxu0 %v5857_v34 }
0x256c   :  { %3701 = vmatprep.subr.bf16.mxu1 %v5850_v15 }
0x256e   :  { %4348 = vmatmul.mubr.msk.bf16.vlgmr.msra.gmra.mrb[96].mxu1 %vm735_vm7, %v3446_v38  ;;  %3662 = vmatpush1.bf16.msra.mxu0 %v5867_v44 }
0x256f   :  { %3702 = vmatpush1.bf16.msra.mxu1 %v5860_v20  ;;  %3774 = vmatprep.subr.bf16.mxu0 %v5804_v55 }
0x2570   :  { %3703 = vmatprep.subr.bf16.mxu1 %v5863_v62  ;;  %3733 = vmatprep.mubr.bf16.mxu1 %v5072_v56 }
0x2573   :  { %3704 = vmatpush1.bf16.msra.mxu1 %v5870_v51 }
0x2574   :  { %3705 = vmatprep.subr.bf16.mxu1 %v5874_v22 }
0x2577   :  { %3706 = vmatpush1.bf16.msra.mxu1 %v5877_v27 }
0x2578   :  { %3707 = vmatprep.subr.bf16.mxu1 %v5880_v54 }
0x257b   :  { %3708 = vmatpush1.bf16.msra.mxu1 %v5883_v4 }
0x257c   :  { %3861 = vmatprep.subr.bf16.mxu1 %v5886_v28 }
0x2631   :  { %v3485_v17 = vpop.f32.mrb[92].mxu1 }
0x2632   :  { %v3487_v29 = vpop.f32.mrb[93].mxu1 }
0x2633   :  { %v3489_v40 = vpop.f32.mrb[94].mxu1 }
0x2634   :  { %v3490_v13 = vpop.f32.mrb[95].mxu1  ;;  %v3529_v43 = vpop.f32.mrb[96].mxu0 }
0x2635   :  { %v3530_v46 = vadd.f32 %v3529_v43, %v3485_v17  ;;  %v3531_v10 = vpop.f32.mrb[97].mxu0  ;;  %v3631_v43 = vrot.slane %v5950_v1, 6 }
0x2636   :  { %v3532_v63 = vadd.f32 %v3531_v10, %v3487_v29  ;;  %v3533_v31 = vpop.f32.mrb[98].mxu0 }
0x2637   :  { %v3534_v24 = vpop.f32.mrb[99].mxu0  ;;  %v3536_v49 = vadd.f32 %v3530_v46, %v5316_v0 }
0x2638   :  { %v3537_v57 = vadd.f32 %v3532_v63, %v5308_v18 }
0x2639   :  { %v4346_v16 = vmul.f32 -1.442695, %v3536_v49 }
0x263a   :  { %4847 = vtanh.f32 %v3537_v57 }
0x2641   :  { %v3602_v45 = vpop.f32.mrb[96].mxu1 }
0x2642   :  { %v3604_v9 = vpop.f32.mrb[97].mxu1  ;;  %v3611_v53 = vrot.slane %v3602_v45, 6 }
0x2643   :  { %v3612_v59 = vrot.slane %v3604_v9, 6  ;;  %v3606_v11 = vpop.f32.mrb[98].mxu1 }
0x2644   :  { %v4848_v21 = vpop.eup %4847  ;;  %v3607_v35 = vpop.f32.mrb[99].mxu1  ;;  %v3615_v30 = vadd.f32 %v3611_v53, %v5212_v23 }
0x2645   :  { %v3616_v12 = vadd.f32 %v3612_v59, %v5214_v25  ;;  %3553 = vrot.lane.b32.xlu1 %v4848_v21, %s5071_s26 }
0x2646   :  { %v4349_v19 = vmul.f32 -1.442695, %v3615_v30 }
0x2647   :  { %4849 = vtanh.f32 %v3616_v12  ;;  %v4350_v45 = vmul.f32 -1.442695, %v3616_v12 }
0x2648   :  { %4851 = vpow2.f32 %v4346_v16 }
0x2649   :  { %4853 = vpow2.f32 %v4349_v19 }
0x2651   :  { %v4850_v14 = vpop.eup %4849 }
0x2652   :  { %3635 = vrot.lane.b32.xlu0 %v4850_v14, %s5071_s26  ;;  %v4852_v48 = vpop.eup %4851 }
0x2653   :  { %v3544_v26 = vadd.f32 1.0, %v4852_v48  ;;  %v4854_v3 = vpop.eup %4853 }
0x2654   :  { %v3623_v6 = vadd.f32 1.0, %v4854_v3 }
0x2655   :  { %4855 = vrcp.f32 %v3544_v26 }
0x2656   :  { %4857 = vrcp.f32 %v3623_v6 }
0x265f   :  { %v4856_v8 = vpop.eup %4855 }
0x2660   :  { %v4858_v52 = vpop.eup %4857  ;;  %v3551_v29 = vmul.f32 %v4856_v8, %v5947_v61  ;;  %v4347_v61 = vmul.f32 -1.442695, %v3537_v57 }
0x2661   :  { %v3633_v46 = vmul.f32 %v4858_v52, %v3631_v43 }
0x26b7   :  { %v3554_v32 = vpop.permute.xlu1 %3553 }
0x26b8   :  { %v3556_v36 = vmul.f32 %v4856_v8, %v3554_v32 }
0x26ba   :  { %3558 = vrot.lane.b32.xlu1 %v3556_v36, %s5071_s26 }
0x26c4   :  { %v3636_v38 = vpop.permute.xlu0 %3635 }
0x26c5   :  { %v3638_v17 = vmul.f32 %v4858_v52, %v3636_v38 }
0x26c7   :  { %3640 = vrot.lane.b32.xlu0 %v3638_v17, %s5071_s26 }
0x272c   :  { %v3559_v40 = vpop.permute.xlu1 %3558 }
0x272d   :  { %v5994_v13 = vadd.f32 %v3559_v40, %v3551_v29 }
0x272f   :  { %4859 = vtanh.f32 %v5994_v13 }
0x2739   :  { %v4860_v10 = vpop.eup %4859  ;;  %v3641_v63 = vpop.permute.xlu0 %3640 }
0x273a   :  { %v5998_v31 = vadd.f32 %v3641_v63, %v3633_v46  ;;  %3564 = vrot.lane.b32.xlu1 %v4860_v10, %s5071_s26 }
0x273c   :  { %4861 = vtanh.f32 %v5998_v31 }
0x273d   :  { %4863 = vpow2.f32 %v4347_v61 }
0x273e   :  { %4865 = vpow2.f32 %v4350_v45 }
0x2746   :  { %v4862_v24 = vpop.eup %4861 }
0x2747   :  { %3646 = vrot.lane.b32.xlu0 %v4862_v24, %s5071_s26  ;;  %v4864_v9 = vpop.eup %4863 }
0x2748   :  { %v3545_v59 = vadd.f32 1.0, %v4864_v9  ;;  %v4866_v1 = vpop.eup %4865 }
0x2749   :  { %v3624_v11 = vadd.f32 1.0, %v4866_v1 }
0x274a   :  { %4867 = vrcp.f32 %v3545_v59 }
0x274b   :  { %4869 = vrcp.f32 %v3624_v11 }
0x2754   :  { %v4868_v21 = vpop.eup %4867 }
0x2755   :  { %v4870_v57 = vpop.eup %4869 }
0x27ac   :  { %v3565_v35 = vpop.permute.xlu1 %3564 }
0x27ad   :  { %v3567_v14 = vmul.f32 %v4868_v21, %v3565_v35 }
0x27af   :  { %v3651_v49 = vpack.c.bf16 %v3567_v14, %v3567_v14 }
0x27b1   :  { %4351 = vmatmul.mubr.msk.bf16.vlgmr.msra.gmra.mrb[100].mxu0 %vm735_vm7, %v3651_v49 }
0x27b2   :  { %3775 = vmatpush1.bf16.msra.mxu0 %v5764_v37  ;;  %3806 = vmatprep.mubr.bf16.mxu0 %v5072_v56 }
0x27b3   :  { %3776 = vmatprep.subr.bf16.mxu0 %v5768_v39 }
0x27b6   :  { %3777 = vmatpush1.bf16.msra.mxu0 %v5771_v41 }
0x27b7   :  { %3778 = vmatprep.subr.bf16.mxu0 %v5774_v42 }
0x27b9   :  { %v3647_v12 = vpop.permute.xlu0 %3646 }
0x27ba   :  { %v3649_v16 = vmul.f32 %v4870_v57, %v3647_v12  ;;  %3779 = vmatpush1.bf16.msra.mxu0 %v5777_v7  ;;  %v3837_v57 = vrot.slane %v5998_v31, 6 }
0x27bb   :  { %3780 = vmatprep.subr.bf16.mxu0 %v5780_v5 }
0x27bc   :  { %v3650_v53 = vpack.c.bf16 %v3649_v16, %v3649_v16 }
0x27be   :  { %v3697_v30 = vrot.slane %v3650_v53, 1  ;;  %3781 = vmatpush1.bf16.msra.mxu0 %v5783_v47 }
0x27bf   :  { %3907 = vmatprep.subr.bf16.mxu0 %v5850_v15 }
0x27c0   :  { %4352 = vmatmul.mubr.msk.bf16.vlgmr.msra.gmra.mrb[100].mxu1 %vm735_vm7, %v3697_v30 }
0x27c1   :  { %4355 = vmatmul.mubr.msk.bf16.vlgmr.msra.gmra.mrb[104].mxu0 %vm735_vm7, %v3697_v30  ;;  %3862 = vmatpush1.bf16.msra.mxu1 %v5834_v58 }
0x27c2   :  { %3863 = vmatprep.subr.bf16.mxu1 %v5839_v2  ;;  %3908 = vmatpush1.bf16.msra.mxu0 %v5860_v20 }
0x27c3   :  { %3909 = vmatprep.subr.bf16.mxu0 %v5863_v62  ;;  %3893 = vmatprep.mubr.bf16.mxu1 %v5072_v56 }
0x27c4   :  { %3939 = vmatprep.mubr.bf16.mxu0 %v5072_v56 }
0x27c5   :  { %3864 = vmatpush1.bf16.msra.mxu1 %v5843_v33 }
0x27c6   :  { %3865 = vmatprep.subr.bf16.mxu1 %v5847_v60  ;;  %3910 = vmatpush1.bf16.msra.mxu0 %v5870_v51 }
0x27c7   :  { %3911 = vmatprep.subr.bf16.mxu0 %v5874_v22 }
0x27c9   :  { %3866 = vmatpush1.bf16.msra.mxu1 %v5854_v50 }
0x27ca   :  { %3867 = vmatprep.subr.bf16.mxu1 %v5857_v34  ;;  %3912 = vmatpush1.bf16.msra.mxu0 %v5877_v27 }
0x27cb   :  { %3913 = vmatprep.subr.bf16.mxu0 %v5880_v54 }
0x27cd   :  { %3868 = vmatpush1.bf16.msra.mxu1 %v5867_v44 }
0x27ce   :  { %3980 = vmatprep.subr.bf16.mxu1 %v5804_v55  ;;  %3914 = vmatpush1.bf16.msra.mxu0 %v5883_v4 }
0x27cf   :  { %4067 = vmatprep.subr.bf16.mxu0 %v5886_v28 }
0x2884   :  { %v3689_v37 = vpop.f32.mrb[100].mxu0 }
0x2885   :  { %v3691_v39 = vpop.f32.mrb[101].mxu0 }
0x2886   :  { %v3693_v41 = vpop.f32.mrb[102].mxu0 }
0x2887   :  { %v3694_v42 = vpop.f32.mrb[103].mxu0 }
0x2893   :  { %v3735_v7 = vpop.f32.mrb[100].mxu1 }
0x2894   :  { %v3736_v5 = vadd.f32 %v3735_v7, %v3689_v37  ;;  %v3737_v47 = vpop.f32.mrb[101].mxu1  ;;  %v3808_v19 = vpop.f32.mrb[104].mxu0 }
0x2895   :  { %v3738_v48 = vadd.f32 %v3737_v47, %v3691_v39  ;;  %v3739_v26 = vpop.f32.mrb[102].mxu1  ;;  %v3810_v3 = vpop.f32.mrb[105].mxu0  ;;  %v3817_v29 = vrot.slane %v3808_v19, 4 }
0x2896   :  { %v3818_v6 = vrot.slane %v3810_v3, 4  ;;  %v3740_v8 = vpop.f32.mrb[103].mxu1  ;;  %v3812_v32 = vpop.f32.mrb[106].mxu0  ;;  %v3742_v17 = vadd.f32 %v3736_v5, %v5316_v0 }
0x2897   :  { %v3743_v55 = vadd.f32 %v3738_v48, %v5308_v18  ;;  %v3813_v36 = vpop.f32.mrb[107].mxu0  ;;  %v3821_v43 = vadd.f32 %v3817_v29, %v5212_v23  ;;  %v4981_v8 = vld [vmem:[#allocation4 + $0xb0] ss:$8 sps:$4 sm:$0xff]   ;;  %v4982_v32 = vld [vmem:[#allocation4 + $0xc4] ss:$8 sps:$4 sm:$0xff]  }
0x2898   :  { %v3822_v28 = vadd.f32 %v3818_v6, %v5214_v25  ;;  %v4353_v40 = vmul.f32 -1.442695, %v3742_v17  ;;  %v4986_v17 = vld [vmem:[#allocation4 + $0xe4] ss:$8 sps:$4 sm:$0xff]   ;;  %v4987_v29 = vld [vmem:[#allocation4 + $0xe0] ss:$8 sps:$4 sm:$0xff]  }
0x2899   :  { %4871 = vtanh.f32 %v3743_v55  ;;  %v4356_v46 = vmul.f32 -1.442695, %v3821_v43 }
0x289a   :  { %4873 = vtanh.f32 %v3822_v28  ;;  %v4357_v39 = vmul.f32 -1.442695, %v3822_v28  ;;  %v4983_v28 = vld [vmem:[#allocation4 + $0xc0] ss:$8 sps:$4 sm:$0xff]  }
0x289b   :  { %4875 = vpow2.f32 %v4353_v40 }
0x289c   :  { %4877 = vpow2.f32 %v4356_v46 }
0x28a3   :  { %v4872_v52 = vpop.eup %4871 }
0x28a4   :  { %3759 = vrot.lane.b32.xlu1 %v4872_v52, %s5071_s26  ;;  %v4874_v38 = vpop.eup %4873  ;;  %v4984_v52 = vld [vmem:[#allocation4 + $0xd4] ss:$8 sps:$4 sm:$0xff]  }
0x28a5   :  { %3841 = vrot.lane.b32.xlu0 %v4874_v38, %s5071_s26  ;;  %v4876_v10 = vpop.eup %4875  ;;  %v4985_v38 = vld [vmem:[#allocation4 + $0xd0] ss:$8 sps:$4 sm:$0xff]  }
0x28a6   :  { %v3750_v63 = vadd.f32 1.0, %v4876_v10  ;;  %v4878_v24 = vpop.eup %4877 }
0x28a7   :  { %v3829_v61 = vadd.f32 1.0, %v4878_v24 }
0x28a8   :  { %4879 = vrcp.f32 %v3750_v63 }
0x28a9   :  { %4881 = vrcp.f32 %v3829_v61 }
0x28b2   :  { %v4880_v45 = vpop.eup %4879 }
0x28b3   :  { %v4882_v1 = vpop.eup %4881  ;;  %v3757_v35 = vmul.f32 %v4880_v45, %v5994_v13  ;;  %v4354_v13 = vmul.f32 -1.442695, %v3743_v55 }
0x28b4   :  { %v3839_v12 = vmul.f32 %v4882_v1, %v3837_v57 }
0x2916   :  { %v3760_v9 = vpop.permute.xlu1 %3759 }
0x2917   :  { %v3762_v59 = vmul.f32 %v4880_v45, %v3760_v9  ;;  %v3842_v11 = vpop.permute.xlu0 %3841 }
0x2918   :  { %v3844_v21 = vmul.f32 %v4882_v1, %v3842_v11 }
0x2919   :  { %3764 = vrot.lane.b32.xlu1 %v3762_v59, %s5071_s26 }
0x291a   :  { %3846 = vrot.lane.b32.xlu0 %v3844_v21, %s5071_s26 }
0x298b   :  { %v3765_v14 = vpop.permute.xlu1 %3764 }
0x298c   :  { %v6042_v49 = vadd.f32 %v3765_v14, %v3757_v35  ;;  %v3847_v16 = vpop.permute.xlu0 %3846 }
0x298d   :  { %v6046_v53 = vadd.f32 %v3847_v16, %v3839_v12 }
0x298e   :  { %4883 = vtanh.f32 %v6042_v49 }
0x298f   :  { %4885 = vtanh.f32 %v6046_v53 }
0x2990   :  { %4887 = vpow2.f32 %v4354_v13 }
0x2991   :  { %4889 = vpow2.f32 %v4357_v39 }
0x2998   :  { %v4884_v30 = vpop.eup %4883 }
0x2999   :  { %3770 = vrot.lane.b32.xlu1 %v4884_v30, %s5071_s26  ;;  %v4886_v37 = vpop.eup %4885 }
0x299a   :  { %3852 = vrot.lane.b32.xlu0 %v4886_v37, %s5071_s26  ;;  %v4888_v41 = vpop.eup %4887  ;;  %v4043_v37 = vrot.slane %v6046_v53, 6 }
0x299b   :  { %v3751_v31 = vadd.f32 1.0, %v4888_v41  ;;  %v4890_v42 = vpop.eup %4889 }
0x299c   :  { %v3830_v7 = vadd.f32 1.0, %v4890_v42 }
0x299d   :  { %4891 = vrcp.f32 %v3751_v31 }
0x299e   :  { %4893 = vrcp.f32 %v3830_v7 }
0x29a7   :  { %v4892_v5 = vpop.eup %4891 }
0x29a8   :  { %v4894_v26 = vpop.eup %4893 }
0x2a0b   :  { %v3771_v47 = vpop.permute.xlu1 %3770 }
0x2a0c   :  { %v3773_v19 = vmul.f32 %v4892_v5, %v3771_v47  ;;  %v3853_v3 = vpop.permute.xlu0 %3852 }
0x2a0d   :  { %v3855_v6 = vmul.f32 %v4894_v26, %v3853_v3 }
0x2a0e   :  { %v3857_v48 = vpack.c.bf16 %v3773_v19, %v3773_v19 }
0x2a0f   :  { %v3856_v55 = vpack.c.bf16 %v3855_v6, %v3855_v6 }
0x2a10   :  { %4358 = vmatmul.mubr.msk.bf16.vlgmr.msra.gmra.mrb[104].mxu1 %vm735_vm7, %v3857_v48 }
0x2a11   :  { %3981 = vmatpush1.bf16.msra.mxu1 %v4981_v8  ;;  %4012 = vmatprep.mubr.bf16.mxu1 %v5072_v56  ;;  %v3903_v36 = vrot.slane %v3856_v55, 2 }
0x2a12   :  { %3982 = vmatprep.subr.bf16.mxu1 %v4982_v32 }
0x2a13   :  { %4359 = vmatmul.mubr.msk.bf16.vlgmr.msra.gmra.mrb[108].mxu0 %vm735_vm7, %v3903_v36 }
0x2a14   :  { %4068 = vmatpush1.bf16.msra.mxu0 %v5834_v58  ;;  %4099 = vmatprep.mubr.bf16.mxu0 %v5072_v56 }
0x2a15   :  { %3983 = vmatpush1.bf16.msra.mxu1 %v4983_v28  ;;  %4069 = vmatprep.subr.bf16.mxu0 %v5839_v2 }
0x2a16   :  { %3984 = vmatprep.subr.bf16.mxu1 %v4984_v52 }
0x2a18   :  { %4070 = vmatpush1.bf16.msra.mxu0 %v5843_v33 }
0x2a19   :  { %3985 = vmatpush1.bf16.msra.mxu1 %v4985_v38  ;;  %4071 = vmatprep.subr.bf16.mxu0 %v5847_v60 }
0x2a1a   :  { %3986 = vmatprep.subr.bf16.mxu1 %v4986_v17 }
0x2a1c   :  { %4072 = vmatpush1.bf16.msra.mxu0 %v5854_v50 }
0x2a1d   :  { %3987 = vmatpush1.bf16.msra.mxu1 %v4987_v29  ;;  %4073 = vmatprep.subr.bf16.mxu0 %v5857_v34 }
0x2a1e   :  { %4113 = vmatprep.subr.bf16.mxu1 %v5850_v15 }
0x2a20   :  { %4362 = vmatmul.mubr.msk.bf16.vlgmr.msra.gmra.mrb[108].mxu1 %vm735_vm7, %v3903_v36  ;;  %4074 = vmatpush1.bf16.msra.mxu0 %v5867_v44 }
0x2a21   :  { %4114 = vmatpush1.bf16.msra.mxu1 %v5860_v20  ;;  %4145 = vmatprep.mubr.bf16.mxu1 %v5072_v56 }
0x2a22   :  { %4115 = vmatprep.subr.bf16.mxu1 %v5863_v62 }
0x2a25   :  { %4116 = vmatpush1.bf16.msra.mxu1 %v5870_v51 }
0x2a26   :  { %4117 = vmatprep.subr.bf16.mxu1 %v5874_v22 }
0x2a29   :  { %4118 = vmatpush1.bf16.msra.mxu1 %v5877_v27 }
0x2a2a   :  { %4119 = vmatprep.subr.bf16.mxu1 %v5880_v54 }
0x2a2d   :  { %4120 = vmatpush1.bf16.msra.mxu1 %v5883_v4 }
0x2ae3   :  { %v3895_v58 = vpop.f32.mrb[104].mxu1 }
0x2ae4   :  { %v3897_v2 = vpop.f32.mrb[105].mxu1 }
0x2ae5   :  { %v3899_v33 = vpop.f32.mrb[106].mxu1 }
0x2ae6   :  { %v3900_v60 = vpop.f32.mrb[107].mxu1  ;;  %v3941_v15 = vpop.f32.mrb[108].mxu0 }
0x2ae7   :  { %v3942_v50 = vadd.f32 %v3941_v15, %v3895_v58  ;;  %v3943_v34 = vpop.f32.mrb[109].mxu0 }
0x2ae8   :  { %v3944_v56 = vadd.f32 %v3943_v34, %v3897_v2  ;;  %v3945_v20 = vpop.f32.mrb[110].mxu0 }
0x2ae9   :  { %v3946_v62 = vpop.f32.mrb[111].mxu0  ;;  %v3948_v10 = vadd.f32 %v3942_v50, %v5316_v0 }
0x2aea   :  { %v3949_v44 = vadd.f32 %v3944_v56, %v5308_v18 }
0x2aeb   :  { %v4360_v63 = vmul.f32 -1.442695, %v3948_v10 }
0x2aec   :  { %4895 = vtanh.f32 %v3949_v44  ;;  %v4361_v7 = vmul.f32 -1.442695, %v3949_v44 }
0x2af3   :  { %v4014_v51 = vpop.f32.mrb[108].mxu1 }
0x2af4   :  { %v4016_v22 = vpop.f32.mrb[109].mxu1  ;;  %v4023_v24 = vrot.slane %v4014_v51, 2 }
0x2af5   :  { %v4024_v27 = vrot.slane %v4016_v22, 2  ;;  %v4018_v40 = vpop.f32.mrb[110].mxu1 }
0x2af6   :  { %v4019_v54 = vpop.f32.mrb[111].mxu1  ;;  %v4896_v43 = vpop.eup %4895  ;;  %v4027_v61 = vadd.f32 %v4023_v24, %v5212_v23  ;;  %v4186_v24 = vld [vmem:[#allocation6 + $0xb0] ss:$0 sm:$0xff] }
0x2af7   :  { %v4028_v4 = vadd.f32 %v4024_v27, %v5214_v25  ;;  %3965 = vrot.lane.b32.xlu0 %v4896_v43, %s5071_s26 }
0x2af8   :  { %v4363_v45 = vmul.f32 -1.442695, %v4027_v61 }
0x2af9   :  { %4897 = vtanh.f32 %v4028_v4  ;;  %v4364_v5 = vmul.f32 -1.442695, %v4028_v4 }
0x2afa   :  { %4899 = vpow2.f32 %v4360_v63 }
0x2afb   :  { %4901 = vpow2.f32 %v4363_v45 }
0x2b03   :  { %v4898_v46 = vpop.eup %4897 }
0x2b04   :  { %4047 = vrot.lane.b32.xlu1 %v4898_v46, %s5071_s26  ;;  %v4900_v9 = vpop.eup %4899 }
0x2b05   :  { %v3956_v59 = vadd.f32 1.0, %v4900_v9  ;;  %v4902_v25 = vpop.eup %4901 }
0x2b06   :  { %v4035_v1 = vadd.f32 1.0, %v4902_v25  ;;  %v4187_v25 = vld [vmem:[#allocation6 + $0xc0] ss:$0 sm:$0xff] }
0x2b07   :  { %4903 = vrcp.f32 %v3956_v59 }
0x2b08   :  { %4905 = vrcp.f32 %v4035_v1 }
0x2b11   :  { %v4904_v11 = vpop.eup %4903 }
0x2b12   :  { %v4906_v14 = vpop.eup %4905  ;;  %v3963_v23 = vmul.f32 %v4904_v11, %v6042_v49 }
0x2b13   :  { %v4045_v13 = vmul.f32 %v4906_v14, %v4043_v37 }
0x2b69   :  { %v3966_v21 = vpop.permute.xlu0 %3965 }
0x2b6a   :  { %v3968_v35 = vmul.f32 %v4904_v11, %v3966_v21 }
0x2b6c   :  { %3970 = vrot.lane.b32.xlu0 %v3968_v35, %s5071_s26 }
0x2b76   :  { %v4048_v57 = vpop.permute.xlu1 %4047 }
0x2b77   :  { %v4050_v12 = vmul.f32 %v4906_v14, %v4048_v57 }
0x2b79   :  { %4052 = vrot.lane.b32.xlu1 %v4050_v12, %s5071_s26 }
0x2bde   :  { %v3971_v16 = vpop.permute.xlu0 %3970 }
0x2bdf   :  { %v3973_v30 = vadd.f32 %v3971_v16, %v3963_v23 }
0x2be1   :  { %4907 = vtanh.f32 %v3973_v30 }
0x2beb   :  { %v4053_v39 = vpop.permute.xlu1 %4052  ;;  %v4908_v31 = vpop.eup %4907 }
0x2bec   :  { %v4055_v41 = vadd.f32 %v4053_v39, %v4045_v13  ;;  %3976 = vrot.lane.b32.xlu0 %v4908_v31, %s5071_s26 }
0x2bee   :  { %4909 = vtanh.f32 %v4055_v41 }
0x2bef   :  { %4911 = vpow2.f32 %v4361_v7 }
0x2bf0   :  { %4913 = vpow2.f32 %v4364_v5 }
0x2bf8   :  { %v4910_v42 = vpop.eup %4909 }
0x2bf9   :  { %4058 = vrot.lane.b32.xlu1 %v4910_v42, %s5071_s26  ;;  %v4912_v49 = vpop.eup %4911 }
0x2bfa   :  { %v3957_v47 = vadd.f32 1.0, %v4912_v49  ;;  %v4914_v19 = vpop.eup %4913 }
0x2bfb   :  { %v4036_v48 = vadd.f32 1.0, %v4914_v19 }
0x2bfc   :  { %4915 = vrcp.f32 %v3957_v47 }
0x2bfd   :  { %4917 = vrcp.f32 %v4036_v48 }
0x2c06   :  { %v4916_v53 = vpop.eup %4915 }
0x2c07   :  { %v4918_v8 = vpop.eup %4917 }
0x2c5e   :  { %v3977_v26 = vpop.permute.xlu0 %3976 }
0x2c5f   :  { %v3979_v3 = vmul.f32 %v4916_v53, %v3977_v26 }
0x2c61   :  { %v4063_v6 = vpack.c.bf16 %v3979_v3, %v3979_v3 }
0x2c63   :  { %4365 = vmatmul.mubr.msk.bf16.vlgmr.msra.gmra.mrb[112].mxu0 %vm735_vm7, %v4063_v6 }
0x2c6b   :  { %v4059_v32 = vpop.permute.xlu1 %4058 }
0x2c6c   :  { %v4061_v55 = vmul.f32 %v4918_v8, %v4059_v32 }
0x2c6e   :  { %v4062_v36 = vpack.c.bf16 %v4061_v55, %v4061_v55 }
0x2c70   :  { %v4109_v28 = vrot.slane %v4062_v36, 3 }
0x2c72   :  { %4366 = vmatmul.mubr.msk.bf16.vlgmr.msra.gmra.mrb[112].mxu1 %vm735_vm7, %v4109_v28 }
0x2d36   :  { %v4101_v52 = vpop.f32.mrb[112].mxu0 }
0x2d37   :  { %v4103_v38 = vpop.f32.mrb[113].mxu0 }
0x2d38   :  { %v4105_v17 = vpop.f32.mrb[114].mxu0 }
0x2d39   :  { %v4106_v29 = vpop.f32.mrb[115].mxu0 }
0x2d45   :  { %v4147_v58 = vpop.f32.mrb[112].mxu1 }
0x2d46   :  { %v4148_v2 = vadd.f32 %v4147_v58, %v4101_v52  ;;  %v4149_v33 = vpop.f32.mrb[113].mxu1 }
0x2d47   :  { %v4150_v60 = vadd.f32 %v4149_v33, %v4103_v38  ;;  %v4151_v15 = vpop.f32.mrb[114].mxu1 }
0x2d48   :  { %v4152_v50 = vpop.f32.mrb[115].mxu1  ;;  %v4154_v20 = vadd.f32 %v4148_v2, %v5316_v0 }
0x2d49   :  { %v4155_v34 = vadd.f32 %v4150_v60, %v5308_v18 }
0x2d4a   :  { %v4367_v62 = vmul.f32 -1.442695, %v4154_v20 }
0x2d4b   :  { %4919 = vtanh.f32 %v4155_v34  ;;  %v4368_v46 = vmul.f32 -1.442695, %v4155_v34 }
0x2d4c   :  { %4921 = vpow2.f32 %v4367_v62 }
0x2d55   :  { %v4920_v56 = vpop.eup %4919 }
0x2d56   :  { %4171 = vrot.lane.b32.xlu1 %v4920_v56, %s5071_s26  ;;  %v4922_v44 = vpop.eup %4921 }
0x2d57   :  { %v4162_v51 = vadd.f32 1.0, %v4922_v44 }
0x2d59   :  { %4923 = vrcp.f32 %v4162_v51 }
0x2d63   :  { %v4924_v22 = vpop.eup %4923 }
0x2d64   :  { %v4169_v54 = vmul.f32 %v4924_v22, %v3973_v30 }
0x2dc8   :  { %v4172_v27 = vpop.permute.xlu1 %4171 }
0x2dc9   :  { %v4174_v40 = vmul.f32 %v4924_v22, %v4172_v27 }
0x2dcb   :  { %4176 = vrot.lane.b32.xlu0 %v4174_v40, %s5071_s26 }
0x2e3d   :  { %v4177_v4 = vpop.permute.xlu0 %4176 }
0x2e3e   :  { %v4179_v43 = vadd.f32 %v4177_v4, %v4169_v54 }
0x2e40   :  { %4925 = vtanh.f32 %v4179_v43 }
0x2e41   :  { %4927 = vpow2.f32 %v4368_v46 }
0x2e4a   :  { %v4926_v18 = vpop.eup %4925 }
0x2e4b   :  { %4182 = vrot.lane.b32.xlu1 %v4926_v18, %s5071_s26  ;;  %v4928_v0 = vpop.eup %4927 }
0x2e4c   :  { %v4163_v10 = vadd.f32 1.0, %v4928_v0 }
0x2e4e   :  { %4929 = vrcp.f32 %v4163_v10 }
0x2e58   :  { %v4930_v63 = vpop.eup %4929 }
0x2ebd   :  { %v4183_v61 = vpop.permute.xlu1 %4182 }
0x2ebe   :  { %v4185_v45 = vmul.f32 %v4930_v63, %v4183_v61 }
0x2ec0   :  { %v4188_v9 = vmul.f32 %v4186_v24, %v4185_v45 }
0x2ec2   :  { %v4190_v59 = vsel %vm4189_vm8, %v4188_v9, 0.0 }
0x2ec3   :  { %4191 = vadd.xlane.f32.xlu0 %v4190_v59 }
0x2f50   :  { %v4192_v1 = vpop.xlane.xlu0 %4191 }
0x2f51   :  { %v4193_v11 = vadd.f32 %v4192_v1, %v4187_v25 }
0x2f53   :  { %4931 = vtanh.f32 %v4193_v11 }
0x2f5d   :  { %v4932_v21 = vpop.eup %4931 }
0x2f5e   :  { %4196 = vst.msk [vmem:[%s6097_s3] sm:$0x3] %vm4195_vm9, %v4932_v21 }
0x2f5f   :  { %4201 = vsyncpa [#allocation3], 1 }
0x2f60   :  { %4202 = vsyncpa [#allocation5], 1 }

</bundles_post_ra>
